<compile_context>
chip_gen: v5e
topology: v5e:2x2
jax: 0.10.0
libtpu: 0.0.40
codegen_flags: <defaults>
</compile_context>

<pallas_src>
import functools

import jax
import jax.numpy as jnp
from jax.experimental import pallas as pl
from jax.experimental.pallas import tpu as pltpu

KH = KW = 4
LEAKY_SLOPE = 0.2
BN_EPS = 1e-5


def _round_up(x, m):
    return ((x + m - 1) // m) * m


@functools.lru_cache(maxsize=None)
def _vmem_limit_bytes():
    """Per-generation VMEM cap: ~3/4 of physical, never above 100 MiB."""
    phys = 64 * 1024 * 1024          # conservative fallback (v7x-sized)
    try:
        info = pltpu.get_tpu_info()
        for name in ("vmem_capacity_bytes", "vmem_bytes", "vmem_size_bytes"):
            v = getattr(info, name, None)
            if v:
                phys = int(v)
                break
    except Exception:
        pass
    return min((phys * 3) // 4, 100 * 1024 * 1024)


# ---------------------------------------------------------------------------
# Pallas kernel: direct conv (ke row taps, column taps pre-concatenated along K)
# ---------------------------------------------------------------------------
def _conv_kernel(x_ref, w_ref, b_ref, *refs, ke, w2, m, ow, act, emit_stats):
    """One image per grid step.

    x_ref:  (HI*W2, K)      bf16 flattened padded plane, K = ke*CE (column taps in K)
    w_ref:  (ke, K, Coutp)  bf16 per-row-tap weights
    b_ref:  (1, Coutp)      f32 bias
    out:    (m, Coutp)      conv output, m = oh*W2 (only columns [0, ow) are valid)
    stats:  (2, Coutp)      [sum, sum_sq] over valid output positions (BN layers only)
    acc:    (m, Coutp)      f32 scratch accumulator
    """
    if emit_stats:
        o_ref, stats_ref, acc_ref = refs
    else:
        o_ref, acc_ref = refs

    # Tap 0: direct store (no zero-init, no read-modify-write).
    acc_ref[...] = jnp.dot(x_ref[0:m, :], w_ref[0],
                           preferred_element_type=jnp.float32)
    # Remaining row taps: sublane-aligned shifted accumulation (offsets are multiples of
    # W2, which is a multiple of 8).
    for r in range(1, ke):
        off = r * w2
        acc_ref[...] += jnp.dot(x_ref[off:off + m, :], w_ref[r],
                                preferred_element_type=jnp.float32)

    y = acc_ref[...] + b_ref[...]
    if act == "leaky":
        y = jnp.where(y >= 0, y, LEAKY_SLOPE * y)
    elif act == "sigmoid":
        y = jax.nn.sigmoid(y)
    o_ref[...] = y.astype(o_ref.dtype)

    if emit_stats:
        if ow == w2:
            yv = y
        else:
            # Mask the padded-width junk columns before reducing.
            p = jax.lax.broadcasted_iota(jnp.int32, (m, 1), 0)
            yv = jnp.where((p % w2) < ow, y, 0.0)
        stats_ref[0:1, :] = jnp.sum(yv, axis=0, keepdims=True)
        stats_ref[1:2, :] = jnp.sum(yv * yv, axis=0, keepdims=True)


def _conv_layer(x_flat, wr, bias, *, m, w2, ow, ke, act, emit_stats, out_dtype):
    B, n_in, kdim = x_flat.shape
    _, _, coutp = wr.shape

    kernel = functools.partial(_conv_kernel, ke=ke, w2=w2, m=m, ow=ow,
                               act=act, emit_stats=emit_stats)

    out_shape = jax.ShapeDtypeStruct((B, m, coutp), out_dtype)
    out_spec = pl.BlockSpec((None, m, coutp), lambda b: (b, 0, 0))
    if emit_stats:
        out_shape = (out_shape, jax.ShapeDtypeStruct((B, 2, coutp), jnp.float32))
        out_spec = (out_spec, pl.BlockSpec((None, 2, coutp), lambda b: (b, 0, 0)))

    return pl.pallas_call(
        kernel,
        out_shape=out_shape,
        grid=(B,),
        in_specs=[
            pl.BlockSpec((None, n_in, kdim), lambda b: (b, 0, 0)),
            pl.BlockSpec((ke, kdim, coutp), lambda b: (0, 0, 0)),
            pl.BlockSpec((1, coutp), lambda b: (0, 0)),
        ],
        out_specs=out_spec,
        scratch_shapes=[pltpu.VMEM((m, coutp), jnp.float32)],
        compiler_params=pltpu.CompilerParams(
            dimension_semantics=("parallel",),
            vmem_limit_bytes=_vmem_limit_bytes()),
    )(x_flat, wr, bias)


# ---------------------------------------------------------------------------
# XLA glue: pad / space-to-depth / column-tap K-concat / weight rearrangement
# ---------------------------------------------------------------------------
def _prep_layer_input(a, stride):
    """a: (B, H, W, C) activation -> flat bf16 kernel input (B, HI*W2, ke*CE) + geometry."""
    B, H, W, C = a.shape
    oh = (H + 2 - KH) // stride + 1
    ow = (W + 2 - KW) // stride + 1
    xp = jnp.pad(a, ((0, 0), (1, 1), (1, 1), (0, 0)))
    if stride == 2:
        hp, wp = H + 2, W + 2
        hp2, wp2 = hp + (hp % 2), wp + (wp % 2)
        if (hp2, wp2) != (hp, wp):
            xp = jnp.pad(xp, ((0, 0), (0, hp2 - hp), (0, wp2 - wp), (0, 0)))
        xp = xp.reshape(B, hp2 // 2, 2, wp2 // 2, 2, C)
        xp = xp.transpose(0, 1, 3, 2, 4, 5).reshape(B, hp2 // 2, wp2 // 2, 4 * C)
        ke = 2
    else:
        ke = 4
    # K-concat of the ke column taps: X2[b,i,j, c*CE + k] = plane[b, i, j+c, k].
    x2 = jnp.concatenate([xp[:, :, c:c + ow, :] for c in range(ke)], axis=-1)
    w2 = _round_up(ow, 8)                       # sublane-aligned flattened row stride
    if w2 != ow:
        x2 = jnp.pad(x2, ((0, 0), (0, 0), (0, w2 - ow), (0, 0)))
    hi, kdim = x2.shape[1], x2.shape[3]
    x_flat = x2.reshape(B, hi * w2, kdim).astype(jnp.bfloat16)
    return x_flat, dict(oh=oh, ow=ow, w2=w2, ke=ke, kdim=kdim)


def _prep_weight(w, stride, coutp):
    """w: (4,4,Cin,Cout) HWIO -> (ke, ke*CE, Coutp) bf16 matching the kernel layout."""
    _, _, cin, cout = w.shape
    if stride == 2:
        # Space-to-depth: 4x4/stride-2 conv -> 2x2/stride-1 conv on the s2d grid.
        ws = w.reshape(2, 2, 2, 2, cin, cout)       # (r_tap, p, c_tap, q, cin, cout)
        ws = ws.transpose(0, 2, 1, 3, 4, 5)         # (r_tap, c_tap, p, q, cin, cout)
        ws = ws.reshape(2, 2, 4 * cin, cout)        # CE index = (p*2+q)*cin + c
        ke, ce = 2, 4 * cin
    else:
        ws = w                                      # (r, c, cin, cout)
        ke, ce = 4, cin
    wr = ws.reshape(ke, ke * ce, cout)              # K index = c_tap*CE + k
    if coutp > cout:
        wr = jnp.pad(wr, ((0, 0), (0, 0), (0, coutp - cout)))
    return wr.astype(jnp.bfloat16)


# ---------------------------------------------------------------------------
# PatchGAN: parameter init + forward
# ---------------------------------------------------------------------------
def init_patchgan_params(key, dim=64):
    # channel plan: 6 -> d -> 2d -> 4d -> 8d -> 8d -> 1
    chans = [(6, dim), (dim, dim * 2), (dim * 2, dim * 4),
             (dim * 4, dim * 8), (dim * 8, dim * 8), (dim * 8, 1)]
    params = []
    for cin, cout in chans:
        key, kw_, kb_ = jax.random.split(key, 3)
        w = 0.02 * jax.random.normal(kw_, (KH, KW, cin, cout), jnp.float32)
        bound = 1.0 / (cin * KH * KW) ** 0.5
        b = jax.random.uniform(kb_, (cout,), jnp.float32, -bound, bound)
        params.append((w, b))
    return params


def _layer_cfg(sigmoid):
    return [
        (False, 2, "leaky"),
        (True, 2, "leaky"),
        (True, 2, "leaky"),
        (True, 2, "leaky"),
        (True, 1, "leaky"),
        (False, 1, "sigmoid" if sigmoid else "none"),
    ]


def _patchgan_forward(x_nchw, params, sigmoid=True):
    B = x_nchw.shape[0]
    a = jnp.transpose(x_nchw, (0, 2, 3, 1)).astype(jnp.float32)   # NCHW -> NHWC
    cfg = _layer_cfg(sigmoid)
    n_layers = len(cfg)

    for li, ((w, b), (norm, stride, act)) in enumerate(zip(params, cfg)):
        cout = w.shape[-1]
        last = li == n_layers - 1
        x_flat, g = _prep_layer_input(a, stride)
        coutp = _round_up(cout, 128)              # lane-dense output channels everywhere
        wr = _prep_weight(w, stride, coutp)
        bias = b.astype(jnp.float32).reshape(1, cout)
        if coutp > cout:
            bias = jnp.pad(bias, ((0, 0), (0, coutp - cout)))
        m = g["oh"] * g["w2"]

        if norm:
            # Conv + bias; per-image channel sum / sum_sq fused into the epilogue.
            y, stats = _conv_layer(
                x_flat, wr, bias, m=m, w2=g["w2"], ow=g["ow"], ke=g["ke"],
                act="none", emit_stats=True, out_dtype=jnp.bfloat16)
            s = jnp.sum(stats, axis=0)                       # (2, coutp)
            count = float(B * g["oh"] * g["ow"])
            mean = s[0] / count
            var = jnp.maximum(s[1] / count - mean * mean, 0.0)   # biased (training BN)
            inv = 1.0 / jnp.sqrt(var + BN_EPS)               # gamma = 1
            scale = inv[:cout]
            shift = (-mean * inv)[:cout]                     # beta = 0
            # BN affine + LeakyReLU in plain jnp: fuses with this slice and with the next
            # layer's pad / space-to-depth / concat copy -> no extra Pallas pass.
            yv = y.reshape(B, g["oh"], g["w2"], coutp)[:, :, :g["ow"], :cout]
            v = yv.astype(jnp.float32) * scale + shift
            a = jnp.where(v >= 0, v, LEAKY_SLOPE * v).astype(jnp.bfloat16)
        else:
            out = _conv_layer(
                x_flat, wr, bias, m=m, w2=g["w2"], ow=g["ow"], ke=g["ke"],
                act=act, emit_stats=False,
                out_dtype=jnp.float32 if last else jnp.bfloat16)
            # Slice away padded-width columns / padded channels (fuses with next glue).
            a = out.reshape(B, g["oh"], g["w2"], coutp)[:, :, :g["ow"], :cout]

    return jnp.transpose(a, (0, 3, 1, 2)).astype(jnp.float32)     # NHWC -> NCHW


patchgan_forward = jax.jit(_patchgan_forward, static_argnames=("sigmoid",))


# ---------------------------------------------------------------------------
# Plain-JAX reference (for correctness validation of the Pallas path)
# ---------------------------------------------------------------------------
def _reference_forward(x_nchw, params, sigmoid=True):
    a = jnp.transpose(x_nchw, (0, 2, 3, 1)).astype(jnp.float32)
    for (w, b), (norm, stride, act) in zip(params, _layer_cfg(sigmoid)):
        y = jax.lax.conv_general_dilated(
            a, w, (stride, stride), [(1, 1), (1, 1)],
            dimension_numbers=("NHWC", "HWIO", "NHWC")) + b
        if norm:
            mean = y.mean(axis=(0, 1, 2))
            var = y.var(axis=(0, 1, 2))
            y = (y - mean) / jnp.sqrt(var + BN_EPS)
        if act == "leaky":
            y = jnp.where(y >= 0, y, LEAKY_SLOPE * y)
        elif act == "sigmoid":
            y = jax.nn.sigmoid(y)
        a = y
    return jnp.transpose(a, (0, 3, 1, 2))


if __name__ == "__main__":
    key = jax.random.PRNGKey(0)
    k_param, k_x = jax.random.split(key)

    dim = 8                       # small dim for the synthetic test
    params = init_patchgan_params(k_param, dim=dim)

    # input: [batch=2, channels=6, H=64, W=64]  (6 channels = concatenated image pair)
    x = jax.random.normal(k_x, (2, 6, 64, 64), jnp.float32)

    out = patchgan_forward(x, params, sigmoid=True)
    out = jax.block_until_ready(out)

    assert out.shape == (2, 1, 2, 2), out.shape
    assert bool(jnp.all(jnp.isfinite(out)))
    assert bool(jnp.all((out >= 0.0) & (out <= 1.0)))   # sigmoid output range

    ref = _reference_forward(x, params, sigmoid=True)
    max_err = float(jnp.max(jnp.abs(out - ref)))
    assert max_err < 5e-2, max_err                      # bf16 matmul path vs f32 reference

    print("KERNEL_OK")
</pallas_src>

<mosaic_0001>
module attributes {stable_mosaic.version = 11 : i64} {
  func.func @_conv_kernel(%arg0: i32, %arg1: memref<1x1056x48xbf16, #tpu.memory_space<vmem>>, %arg2: memref<2x48x128xbf16, #tpu.memory_space<vmem>>, %arg3: memref<1x128xf32, #tpu.memory_space<vmem>>, %arg4: memref<1x1024x128xbf16, #tpu.memory_space<vmem>>, %arg5: memref<1024x128xf32, #tpu.memory_space<vmem>>) attributes {dimension_semantics = [#tpu.dimension_semantics<parallel>], iteration_bounds = array<i64: 2>, scalar_prefetch = 0 : i64, scratch_operands = 1 : i64, tpu.core_type = #tpu.core_type<tc>, window_params = [{transform_indices = @transform_0, window_bounds = array<i64: 1, 1056, 48>}, {pipeline_mode = #tpu.pipeline_mode<synchronous>, transform_indices = @transform_1, window_bounds = array<i64: 2, 48, 128>}, {pipeline_mode = #tpu.pipeline_mode<synchronous>, transform_indices = @transform_2, window_bounds = array<i64: 1, 128>}, {transform_indices = @transform_3, window_bounds = array<i64: 1, 1024, 128>}]} {
    %c0 = arith.constant 0 : index
    %c0_0 = arith.constant 0 : index
    %c0_1 = arith.constant 0 : index
    %0 = vector.load %arg1[%c0, %c0_0, %c0_1] : memref<1x1056x48xbf16, #tpu.memory_space<vmem>>, vector<1x1024x48xbf16>
    %1 = vector.shape_cast %0 : vector<1x1024x48xbf16> to vector<1024x48xbf16>
    %c0_2 = arith.constant 0 : index
    %c0_3 = arith.constant 0 : index
    %c0_4 = arith.constant 0 : index
    %2 = vector.load %arg2[%c0_2, %c0_3, %c0_4] : memref<2x48x128xbf16, #tpu.memory_space<vmem>>, vector<1x48x128xbf16>
    %3 = vector.shape_cast %2 : vector<1x48x128xbf16> to vector<48x128xbf16>
    %cst = arith.constant dense<0.000000e+00> : vector<1024x128xf32>
    %4 = tpu.matmul %1, %3, %cst {dimension_numbers = #tpu.dot_dimension_numbers<[1], [0], [0], [1], [0, 0, 1, 1], [], []>} : vector<1024x48xbf16>, vector<48x128xbf16>, vector<1024x128xf32> -> vector<1024x128xf32>
    %c0_5 = arith.constant 0 : index
    %c0_6 = arith.constant 0 : index
    %5 = vector.load %arg5[%c0_5, %c0_6] : memref<1024x128xf32, #tpu.memory_space<vmem>>, vector<1024x128xf32>
    tpu.vector_store %arg5[%c0_5, %c0_6], %4 {strides = array<i32>} : memref<1024x128xf32, #tpu.memory_space<vmem>>, vector<1024x128xf32>,
    %c0_7 = arith.constant 0 : index
    %c0_8 = arith.constant 0 : index
    %6 = vector.load %arg5[%c0_7, %c0_8] : memref<1024x128xf32, #tpu.memory_space<vmem>>, vector<1024x128xf32>
    %c0_9 = arith.constant 0 : index
    %c32 = arith.constant 32 : index
    %c0_10 = arith.constant 0 : index
    %7 = vector.load %arg1[%c0_9, %c32, %c0_10] : memref<1x1056x48xbf16, #tpu.memory_space<vmem>>, vector<1x1024x48xbf16>
    %8 = vector.shape_cast %7 : vector<1x1024x48xbf16> to vector<1024x48xbf16>
    %c1 = arith.constant 1 : index
    %c0_11 = arith.constant 0 : index
    %c0_12 = arith.constant 0 : index
    %9 = vector.load %arg2[%c1, %c0_11, %c0_12] : memref<2x48x128xbf16, #tpu.memory_space<vmem>>, vector<1x48x128xbf16>
    %10 = vector.shape_cast %9 : vector<1x48x128xbf16> to vector<48x128xbf16>
    %cst_13 = arith.constant dense<0.000000e+00> : vector<1024x128xf32>
    %11 = tpu.matmul %8, %10, %cst_13 {dimension_numbers = #tpu.dot_dimension_numbers<[1], [0], [0], [1], [0, 0, 1, 1], [], []>} : vector<1024x48xbf16>, vector<48x128xbf16>, vector<1024x128xf32> -> vector<1024x128xf32>
    %12 = arith.addf %6, %11 : vector<1024x128xf32>
    %c0_14 = arith.constant 0 : index
    %c0_15 = arith.constant 0 : index
    %13 = vector.load %arg5[%c0_14, %c0_15] : memref<1024x128xf32, #tpu.memory_space<vmem>>, vector<1024x128xf32>
    tpu.vector_store %arg5[%c0_14, %c0_15], %12 {strides = array<i32>} : memref<1024x128xf32, #tpu.memory_space<vmem>>, vector<1024x128xf32>,
    %c0_16 = arith.constant 0 : index
    %c0_17 = arith.constant 0 : index
    %14 = vector.load %arg5[%c0_16, %c0_17] : memref<1024x128xf32, #tpu.memory_space<vmem>>, vector<1024x128xf32>
    %c0_18 = arith.constant 0 : index
    %c0_19 = arith.constant 0 : index
    %15 = vector.load %arg3[%c0_18, %c0_19] : memref<1x128xf32, #tpu.memory_space<vmem>>, vector<1x128xf32>
    %16 = vector.broadcast %15 : vector<1x128xf32> to vector<1024x128xf32>
    %17 = arith.addf %14, %16 : vector<1024x128xf32>
    %cst_20 = arith.constant 0.000000e+00 : f32
    %18 = vector.broadcast %cst_20 : f32 to vector<1024x128xf32>
    %19 = arith.cmpf oge, %17, %18 : vector<1024x128xf32>
    %cst_21 = arith.constant 2.000000e-01 : f32
    %20 = vector.broadcast %cst_21 : f32 to vector<1024x128xf32>
    %21 = arith.mulf %20, %17 : vector<1024x128xf32>
    %22 = arith.select %19, %17, %21 : vector<1024x128xi1>, vector<1024x128xf32>
    %23 = arith.truncf %22 : vector<1024x128xf32> to vector<1024x128xbf16>
    %c0_22 = arith.constant 0 : index
    %c0_23 = arith.constant 0 : index
    %c0_24 = arith.constant 0 : index
    %24 = vector.load %arg4[%c0_22, %c0_23, %c0_24] : memref<1x1024x128xbf16, #tpu.memory_space<vmem>>, vector<1x1024x128xbf16>
    %25 = vector.shape_cast %24 : vector<1x1024x128xbf16> to vector<1024x128xbf16>
    %26 = vector.shape_cast %23 : vector<1024x128xbf16> to vector<1x1024x128xbf16>
    tpu.vector_store %arg4[%c0_22, %c0_23, %c0_24], %26 {strides = array<i32>} : memref<1x1024x128xbf16, #tpu.memory_space<vmem>>, vector<1x1024x128xbf16>,
    return
  }
  func.func @transform_0(%arg0: i32) -> (i32, i32, i32) {
    %c0_i32 = arith.constant 0 : i32
    %c0_i32_0 = arith.constant 0 : i32
    %c0_i32_1 = arith.constant 0 : i32
    return %arg0, %c0_i32, %c0_i32_0 : i32, i32, i32
  }
  func.func @transform_1(%arg0: i32) -> (i32, i32, i32) {
    %c0_i32 = arith.constant 0 : i32
    %c0_i32_0 = arith.constant 0 : i32
    %c0_i32_1 = arith.constant 0 : i32
    %c0_i32_2 = arith.constant 0 : i32
    return %c0_i32, %c0_i32_0, %c0_i32_1 : i32, i32, i32
  }
  func.func @transform_2(%arg0: i32) -> (i32, i32) {
    %c0_i32 = arith.constant 0 : i32
    %c0_i32_0 = arith.constant 0 : i32
    %c0_i32_1 = arith.constant 0 : i32
    return %c0_i32, %c0_i32_0 : i32, i32
  }
  func.func @transform_3(%arg0: i32) -> (i32, i32, i32) {
    %c0_i32 = arith.constant 0 : i32
    %c0_i32_0 = arith.constant 0 : i32
    %c0_i32_1 = arith.constant 0 : i32
    return %arg0, %c0_i32, %c0_i32_0 : i32, i32, i32
  }
}

module attributes {stable_mosaic.version = 11 : i64} {
  func.func @_conv_kernel(%arg0: i32, %arg1: memref<1x272x64xbf16, #tpu.memory_space<vmem>>, %arg2: memref<2x64x128xbf16, #tpu.memory_space<vmem>>, %arg3: memref<1x128xf32, #tpu.memory_space<vmem>>, %arg4: memref<1x256x128xbf16, #tpu.memory_space<vmem>>, %arg5: memref<1x2x128xf32, #tpu.memory_space<vmem>>, %arg6: memref<256x128xf32, #tpu.memory_space<vmem>>) attributes {dimension_semantics = [#tpu.dimension_semantics<parallel>], iteration_bounds = array<i64: 2>, scalar_prefetch = 0 : i64, scratch_operands = 1 : i64, tpu.core_type = #tpu.core_type<tc>, window_params = [{transform_indices = @transform_0, window_bounds = array<i64: 1, 272, 64>}, {pipeline_mode = #tpu.pipeline_mode<synchronous>, transform_indices = @transform_1, window_bounds = array<i64: 2, 64, 128>}, {pipeline_mode = #tpu.pipeline_mode<synchronous>, transform_indices = @transform_2, window_bounds = array<i64: 1, 128>}, {transform_indices = @transform_3, window_bounds = array<i64: 1, 256, 128>}, {transform_indices = @transform_4, window_bounds = array<i64: 1, 2, 128>}]} {
    %c0 = arith.constant 0 : index
    %c0_0 = arith.constant 0 : index
    %c0_1 = arith.constant 0 : index
    %0 = vector.load %arg1[%c0, %c0_0, %c0_1] : memref<1x272x64xbf16, #tpu.memory_space<vmem>>, vector<1x256x64xbf16>
    %1 = vector.shape_cast %0 : vector<1x256x64xbf16> to vector<256x64xbf16>
    %c0_2 = arith.constant 0 : index
    %c0_3 = arith.constant 0 : index
    %c0_4 = arith.constant 0 : index
    %2 = vector.load %arg2[%c0_2, %c0_3, %c0_4] : memref<2x64x128xbf16, #tpu.memory_space<vmem>>, vector<1x64x128xbf16>
    %3 = vector.shape_cast %2 : vector<1x64x128xbf16> to vector<64x128xbf16>
    %cst = arith.constant dense<0.000000e+00> : vector<256x128xf32>
    %4 = tpu.matmul %1, %3, %cst {dimension_numbers = #tpu.dot_dimension_numbers<[1], [0], [0], [1], [0, 0, 1, 1], [], []>} : vector<256x64xbf16>, vector<64x128xbf16>, vector<256x128xf32> -> vector<256x128xf32>
    %c0_5 = arith.constant 0 : index
    %c0_6 = arith.constant 0 : index
    %5 = vector.load %arg6[%c0_5, %c0_6] : memref<256x128xf32, #tpu.memory_space<vmem>>, vector<256x128xf32>
    tpu.vector_store %arg6[%c0_5, %c0_6], %4 {strides = array<i32>} : memref<256x128xf32, #tpu.memory_space<vmem>>, vector<256x128xf32>,
    %c0_7 = arith.constant 0 : index
    %c0_8 = arith.constant 0 : index
    %6 = vector.load %arg6[%c0_7, %c0_8] : memref<256x128xf32, #tpu.memory_space<vmem>>, vector<256x128xf32>
    %c0_9 = arith.constant 0 : index
    %c16 = arith.constant 16 : index
    %c0_10 = arith.constant 0 : index
    %7 = vector.load %arg1[%c0_9, %c16, %c0_10] : memref<1x272x64xbf16, #tpu.memory_space<vmem>>, vector<1x256x64xbf16>
    %8 = vector.shape_cast %7 : vector<1x256x64xbf16> to vector<256x64xbf16>
    %c1 = arith.constant 1 : index
    %c0_11 = arith.constant 0 : index
    %c0_12 = arith.constant 0 : index
    %9 = vector.load %arg2[%c1, %c0_11, %c0_12] : memref<2x64x128xbf16, #tpu.memory_space<vmem>>, vector<1x64x128xbf16>
    %10 = vector.shape_cast %9 : vector<1x64x128xbf16> to vector<64x128xbf16>
    %cst_13 = arith.constant dense<0.000000e+00> : vector<256x128xf32>
    %11 = tpu.matmul %8, %10, %cst_13 {dimension_numbers = #tpu.dot_dimension_numbers<[1], [0], [0], [1], [0, 0, 1, 1], [], []>} : vector<256x64xbf16>, vector<64x128xbf16>, vector<256x128xf32> -> vector<256x128xf32>
    %12 = arith.addf %6, %11 : vector<256x128xf32>
    %c0_14 = arith.constant 0 : index
    %c0_15 = arith.constant 0 : index
    %13 = vector.load %arg6[%c0_14, %c0_15] : memref<256x128xf32, #tpu.memory_space<vmem>>, vector<256x128xf32>
    tpu.vector_store %arg6[%c0_14, %c0_15], %12 {strides = array<i32>} : memref<256x128xf32, #tpu.memory_space<vmem>>, vector<256x128xf32>,
    %c0_16 = arith.constant 0 : index
    %c0_17 = arith.constant 0 : index
    %14 = vector.load %arg6[%c0_16, %c0_17] : memref<256x128xf32, #tpu.memory_space<vmem>>, vector<256x128xf32>
    %c0_18 = arith.constant 0 : index
    %c0_19 = arith.constant 0 : index
    %15 = vector.load %arg3[%c0_18, %c0_19] : memref<1x128xf32, #tpu.memory_space<vmem>>, vector<1x128xf32>
    %16 = vector.broadcast %15 : vector<1x128xf32> to vector<256x128xf32>
    %17 = arith.addf %14, %16 : vector<256x128xf32>
    %18 = arith.truncf %17 : vector<256x128xf32> to vector<256x128xbf16>
    %c0_20 = arith.constant 0 : index
    %c0_21 = arith.constant 0 : index
    %c0_22 = arith.constant 0 : index
    %19 = vector.load %arg4[%c0_20, %c0_21, %c0_22] : memref<1x256x128xbf16, #tpu.memory_space<vmem>>, vector<1x256x128xbf16>
    %20 = vector.shape_cast %19 : vector<1x256x128xbf16> to vector<256x128xbf16>
    %21 = vector.shape_cast %18 : vector<256x128xbf16> to vector<1x256x128xbf16>
    tpu.vector_store %arg4[%c0_20, %c0_21, %c0_22], %21 {strides = array<i32>} : memref<1x256x128xbf16, #tpu.memory_space<vmem>>, vector<1x256x128xbf16>,
    %cst_23 = arith.constant dense<0.000000e+00> : vector<128xf32>
    %22 = vector.multi_reduction <add>, %17, %cst_23 [0] : vector<256x128xf32> to vector<128xf32>
    %23 = vector.shape_cast %22 : vector<128xf32> to vector<1x128xf32>
    %c0_24 = arith.constant 0 : index
    %c0_25 = arith.constant 0 : index
    %c0_26 = arith.constant 0 : index
    %24 = vector.load %arg5[%c0_24, %c0_25, %c0_26] : memref<1x2x128xf32, #tpu.memory_space<vmem>>, vector<1x1x128xf32>
    %25 = vector.shape_cast %24 : vector<1x1x128xf32> to vector<1x128xf32>
    %26 = vector.shape_cast %23 : vector<1x128xf32> to vector<1x1x128xf32>
    tpu.vector_store %arg5[%c0_24, %c0_25, %c0_26], %26 {strides = array<i32>} : memref<1x2x128xf32, #tpu.memory_space<vmem>>, vector<1x1x128xf32>,
    %27 = arith.mulf %17, %17 : vector<256x128xf32>
    %cst_27 = arith.constant dense<0.000000e+00> : vector<128xf32>
    %28 = vector.multi_reduction <add>, %27, %cst_27 [0] : vector<256x128xf32> to vector<128xf32>
    %29 = vector.shape_cast %28 : vector<128xf32> to vector<1x128xf32>
    %c0_28 = arith.constant 0 : index
    %c1_29 = arith.constant 1 : index
    %c0_30 = arith.constant 0 : index
    %30 = vector.load %arg5[%c0_28, %c1_29, %c0_30] : memref<1x2x128xf32, #tpu.memory_space<vmem>>, vector<1x1x128xf32>
    %31 = vector.shape_cast %30 : vector<1x1x128xf32> to vector<1x128xf32>
    %32 = vector.shape_cast %29 : vector<1x128xf32> to vector<1x1x128xf32>
    tpu.vector_store %arg5[%c0_28, %c1_29, %c0_30], %32 {strides = array<i32>} : memref<1x2x128xf32, #tpu.memory_space<vmem>>, vector<1x1x128xf32>,
    return
  }
  func.func @transform_0(%arg0: i32) -> (i32, i32, i32) {
    %c0_i32 = arith.constant 0 : i32
    %c0_i32_0 = arith.constant 0 : i32
    %c0_i32_1 = arith.constant 0 : i32
    return %arg0, %c0_i32, %c0_i32_0 : i32, i32, i32
  }
  func.func @transform_1(%arg0: i32) -> (i32, i32, i32) {
    %c0_i32 = arith.constant 0 : i32
    %c0_i32_0 = arith.constant 0 : i32
    %c0_i32_1 = arith.constant 0 : i32
    %c0_i32_2 = arith.constant 0 : i32
    return %c0_i32, %c0_i32_0, %c0_i32_1 : i32, i32, i32
  }
  func.func @transform_2(%arg0: i32) -> (i32, i32) {
    %c0_i32 = arith.constant 0 : i32
    %c0_i32_0 = arith.constant 0 : i32
    %c0_i32_1 = arith.constant 0 : i32
    return %c0_i32, %c0_i32_0 : i32, i32
  }
  func.func @transform_3(%arg0: i32) -> (i32, i32, i32) {
    %c0_i32 = arith.constant 0 : i32
    %c0_i32_0 = arith.constant 0 : i32
    %c0_i32_1 = arith.constant 0 : i32
    return %arg0, %c0_i32, %c0_i32_0 : i32, i32, i32
  }
  func.func @transform_4(%arg0: i32) -> (i32, i32, i32) {
    %c0_i32 = arith.constant 0 : i32
    %c0_i32_0 = arith.constant 0 : i32
    %c0_i32_1 = arith.constant 0 : i32
    return %arg0, %c0_i32, %c0_i32_0 : i32, i32, i32
  }
}

module attributes {stable_mosaic.version = 11 : i64} {
  func.func @_conv_kernel(%arg0: i32, %arg1: memref<1x72x128xbf16, #tpu.memory_space<vmem>>, %arg2: memref<2x128x128xbf16, #tpu.memory_space<vmem>>, %arg3: memref<1x128xf32, #tpu.memory_space<vmem>>, %arg4: memref<1x64x128xbf16, #tpu.memory_space<vmem>>, %arg5: memref<1x2x128xf32, #tpu.memory_space<vmem>>, %arg6: memref<64x128xf32, #tpu.memory_space<vmem>>) attributes {dimension_semantics = [#tpu.dimension_semantics<parallel>], iteration_bounds = array<i64: 2>, scalar_prefetch = 0 : i64, scratch_operands = 1 : i64, tpu.core_type = #tpu.core_type<tc>, window_params = [{transform_indices = @transform_0, window_bounds = array<i64: 1, 72, 128>}, {pipeline_mode = #tpu.pipeline_mode<synchronous>, transform_indices = @transform_1, window_bounds = array<i64: 2, 128, 128>}, {pipeline_mode = #tpu.pipeline_mode<synchronous>, transform_indices = @transform_2, window_bounds = array<i64: 1, 128>}, {transform_indices = @transform_3, window_bounds = array<i64: 1, 64, 128>}, {transform_indices = @transform_4, window_bounds = array<i64: 1, 2, 128>}]} {
    %c0 = arith.constant 0 : index
    %c0_0 = arith.constant 0 : index
    %c0_1 = arith.constant 0 : index
    %0 = vector.load %arg1[%c0, %c0_0, %c0_1] : memref<1x72x128xbf16, #tpu.memory_space<vmem>>, vector<1x64x128xbf16>
    %1 = vector.shape_cast %0 : vector<1x64x128xbf16> to vector<64x128xbf16>
    %c0_2 = arith.constant 0 : index
    %c0_3 = arith.constant 0 : index
    %c0_4 = arith.constant 0 : index
    %2 = vector.load %arg2[%c0_2, %c0_3, %c0_4] : memref<2x128x128xbf16, #tpu.memory_space<vmem>>, vector<1x128x128xbf16>
    %3 = vector.shape_cast %2 : vector<1x128x128xbf16> to vector<128x128xbf16>
    %cst = arith.constant dense<0.000000e+00> : vector<64x128xf32>
    %4 = tpu.matmul %1, %3, %cst {dimension_numbers = #tpu.dot_dimension_numbers<[1], [0], [0], [1], [0, 0, 1, 1], [], []>} : vector<64x128xbf16>, vector<128x128xbf16>, vector<64x128xf32> -> vector<64x128xf32>
    %c0_5 = arith.constant 0 : index
    %c0_6 = arith.constant 0 : index
    %5 = vector.load %arg6[%c0_5, %c0_6] : memref<64x128xf32, #tpu.memory_space<vmem>>, vector<64x128xf32>
    tpu.vector_store %arg6[%c0_5, %c0_6], %4 {strides = array<i32>} : memref<64x128xf32, #tpu.memory_space<vmem>>, vector<64x128xf32>,
    %c0_7 = arith.constant 0 : index
    %c0_8 = arith.constant 0 : index
    %6 = vector.load %arg6[%c0_7, %c0_8] : memref<64x128xf32, #tpu.memory_space<vmem>>, vector<64x128xf32>
    %c0_9 = arith.constant 0 : index
    %c8 = arith.constant 8 : index
    %c0_10 = arith.constant 0 : index
    %7 = vector.load %arg1[%c0_9, %c8, %c0_10] : memref<1x72x128xbf16, #tpu.memory_space<vmem>>, vector<1x64x128xbf16>
    %8 = vector.shape_cast %7 : vector<1x64x128xbf16> to vector<64x128xbf16>
    %c1 = arith.constant 1 : index
    %c0_11 = arith.constant 0 : index
    %c0_12 = arith.constant 0 : index
    %9 = vector.load %arg2[%c1, %c0_11, %c0_12] : memref<2x128x128xbf16, #tpu.memory_space<vmem>>, vector<1x128x128xbf16>
    %10 = vector.shape_cast %9 : vector<1x128x128xbf16> to vector<128x128xbf16>
    %cst_13 = arith.constant dense<0.000000e+00> : vector<64x128xf32>
    %11 = tpu.matmul %8, %10, %cst_13 {dimension_numbers = #tpu.dot_dimension_numbers<[1], [0], [0], [1], [0, 0, 1, 1], [], []>} : vector<64x128xbf16>, vector<128x128xbf16>, vector<64x128xf32> -> vector<64x128xf32>
    %12 = arith.addf %6, %11 : vector<64x128xf32>
    %c0_14 = arith.constant 0 : index
    %c0_15 = arith.constant 0 : index
    %13 = vector.load %arg6[%c0_14, %c0_15] : memref<64x128xf32, #tpu.memory_space<vmem>>, vector<64x128xf32>
    tpu.vector_store %arg6[%c0_14, %c0_15], %12 {strides = array<i32>} : memref<64x128xf32, #tpu.memory_space<vmem>>, vector<64x128xf32>,
    %c0_16 = arith.constant 0 : index
    %c0_17 = arith.constant 0 : index
    %14 = vector.load %arg6[%c0_16, %c0_17] : memref<64x128xf32, #tpu.memory_space<vmem>>, vector<64x128xf32>
    %c0_18 = arith.constant 0 : index
    %c0_19 = arith.constant 0 : index
    %15 = vector.load %arg3[%c0_18, %c0_19] : memref<1x128xf32, #tpu.memory_space<vmem>>, vector<1x128xf32>
    %16 = vector.broadcast %15 : vector<1x128xf32> to vector<64x128xf32>
    %17 = arith.addf %14, %16 : vector<64x128xf32>
    %18 = arith.truncf %17 : vector<64x128xf32> to vector<64x128xbf16>
    %c0_20 = arith.constant 0 : index
    %c0_21 = arith.constant 0 : index
    %c0_22 = arith.constant 0 : index
    %19 = vector.load %arg4[%c0_20, %c0_21, %c0_22] : memref<1x64x128xbf16, #tpu.memory_space<vmem>>, vector<1x64x128xbf16>
    %20 = vector.shape_cast %19 : vector<1x64x128xbf16> to vector<64x128xbf16>
    %21 = vector.shape_cast %18 : vector<64x128xbf16> to vector<1x64x128xbf16>
    tpu.vector_store %arg4[%c0_20, %c0_21, %c0_22], %21 {strides = array<i32>} : memref<1x64x128xbf16, #tpu.memory_space<vmem>>, vector<1x64x128xbf16>,
    %cst_23 = arith.constant dense<0.000000e+00> : vector<128xf32>
    %22 = vector.multi_reduction <add>, %17, %cst_23 [0] : vector<64x128xf32> to vector<128xf32>
    %23 = vector.shape_cast %22 : vector<128xf32> to vector<1x128xf32>
    %c0_24 = arith.constant 0 : index
    %c0_25 = arith.constant 0 : index
    %c0_26 = arith.constant 0 : index
    %24 = vector.load %arg5[%c0_24, %c0_25, %c0_26] : memref<1x2x128xf32, #tpu.memory_space<vmem>>, vector<1x1x128xf32>
    %25 = vector.shape_cast %24 : vector<1x1x128xf32> to vector<1x128xf32>
    %26 = vector.shape_cast %23 : vector<1x128xf32> to vector<1x1x128xf32>
    tpu.vector_store %arg5[%c0_24, %c0_25, %c0_26], %26 {strides = array<i32>} : memref<1x2x128xf32, #tpu.memory_space<vmem>>, vector<1x1x128xf32>,
    %27 = arith.mulf %17, %17 : vector<64x128xf32>
    %cst_27 = arith.constant dense<0.000000e+00> : vector<128xf32>
    %28 = vector.multi_reduction <add>, %27, %cst_27 [0] : vector<64x128xf32> to vector<128xf32>
    %29 = vector.shape_cast %28 : vector<128xf32> to vector<1x128xf32>
    %c0_28 = arith.constant 0 : index
    %c1_29 = arith.constant 1 : index
    %c0_30 = arith.constant 0 : index
    %30 = vector.load %arg5[%c0_28, %c1_29, %c0_30] : memref<1x2x128xf32, #tpu.memory_space<vmem>>, vector<1x1x128xf32>
    %31 = vector.shape_cast %30 : vector<1x1x128xf32> to vector<1x128xf32>
    %32 = vector.shape_cast %29 : vector<1x128xf32> to vector<1x1x128xf32>
    tpu.vector_store %arg5[%c0_28, %c1_29, %c0_30], %32 {strides = array<i32>} : memref<1x2x128xf32, #tpu.memory_space<vmem>>, vector<1x1x128xf32>,
    return
  }
  func.func @transform_0(%arg0: i32) -> (i32, i32, i32) {
    %c0_i32 = arith.constant 0 : i32
    %c0_i32_0 = arith.constant 0 : i32
    %c0_i32_1 = arith.constant 0 : i32
    return %arg0, %c0_i32, %c0_i32_0 : i32, i32, i32
  }
  func.func @transform_1(%arg0: i32) -> (i32, i32, i32) {
    %c0_i32 = arith.constant 0 : i32
    %c0_i32_0 = arith.constant 0 : i32
    %c0_i32_1 = arith.constant 0 : i32
    %c0_i32_2 = arith.constant 0 : i32
    return %c0_i32, %c0_i32_0, %c0_i32_1 : i32, i32, i32
  }
  func.func @transform_2(%arg0: i32) -> (i32, i32) {
    %c0_i32 = arith.constant 0 : i32
    %c0_i32_0 = arith.constant 0 : i32
    %c0_i32_1 = arith.constant 0 : i32
    return %c0_i32, %c0_i32_0 : i32, i32
  }
  func.func @transform_3(%arg0: i32) -> (i32, i32, i32) {
    %c0_i32 = arith.constant 0 : i32
    %c0_i32_0 = arith.constant 0 : i32
    %c0_i32_1 = arith.constant 0 : i32
    return %arg0, %c0_i32, %c0_i32_0 : i32, i32, i32
  }
  func.func @transform_4(%arg0: i32) -> (i32, i32, i32) {
    %c0_i32 = arith.constant 0 : i32
    %c0_i32_0 = arith.constant 0 : i32
    %c0_i32_1 = arith.constant 0 : i32
    return %arg0, %c0_i32, %c0_i32_0 : i32, i32, i32
  }
}

module attributes {stable_mosaic.version = 11 : i64} {
  func.func @_conv_kernel(%arg0: i32, %arg1: memref<1x40x256xbf16, #tpu.memory_space<vmem>>, %arg2: memref<2x256x128xbf16, #tpu.memory_space<vmem>>, %arg3: memref<1x128xf32, #tpu.memory_space<vmem>>, %arg4: memref<1x32x128xbf16, #tpu.memory_space<vmem>>, %arg5: memref<1x2x128xf32, #tpu.memory_space<vmem>>, %arg6: memref<32x128xf32, #tpu.memory_space<vmem>>) attributes {dimension_semantics = [#tpu.dimension_semantics<parallel>], iteration_bounds = array<i64: 2>, scalar_prefetch = 0 : i64, scratch_operands = 1 : i64, tpu.core_type = #tpu.core_type<tc>, window_params = [{transform_indices = @transform_0, window_bounds = array<i64: 1, 40, 256>}, {pipeline_mode = #tpu.pipeline_mode<synchronous>, transform_indices = @transform_1, window_bounds = array<i64: 2, 256, 128>}, {pipeline_mode = #tpu.pipeline_mode<synchronous>, transform_indices = @transform_2, window_bounds = array<i64: 1, 128>}, {transform_indices = @transform_3, window_bounds = array<i64: 1, 32, 128>}, {transform_indices = @transform_4, window_bounds = array<i64: 1, 2, 128>}]} {
    %c0 = arith.constant 0 : index
    %c0_0 = arith.constant 0 : index
    %c0_1 = arith.constant 0 : index
    %0 = vector.load %arg1[%c0, %c0_0, %c0_1] : memref<1x40x256xbf16, #tpu.memory_space<vmem>>, vector<1x32x256xbf16>
    %1 = vector.shape_cast %0 : vector<1x32x256xbf16> to vector<32x256xbf16>
    %c0_2 = arith.constant 0 : index
    %c0_3 = arith.constant 0 : index
    %c0_4 = arith.constant 0 : index
    %2 = vector.load %arg2[%c0_2, %c0_3, %c0_4] : memref<2x256x128xbf16, #tpu.memory_space<vmem>>, vector<1x256x128xbf16>
    %3 = vector.shape_cast %2 : vector<1x256x128xbf16> to vector<256x128xbf16>
    %cst = arith.constant dense<0.000000e+00> : vector<32x128xf32>
    %4 = tpu.matmul %1, %3, %cst {dimension_numbers = #tpu.dot_dimension_numbers<[1], [0], [0], [1], [0, 0, 1, 1], [], []>} : vector<32x256xbf16>, vector<256x128xbf16>, vector<32x128xf32> -> vector<32x128xf32>
    %c0_5 = arith.constant 0 : index
    %c0_6 = arith.constant 0 : index
    %5 = vector.load %arg6[%c0_5, %c0_6] : memref<32x128xf32, #tpu.memory_space<vmem>>, vector<32x128xf32>
    tpu.vector_store %arg6[%c0_5, %c0_6], %4 {strides = array<i32>} : memref<32x128xf32, #tpu.memory_space<vmem>>, vector<32x128xf32>,
    %c0_7 = arith.constant 0 : index
    %c0_8 = arith.constant 0 : index
    %6 = vector.load %arg6[%c0_7, %c0_8] : memref<32x128xf32, #tpu.memory_space<vmem>>, vector<32x128xf32>
    %c0_9 = arith.constant 0 : index
    %c8 = arith.constant 8 : index
    %c0_10 = arith.constant 0 : index
    %7 = vector.load %arg1[%c0_9, %c8, %c0_10] : memref<1x40x256xbf16, #tpu.memory_space<vmem>>, vector<1x32x256xbf16>
    %8 = vector.shape_cast %7 : vector<1x32x256xbf16> to vector<32x256xbf16>
    %c1 = arith.constant 1 : index
    %c0_11 = arith.constant 0 : index
    %c0_12 = arith.constant 0 : index
    %9 = vector.load %arg2[%c1, %c0_11, %c0_12] : memref<2x256x128xbf16, #tpu.memory_space<vmem>>, vector<1x256x128xbf16>
    %10 = vector.shape_cast %9 : vector<1x256x128xbf16> to vector<256x128xbf16>
    %cst_13 = arith.constant dense<0.000000e+00> : vector<32x128xf32>
    %11 = tpu.matmul %8, %10, %cst_13 {dimension_numbers = #tpu.dot_dimension_numbers<[1], [0], [0], [1], [0, 0, 1, 1], [], []>} : vector<32x256xbf16>, vector<256x128xbf16>, vector<32x128xf32> -> vector<32x128xf32>
    %12 = arith.addf %6, %11 : vector<32x128xf32>
    %c0_14 = arith.constant 0 : index
    %c0_15 = arith.constant 0 : index
    %13 = vector.load %arg6[%c0_14, %c0_15] : memref<32x128xf32, #tpu.memory_space<vmem>>, vector<32x128xf32>
    tpu.vector_store %arg6[%c0_14, %c0_15], %12 {strides = array<i32>} : memref<32x128xf32, #tpu.memory_space<vmem>>, vector<32x128xf32>,
    %c0_16 = arith.constant 0 : index
    %c0_17 = arith.constant 0 : index
    %14 = vector.load %arg6[%c0_16, %c0_17] : memref<32x128xf32, #tpu.memory_space<vmem>>, vector<32x128xf32>
    %c0_18 = arith.constant 0 : index
    %c0_19 = arith.constant 0 : index
    %15 = vector.load %arg3[%c0_18, %c0_19] : memref<1x128xf32, #tpu.memory_space<vmem>>, vector<1x128xf32>
    %16 = vector.broadcast %15 : vector<1x128xf32> to vector<32x128xf32>
    %17 = arith.addf %14, %16 : vector<32x128xf32>
    %18 = arith.truncf %17 : vector<32x128xf32> to vector<32x128xbf16>
    %c0_20 = arith.constant 0 : index
    %c0_21 = arith.constant 0 : index
    %c0_22 = arith.constant 0 : index
    %19 = vector.load %arg4[%c0_20, %c0_21, %c0_22] : memref<1x32x128xbf16, #tpu.memory_space<vmem>>, vector<1x32x128xbf16>
    %20 = vector.shape_cast %19 : vector<1x32x128xbf16> to vector<32x128xbf16>
    %21 = vector.shape_cast %18 : vector<32x128xbf16> to vector<1x32x128xbf16>
    tpu.vector_store %arg4[%c0_20, %c0_21, %c0_22], %21 {strides = array<i32>} : memref<1x32x128xbf16, #tpu.memory_space<vmem>>, vector<1x32x128xbf16>,
    %22 = tpu.iota {dimensions = array<i32: 0>} : vector<32x1xi32>
    %c8_i32 = arith.constant 8 : i32
    %c0_i32 = arith.constant 0 : i32
    %23 = arith.cmpi eq, %c8_i32, %c0_i32 : i32
    %c1_i32 = arith.constant 1 : i32
    %24 = arith.select %23, %c1_i32, %c8_i32 : i32
    %25 = vector.broadcast %24 : i32 to vector<32x1xi32>
    %26 = arith.remsi %22, %25 : vector<32x1xi32>
    %c0_i32_23 = arith.constant 0 : i32
    %27 = vector.broadcast %c0_i32_23 : i32 to vector<32x1xi32>
    %28 = arith.cmpi ne, %26, %27 : vector<32x1xi32>
    %c0_i32_24 = arith.constant 0 : i32
    %29 = vector.broadcast %c0_i32_24 : i32 to vector<32x1xi32>
    %30 = arith.cmpi slt, %26, %29 : vector<32x1xi32>
    %c0_i32_25 = arith.constant 0 : i32
    %31 = arith.cmpi slt, %24, %c0_i32_25 : i32
    %32 = vector.broadcast %31 : i1 to vector<32x1xi1>
    %33 = vector.broadcast %32 : vector<32x1xi1> to vector<32x1xi1>
    %34 = arith.xori %30, %33 : vector<32x1xi1>
    %35 = arith.andi %34, %28 : vector<32x1xi1>
    %36 = vector.broadcast %24 : i32 to vector<32x1xi32>
    %37 = arith.addi %26, %36 : vector<32x1xi32>
    %38 = arith.select %35, %37, %26 : vector<32x1xi1>, vector<32x1xi32>
    %c4_i32 = arith.constant 4 : i32
    %39 = vector.broadcast %c4_i32 : i32 to vector<32x1xi32>
    %40 = arith.cmpi slt, %38, %39 : vector<32x1xi32>
    %cst_26 = arith.constant 0.000000e+00 : f32
    %41 = vector.shape_cast %40 : vector<32x1xi1> to vector<32x1xi1>
    %42 = vector.broadcast %41 : vector<32x1xi1> to vector<32x128xi1>
    %43 = vector.broadcast %cst_26 : f32 to vector<32x128xf32>
    %44 = arith.select %42, %17, %43 : vector<32x128xi1>, vector<32x128xf32>
    %cst_27 = arith.constant dense<0.000000e+00> : vector<128xf32>
    %45 = vector.multi_reduction <add>, %44, %cst_27 [0] : vector<32x128xf32> to vector<128xf32>
    %46 = vector.shape_cast %45 : vector<128xf32> to vector<1x128xf32>
    %c0_28 = arith.constant 0 : index
    %c0_29 = arith.constant 0 : index
    %c0_30 = arith.constant 0 : index
    %47 = vector.load %arg5[%c0_28, %c0_29, %c0_30] : memref<1x2x128xf32, #tpu.memory_space<vmem>>, vector<1x1x128xf32>
    %48 = vector.shape_cast %47 : vector<1x1x128xf32> to vector<1x128xf32>
    %49 = vector.shape_cast %46 : vector<1x128xf32> to vector<1x1x128xf32>
    tpu.vector_store %arg5[%c0_28, %c0_29, %c0_30], %49 {strides = array<i32>} : memref<1x2x128xf32, #tpu.memory_space<vmem>>, vector<1x1x128xf32>,
    %50 = arith.mulf %44, %44 : vector<32x128xf32>
    %cst_31 = arith.constant dense<0.000000e+00> : vector<128xf32>
    %51 = vector.multi_reduction <add>, %50, %cst_31 [0] : vector<32x128xf32> to vector<128xf32>
    %52 = vector.shape_cast %51 : vector<128xf32> to vector<1x128xf32>
    %c0_32 = arith.constant 0 : index
    %c1_33 = arith.constant 1 : index
    %c0_34 = arith.constant 0 : index
    %53 = vector.load %arg5[%c0_32, %c1_33, %c0_34] : memref<1x2x128xf32, #tpu.memory_space<vmem>>, vector<1x1x128xf32>
    %54 = vector.shape_cast %53 : vector<1x1x128xf32> to vector<1x128xf32>
    %55 = vector.shape_cast %52 : vector<1x128xf32> to vector<1x1x128xf32>
    tpu.vector_store %arg5[%c0_32, %c1_33, %c0_34], %55 {strides = array<i32>} : memref<1x2x128xf32, #tpu.memory_space<vmem>>, vector<1x1x128xf32>,
    return
  }
  func.func @transform_0(%arg0: i32) -> (i32, i32, i32) {
    %c0_i32 = arith.constant 0 : i32
    %c0_i32_0 = arith.constant 0 : i32
    %c0_i32_1 = arith.constant 0 : i32
    return %arg0, %c0_i32, %c0_i32_0 : i32, i32, i32
  }
  func.func @transform_1(%arg0: i32) -> (i32, i32, i32) {
    %c0_i32 = arith.constant 0 : i32
    %c0_i32_0 = arith.constant 0 : i32
    %c0_i32_1 = arith.constant 0 : i32
    %c0_i32_2 = arith.constant 0 : i32
    return %c0_i32, %c0_i32_0, %c0_i32_1 : i32, i32, i32
  }
  func.func @transform_2(%arg0: i32) -> (i32, i32) {
    %c0_i32 = arith.constant 0 : i32
    %c0_i32_0 = arith.constant 0 : i32
    %c0_i32_1 = arith.constant 0 : i32
    return %c0_i32, %c0_i32_0 : i32, i32
  }
  func.func @transform_3(%arg0: i32) -> (i32, i32, i32) {
    %c0_i32 = arith.constant 0 : i32
    %c0_i32_0 = arith.constant 0 : i32
    %c0_i32_1 = arith.constant 0 : i32
    return %arg0, %c0_i32, %c0_i32_0 : i32, i32, i32
  }
  func.func @transform_4(%arg0: i32) -> (i32, i32, i32) {
    %c0_i32 = arith.constant 0 : i32
    %c0_i32_0 = arith.constant 0 : i32
    %c0_i32_1 = arith.constant 0 : i32
    return %arg0, %c0_i32, %c0_i32_0 : i32, i32, i32
  }
}

module attributes {stable_mosaic.version = 11 : i64} {
  func.func @_conv_kernel(%arg0: i32, %arg1: memref<1x48x256xbf16, #tpu.memory_space<vmem>>, %arg2: memref<4x256x128xbf16, #tpu.memory_space<vmem>>, %arg3: memref<1x128xf32, #tpu.memory_space<vmem>>, %arg4: memref<1x24x128xbf16, #tpu.memory_space<vmem>>, %arg5: memref<1x2x128xf32, #tpu.memory_space<vmem>>, %arg6: memref<24x128xf32, #tpu.memory_space<vmem>>) attributes {dimension_semantics = [#tpu.dimension_semantics<parallel>], iteration_bounds = array<i64: 2>, scalar_prefetch = 0 : i64, scratch_operands = 1 : i64, tpu.core_type = #tpu.core_type<tc>, window_params = [{transform_indices = @transform_0, window_bounds = array<i64: 1, 48, 256>}, {pipeline_mode = #tpu.pipeline_mode<synchronous>, transform_indices = @transform_1, window_bounds = array<i64: 4, 256, 128>}, {pipeline_mode = #tpu.pipeline_mode<synchronous>, transform_indices = @transform_2, window_bounds = array<i64: 1, 128>}, {transform_indices = @transform_3, window_bounds = array<i64: 1, 24, 128>}, {transform_indices = @transform_4, window_bounds = array<i64: 1, 2, 128>}]} {
    %c0 = arith.constant 0 : index
    %c0_0 = arith.constant 0 : index
    %c0_1 = arith.constant 0 : index
    %0 = vector.load %arg1[%c0, %c0_0, %c0_1] : memref<1x48x256xbf16, #tpu.memory_space<vmem>>, vector<1x24x256xbf16>
    %1 = vector.shape_cast %0 : vector<1x24x256xbf16> to vector<24x256xbf16>
    %c0_2 = arith.constant 0 : index
    %c0_3 = arith.constant 0 : index
    %c0_4 = arith.constant 0 : index
    %2 = vector.load %arg2[%c0_2, %c0_3, %c0_4] : memref<4x256x128xbf16, #tpu.memory_space<vmem>>, vector<1x256x128xbf16>
    %3 = vector.shape_cast %2 : vector<1x256x128xbf16> to vector<256x128xbf16>
    %cst = arith.constant dense<0.000000e+00> : vector<24x128xf32>
    %4 = tpu.matmul %1, %3, %cst {dimension_numbers = #tpu.dot_dimension_numbers<[1], [0], [0], [1], [0, 0, 1, 1], [], []>} : vector<24x256xbf16>, vector<256x128xbf16>, vector<24x128xf32> -> vector<24x128xf32>
    %c0_5 = arith.constant 0 : index
    %c0_6 = arith.constant 0 : index
    %5 = vector.load %arg6[%c0_5, %c0_6] : memref<24x128xf32, #tpu.memory_space<vmem>>, vector<24x128xf32>
    tpu.vector_store %arg6[%c0_5, %c0_6], %4 {strides = array<i32>} : memref<24x128xf32, #tpu.memory_space<vmem>>, vector<24x128xf32>,
    %c0_7 = arith.constant 0 : index
    %c0_8 = arith.constant 0 : index
    %6 = vector.load %arg6[%c0_7, %c0_8] : memref<24x128xf32, #tpu.memory_space<vmem>>, vector<24x128xf32>
    %c0_9 = arith.constant 0 : index
    %c8 = arith.constant 8 : index
    %c0_10 = arith.constant 0 : index
    %7 = vector.load %arg1[%c0_9, %c8, %c0_10] : memref<1x48x256xbf16, #tpu.memory_space<vmem>>, vector<1x24x256xbf16>
    %8 = vector.shape_cast %7 : vector<1x24x256xbf16> to vector<24x256xbf16>
    %c1 = arith.constant 1 : index
    %c0_11 = arith.constant 0 : index
    %c0_12 = arith.constant 0 : index
    %9 = vector.load %arg2[%c1, %c0_11, %c0_12] : memref<4x256x128xbf16, #tpu.memory_space<vmem>>, vector<1x256x128xbf16>
    %10 = vector.shape_cast %9 : vector<1x256x128xbf16> to vector<256x128xbf16>
    %cst_13 = arith.constant dense<0.000000e+00> : vector<24x128xf32>
    %11 = tpu.matmul %8, %10, %cst_13 {dimension_numbers = #tpu.dot_dimension_numbers<[1], [0], [0], [1], [0, 0, 1, 1], [], []>} : vector<24x256xbf16>, vector<256x128xbf16>, vector<24x128xf32> -> vector<24x128xf32>
    %12 = arith.addf %6, %11 : vector<24x128xf32>
    %c0_14 = arith.constant 0 : index
    %c0_15 = arith.constant 0 : index
    %13 = vector.load %arg6[%c0_14, %c0_15] : memref<24x128xf32, #tpu.memory_space<vmem>>, vector<24x128xf32>
    tpu.vector_store %arg6[%c0_14, %c0_15], %12 {strides = array<i32>} : memref<24x128xf32, #tpu.memory_space<vmem>>, vector<24x128xf32>,
    %c0_16 = arith.constant 0 : index
    %c0_17 = arith.constant 0 : index
    %14 = vector.load %arg6[%c0_16, %c0_17] : memref<24x128xf32, #tpu.memory_space<vmem>>, vector<24x128xf32>
    %c0_18 = arith.constant 0 : index
    %c16 = arith.constant 16 : index
    %c0_19 = arith.constant 0 : index
    %15 = vector.load %arg1[%c0_18, %c16, %c0_19] : memref<1x48x256xbf16, #tpu.memory_space<vmem>>, vector<1x24x256xbf16>
    %16 = vector.shape_cast %15 : vector<1x24x256xbf16> to vector<24x256xbf16>
    %c2 = arith.constant 2 : index
    %c0_20 = arith.constant 0 : index
    %c0_21 = arith.constant 0 : index
    %17 = vector.load %arg2[%c2, %c0_20, %c0_21] : memref<4x256x128xbf16, #tpu.memory_space<vmem>>, vector<1x256x128xbf16>
    %18 = vector.shape_cast %17 : vector<1x256x128xbf16> to vector<256x128xbf16>
    %cst_22 = arith.constant dense<0.000000e+00> : vector<24x128xf32>
    %19 = tpu.matmul %16, %18, %cst_22 {dimension_numbers = #tpu.dot_dimension_numbers<[1], [0], [0], [1], [0, 0, 1, 1], [], []>} : vector<24x256xbf16>, vector<256x128xbf16>, vector<24x128xf32> -> vector<24x128xf32>
    %20 = arith.addf %14, %19 : vector<24x128xf32>
    %c0_23 = arith.constant 0 : index
    %c0_24 = arith.constant 0 : index
    %21 = vector.load %arg6[%c0_23, %c0_24] : memref<24x128xf32, #tpu.memory_space<vmem>>, vector<24x128xf32>
    tpu.vector_store %arg6[%c0_23, %c0_24], %20 {strides = array<i32>} : memref<24x128xf32, #tpu.memory_space<vmem>>, vector<24x128xf32>,
    %c0_25 = arith.constant 0 : index
    %c0_26 = arith.constant 0 : index
    %22 = vector.load %arg6[%c0_25, %c0_26] : memref<24x128xf32, #tpu.memory_space<vmem>>, vector<24x128xf32>
    %c0_27 = arith.constant 0 : index
    %c24 = arith.constant 24 : index
    %c0_28 = arith.constant 0 : index
    %23 = vector.load %arg1[%c0_27, %c24, %c0_28] : memref<1x48x256xbf16, #tpu.memory_space<vmem>>, vector<1x24x256xbf16>
    %24 = vector.shape_cast %23 : vector<1x24x256xbf16> to vector<24x256xbf16>
    %c3 = arith.constant 3 : index
    %c0_29 = arith.constant 0 : index
    %c0_30 = arith.constant 0 : index
    %25 = vector.load %arg2[%c3, %c0_29, %c0_30] : memref<4x256x128xbf16, #tpu.memory_space<vmem>>, vector<1x256x128xbf16>
    %26 = vector.shape_cast %25 : vector<1x256x128xbf16> to vector<256x128xbf16>
    %cst_31 = arith.constant dense<0.000000e+00> : vector<24x128xf32>
    %27 = tpu.matmul %24, %26, %cst_31 {dimension_numbers = #tpu.dot_dimension_numbers<[1], [0], [0], [1], [0, 0, 1, 1], [], []>} : vector<24x256xbf16>, vector<256x128xbf16>, vector<24x128xf32> -> vector<24x128xf32>
    %28 = arith.addf %22, %27 : vector<24x128xf32>
    %c0_32 = arith.constant 0 : index
    %c0_33 = arith.constant 0 : index
    %29 = vector.load %arg6[%c0_32, %c0_33] : memref<24x128xf32, #tpu.memory_space<vmem>>, vector<24x128xf32>
    tpu.vector_store %arg6[%c0_32, %c0_33], %28 {strides = array<i32>} : memref<24x128xf32, #tpu.memory_space<vmem>>, vector<24x128xf32>,
    %c0_34 = arith.constant 0 : index
    %c0_35 = arith.constant 0 : index
    %30 = vector.load %arg6[%c0_34, %c0_35] : memref<24x128xf32, #tpu.memory_space<vmem>>, vector<24x128xf32>
    %c0_36 = arith.constant 0 : index
    %c0_37 = arith.constant 0 : index
    %31 = vector.load %arg3[%c0_36, %c0_37] : memref<1x128xf32, #tpu.memory_space<vmem>>, vector<1x128xf32>
    %32 = vector.broadcast %31 : vector<1x128xf32> to vector<24x128xf32>
    %33 = arith.addf %30, %32 : vector<24x128xf32>
    %34 = arith.truncf %33 : vector<24x128xf32> to vector<24x128xbf16>
    %c0_38 = arith.constant 0 : index
    %c0_39 = arith.constant 0 : index
    %c0_40 = arith.constant 0 : index
    %35 = vector.load %arg4[%c0_38, %c0_39, %c0_40] : memref<1x24x128xbf16, #tpu.memory_space<vmem>>, vector<1x24x128xbf16>
    %36 = vector.shape_cast %35 : vector<1x24x128xbf16> to vector<24x128xbf16>
    %37 = vector.shape_cast %34 : vector<24x128xbf16> to vector<1x24x128xbf16>
    tpu.vector_store %arg4[%c0_38, %c0_39, %c0_40], %37 {strides = array<i32>} : memref<1x24x128xbf16, #tpu.memory_space<vmem>>, vector<1x24x128xbf16>,
    %38 = tpu.iota {dimensions = array<i32: 0>} : vector<24x1xi32>
    %c8_i32 = arith.constant 8 : i32
    %c0_i32 = arith.constant 0 : i32
    %39 = arith.cmpi eq, %c8_i32, %c0_i32 : i32
    %c1_i32 = arith.constant 1 : i32
    %40 = arith.select %39, %c1_i32, %c8_i32 : i32
    %41 = vector.broadcast %40 : i32 to vector<24x1xi32>
    %42 = arith.remsi %38, %41 : vector<24x1xi32>
    %c0_i32_41 = arith.constant 0 : i32
    %43 = vector.broadcast %c0_i32_41 : i32 to vector<24x1xi32>
    %44 = arith.cmpi ne, %42, %43 : vector<24x1xi32>
    %c0_i32_42 = arith.constant 0 : i32
    %45 = vector.broadcast %c0_i32_42 : i32 to vector<24x1xi32>
    %46 = arith.cmpi slt, %42, %45 : vector<24x1xi32>
    %c0_i32_43 = arith.constant 0 : i32
    %47 = arith.cmpi slt, %40, %c0_i32_43 : i32
    %48 = vector.broadcast %47 : i1 to vector<24x1xi1>
    %49 = vector.broadcast %48 : vector<24x1xi1> to vector<24x1xi1>
    %50 = arith.xori %46, %49 : vector<24x1xi1>
    %51 = arith.andi %50, %44 : vector<24x1xi1>
    %52 = vector.broadcast %40 : i32 to vector<24x1xi32>
    %53 = arith.addi %42, %52 : vector<24x1xi32>
    %54 = arith.select %51, %53, %42 : vector<24x1xi1>, vector<24x1xi32>
    %c3_i32 = arith.constant 3 : i32
    %55 = vector.broadcast %c3_i32 : i32 to vector<24x1xi32>
    %56 = arith.cmpi slt, %54, %55 : vector<24x1xi32>
    %cst_44 = arith.constant 0.000000e+00 : f32
    %57 = vector.shape_cast %56 : vector<24x1xi1> to vector<24x1xi1>
    %58 = vector.broadcast %57 : vector<24x1xi1> to vector<24x128xi1>
    %59 = vector.broadcast %cst_44 : f32 to vector<24x128xf32>
    %60 = arith.select %58, %33, %59 : vector<24x128xi1>, vector<24x128xf32>
    %cst_45 = arith.constant dense<0.000000e+00> : vector<128xf32>
    %61 = vector.multi_reduction <add>, %60, %cst_45 [0] : vector<24x128xf32> to vector<128xf32>
    %62 = vector.shape_cast %61 : vector<128xf32> to vector<1x128xf32>
    %c0_46 = arith.constant 0 : index
    %c0_47 = arith.constant 0 : index
    %c0_48 = arith.constant 0 : index
    %63 = vector.load %arg5[%c0_46, %c0_47, %c0_48] : memref<1x2x128xf32, #tpu.memory_space<vmem>>, vector<1x1x128xf32>
    %64 = vector.shape_cast %63 : vector<1x1x128xf32> to vector<1x128xf32>
    %65 = vector.shape_cast %62 : vector<1x128xf32> to vector<1x1x128xf32>
    tpu.vector_store %arg5[%c0_46, %c0_47, %c0_48], %65 {strides = array<i32>} : memref<1x2x128xf32, #tpu.memory_space<vmem>>, vector<1x1x128xf32>,
    %66 = arith.mulf %60, %60 : vector<24x128xf32>
    %cst_49 = arith.constant dense<0.000000e+00> : vector<128xf32>
    %67 = vector.multi_reduction <add>, %66, %cst_49 [0] : vector<24x128xf32> to vector<128xf32>
    %68 = vector.shape_cast %67 : vector<128xf32> to vector<1x128xf32>
    %c0_50 = arith.constant 0 : index
    %c1_51 = arith.constant 1 : index
    %c0_52 = arith.constant 0 : index
    %69 = vector.load %arg5[%c0_50, %c1_51, %c0_52] : memref<1x2x128xf32, #tpu.memory_space<vmem>>, vector<1x1x128xf32>
    %70 = vector.shape_cast %69 : vector<1x1x128xf32> to vector<1x128xf32>
    %71 = vector.shape_cast %68 : vector<1x128xf32> to vector<1x1x128xf32>
    tpu.vector_store %arg5[%c0_50, %c1_51, %c0_52], %71 {strides = array<i32>} : memref<1x2x128xf32, #tpu.memory_space<vmem>>, vector<1x1x128xf32>,
    return
  }
  func.func @transform_0(%arg0: i32) -> (i32, i32, i32) {
    %c0_i32 = arith.constant 0 : i32
    %c0_i32_0 = arith.constant 0 : i32
    %c0_i32_1 = arith.constant 0 : i32
    return %arg0, %c0_i32, %c0_i32_0 : i32, i32, i32
  }
  func.func @transform_1(%arg0: i32) -> (i32, i32, i32) {
    %c0_i32 = arith.constant 0 : i32
    %c0_i32_0 = arith.constant 0 : i32
    %c0_i32_1 = arith.constant 0 : i32
    %c0_i32_2 = arith.constant 0 : i32
    return %c0_i32, %c0_i32_0, %c0_i32_1 : i32, i32, i32
  }
  func.func @transform_2(%arg0: i32) -> (i32, i32) {
    %c0_i32 = arith.constant 0 : i32
    %c0_i32_0 = arith.constant 0 : i32
    %c0_i32_1 = arith.constant 0 : i32
    return %c0_i32, %c0_i32_0 : i32, i32
  }
  func.func @transform_3(%arg0: i32) -> (i32, i32, i32) {
    %c0_i32 = arith.constant 0 : i32
    %c0_i32_0 = arith.constant 0 : i32
    %c0_i32_1 = arith.constant 0 : i32
    return %arg0, %c0_i32, %c0_i32_0 : i32, i32, i32
  }
  func.func @transform_4(%arg0: i32) -> (i32, i32, i32) {
    %c0_i32 = arith.constant 0 : i32
    %c0_i32_0 = arith.constant 0 : i32
    %c0_i32_1 = arith.constant 0 : i32
    return %arg0, %c0_i32, %c0_i32_0 : i32, i32, i32
  }
}

module attributes {stable_mosaic.version = 11 : i64} {
  func.func @_conv_kernel(%arg0: i32, %arg1: memref<1x40x256xbf16, #tpu.memory_space<vmem>>, %arg2: memref<4x256x128xbf16, #tpu.memory_space<vmem>>, %arg3: memref<1x128xf32, #tpu.memory_space<vmem>>, %arg4: memref<1x16x128xf32, #tpu.memory_space<vmem>>, %arg5: memref<16x128xf32, #tpu.memory_space<vmem>>) attributes {dimension_semantics = [#tpu.dimension_semantics<parallel>], iteration_bounds = array<i64: 2>, scalar_prefetch = 0 : i64, scratch_operands = 1 : i64, tpu.core_type = #tpu.core_type<tc>, window_params = [{transform_indices = @transform_0, window_bounds = array<i64: 1, 40, 256>}, {pipeline_mode = #tpu.pipeline_mode<synchronous>, transform_indices = @transform_1, window_bounds = array<i64: 4, 256, 128>}, {pipeline_mode = #tpu.pipeline_mode<synchronous>, transform_indices = @transform_2, window_bounds = array<i64: 1, 128>}, {transform_indices = @transform_3, window_bounds = array<i64: 1, 16, 128>}]} {
    %c0 = arith.constant 0 : index
    %c0_0 = arith.constant 0 : index
    %c0_1 = arith.constant 0 : index
    %0 = vector.load %arg1[%c0, %c0_0, %c0_1] : memref<1x40x256xbf16, #tpu.memory_space<vmem>>, vector<1x16x256xbf16>
    %1 = vector.shape_cast %0 : vector<1x16x256xbf16> to vector<16x256xbf16>
    %c0_2 = arith.constant 0 : index
    %c0_3 = arith.constant 0 : index
    %c0_4 = arith.constant 0 : index
    %2 = vector.load %arg2[%c0_2, %c0_3, %c0_4] : memref<4x256x128xbf16, #tpu.memory_space<vmem>>, vector<1x256x128xbf16>
    %3 = vector.shape_cast %2 : vector<1x256x128xbf16> to vector<256x128xbf16>
    %cst = arith.constant dense<0.000000e+00> : vector<16x128xf32>
    %4 = tpu.matmul %1, %3, %cst {dimension_numbers = #tpu.dot_dimension_numbers<[1], [0], [0], [1], [0, 0, 1, 1], [], []>} : vector<16x256xbf16>, vector<256x128xbf16>, vector<16x128xf32> -> vector<16x128xf32>
    %c0_5 = arith.constant 0 : index
    %c0_6 = arith.constant 0 : index
    %5 = vector.load %arg5[%c0_5, %c0_6] : memref<16x128xf32, #tpu.memory_space<vmem>>, vector<16x128xf32>
    tpu.vector_store %arg5[%c0_5, %c0_6], %4 {strides = array<i32>} : memref<16x128xf32, #tpu.memory_space<vmem>>, vector<16x128xf32>,
    %c0_7 = arith.constant 0 : index
    %c0_8 = arith.constant 0 : index
    %6 = vector.load %arg5[%c0_7, %c0_8] : memref<16x128xf32, #tpu.memory_space<vmem>>, vector<16x128xf32>
    %c0_9 = arith.constant 0 : index
    %c8 = arith.constant 8 : index
    %c0_10 = arith.constant 0 : index
    %7 = vector.load %arg1[%c0_9, %c8, %c0_10] : memref<1x40x256xbf16, #tpu.memory_space<vmem>>, vector<1x16x256xbf16>
    %8 = vector.shape_cast %7 : vector<1x16x256xbf16> to vector<16x256xbf16>
    %c1 = arith.constant 1 : index
    %c0_11 = arith.constant 0 : index
    %c0_12 = arith.constant 0 : index
    %9 = vector.load %arg2[%c1, %c0_11, %c0_12] : memref<4x256x128xbf16, #tpu.memory_space<vmem>>, vector<1x256x128xbf16>
    %10 = vector.shape_cast %9 : vector<1x256x128xbf16> to vector<256x128xbf16>
    %cst_13 = arith.constant dense<0.000000e+00> : vector<16x128xf32>
    %11 = tpu.matmul %8, %10, %cst_13 {dimension_numbers = #tpu.dot_dimension_numbers<[1], [0], [0], [1], [0, 0, 1, 1], [], []>} : vector<16x256xbf16>, vector<256x128xbf16>, vector<16x128xf32> -> vector<16x128xf32>
    %12 = arith.addf %6, %11 : vector<16x128xf32>
    %c0_14 = arith.constant 0 : index
    %c0_15 = arith.constant 0 : index
    %13 = vector.load %arg5[%c0_14, %c0_15] : memref<16x128xf32, #tpu.memory_space<vmem>>, vector<16x128xf32>
    tpu.vector_store %arg5[%c0_14, %c0_15], %12 {strides = array<i32>} : memref<16x128xf32, #tpu.memory_space<vmem>>, vector<16x128xf32>,
    %c0_16 = arith.constant 0 : index
    %c0_17 = arith.constant 0 : index
    %14 = vector.load %arg5[%c0_16, %c0_17] : memref<16x128xf32, #tpu.memory_space<vmem>>, vector<16x128xf32>
    %c0_18 = arith.constant 0 : index
    %c16 = arith.constant 16 : index
    %c0_19 = arith.constant 0 : index
    %15 = vector.load %arg1[%c0_18, %c16, %c0_19] : memref<1x40x256xbf16, #tpu.memory_space<vmem>>, vector<1x16x256xbf16>
    %16 = vector.shape_cast %15 : vector<1x16x256xbf16> to vector<16x256xbf16>
    %c2 = arith.constant 2 : index
    %c0_20 = arith.constant 0 : index
    %c0_21 = arith.constant 0 : index
    %17 = vector.load %arg2[%c2, %c0_20, %c0_21] : memref<4x256x128xbf16, #tpu.memory_space<vmem>>, vector<1x256x128xbf16>
    %18 = vector.shape_cast %17 : vector<1x256x128xbf16> to vector<256x128xbf16>
    %cst_22 = arith.constant dense<0.000000e+00> : vector<16x128xf32>
    %19 = tpu.matmul %16, %18, %cst_22 {dimension_numbers = #tpu.dot_dimension_numbers<[1], [0], [0], [1], [0, 0, 1, 1], [], []>} : vector<16x256xbf16>, vector<256x128xbf16>, vector<16x128xf32> -> vector<16x128xf32>
    %20 = arith.addf %14, %19 : vector<16x128xf32>
    %c0_23 = arith.constant 0 : index
    %c0_24 = arith.constant 0 : index
    %21 = vector.load %arg5[%c0_23, %c0_24] : memref<16x128xf32, #tpu.memory_space<vmem>>, vector<16x128xf32>
    tpu.vector_store %arg5[%c0_23, %c0_24], %20 {strides = array<i32>} : memref<16x128xf32, #tpu.memory_space<vmem>>, vector<16x128xf32>,
    %c0_25 = arith.constant 0 : index
    %c0_26 = arith.constant 0 : index
    %22 = vector.load %arg5[%c0_25, %c0_26] : memref<16x128xf32, #tpu.memory_space<vmem>>, vector<16x128xf32>
    %c0_27 = arith.constant 0 : index
    %c24 = arith.constant 24 : index
    %c0_28 = arith.constant 0 : index
    %23 = vector.load %arg1[%c0_27, %c24, %c0_28] : memref<1x40x256xbf16, #tpu.memory_space<vmem>>, vector<1x16x256xbf16>
    %24 = vector.shape_cast %23 : vector<1x16x256xbf16> to vector<16x256xbf16>
    %c3 = arith.constant 3 : index
    %c0_29 = arith.constant 0 : index
    %c0_30 = arith.constant 0 : index
    %25 = vector.load %arg2[%c3, %c0_29, %c0_30] : memref<4x256x128xbf16, #tpu.memory_space<vmem>>, vector<1x256x128xbf16>
    %26 = vector.shape_cast %25 : vector<1x256x128xbf16> to vector<256x128xbf16>
    %cst_31 = arith.constant dense<0.000000e+00> : vector<16x128xf32>
    %27 = tpu.matmul %24, %26, %cst_31 {dimension_numbers = #tpu.dot_dimension_numbers<[1], [0], [0], [1], [0, 0, 1, 1], [], []>} : vector<16x256xbf16>, vector<256x128xbf16>, vector<16x128xf32> -> vector<16x128xf32>
    %28 = arith.addf %22, %27 : vector<16x128xf32>
    %c0_32 = arith.constant 0 : index
    %c0_33 = arith.constant 0 : index
    %29 = vector.load %arg5[%c0_32, %c0_33] : memref<16x128xf32, #tpu.memory_space<vmem>>, vector<16x128xf32>
    tpu.vector_store %arg5[%c0_32, %c0_33], %28 {strides = array<i32>} : memref<16x128xf32, #tpu.memory_space<vmem>>, vector<16x128xf32>,
    %c0_34 = arith.constant 0 : index
    %c0_35 = arith.constant 0 : index
    %30 = vector.load %arg5[%c0_34, %c0_35] : memref<16x128xf32, #tpu.memory_space<vmem>>, vector<16x128xf32>
    %c0_36 = arith.constant 0 : index
    %c0_37 = arith.constant 0 : index
    %31 = vector.load %arg3[%c0_36, %c0_37] : memref<1x128xf32, #tpu.memory_space<vmem>>, vector<1x128xf32>
    %32 = vector.broadcast %31 : vector<1x128xf32> to vector<16x128xf32>
    %33 = arith.addf %30, %32 : vector<16x128xf32>
    %34 = arith.negf %33 : vector<16x128xf32>
    %35 = math.exp %34 : vector<16x128xf32>
    %cst_38 = arith.constant 1.000000e+00 : f32
    %36 = vector.broadcast %cst_38 : f32 to vector<16x128xf32>
    %37 = arith.addf %36, %35 : vector<16x128xf32>
    %38 = arith.divf %36, %37 : vector<16x128xf32>
    %c0_39 = arith.constant 0 : index
    %c0_40 = arith.constant 0 : index
    %c0_41 = arith.constant 0 : index
    %39 = vector.load %arg4[%c0_39, %c0_40, %c0_41] : memref<1x16x128xf32, #tpu.memory_space<vmem>>, vector<1x16x128xf32>
    %40 = vector.shape_cast %39 : vector<1x16x128xf32> to vector<16x128xf32>
    %41 = vector.shape_cast %38 : vector<16x128xf32> to vector<1x16x128xf32>
    tpu.vector_store %arg4[%c0_39, %c0_40, %c0_41], %41 {strides = array<i32>} : memref<1x16x128xf32, #tpu.memory_space<vmem>>, vector<1x16x128xf32>,
    return
  }
  func.func @transform_0(%arg0: i32) -> (i32, i32, i32) {
    %c0_i32 = arith.constant 0 : i32
    %c0_i32_0 = arith.constant 0 : i32
    %c0_i32_1 = arith.constant 0 : i32
    return %arg0, %c0_i32, %c0_i32_0 : i32, i32, i32
  }
  func.func @transform_1(%arg0: i32) -> (i32, i32, i32) {
    %c0_i32 = arith.constant 0 : i32
    %c0_i32_0 = arith.constant 0 : i32
    %c0_i32_1 = arith.constant 0 : i32
    %c0_i32_2 = arith.constant 0 : i32
    return %c0_i32, %c0_i32_0, %c0_i32_1 : i32, i32, i32
  }
  func.func @transform_2(%arg0: i32) -> (i32, i32) {
    %c0_i32 = arith.constant 0 : i32
    %c0_i32_0 = arith.constant 0 : i32
    %c0_i32_1 = arith.constant 0 : i32
    return %c0_i32, %c0_i32_0 : i32, i32
  }
  func.func @transform_3(%arg0: i32) -> (i32, i32, i32) {
    %c0_i32 = arith.constant 0 : i32
    %c0_i32_0 = arith.constant 0 : i32
    %c0_i32_1 = arith.constant 0 : i32
    return %arg0, %c0_i32, %c0_i32_0 : i32, i32, i32
  }
}

</mosaic_0001>

<bundles_post_ra>
// kernel: _patchgan_forward.6
= control target key start
LH: loop header
LB: loop body
LE: loop exit
PB: predicated region body
PF: predicated region fallthrough
CT: control target
= control target key end

     0   :  { %s4871_s12 = smov 0   ;;  %s5377_s0 = inlined_call_operand.vmem [shape: bf16[2,1056,48], index: 0, kind: input, shape index: {}]   ;;  %s5378_s1 = inlined_call_operand.vmem [shape: bf16[2,48,128], index: 1, kind: input, shape index: {}]   ;;  %s5379_s2 = inlined_call_operand.vmem [shape: f32[1,128], index: 2, kind: input, shape index: {}]   ;;  %s5380_s3 = inlined_call_operand.vmem [shape: bf16[2,1024,128], index: 3, kind: output, shape index: {}]  }
   0x1 LB: > { %s3627_s13 = sadd.s32 4294967295, %s4849_s12   ;;  %p3631_p0 = scmp.ge.s32.totalorder %s4849_s12, 1  ;;  %s4849_s12 = sphi %s4871_s12, %s13_s12  }
   0x2   : > { %p137_p1 = scmp.lt.s32.totalorder %s4849_s12, 3 }
   0x4   : > { %p138_p2 = pnand %p3631_p0, %p137_p1 }
   0x5   : > { %p161_p3 = scmp.lt.s32.totalorder (!%p138_p2), %s3627_s13, 1 }
   0x6   : > { %141 = sbr.rel (%p138_p2) target bundleno = 670 (0x29e), region = 32 }
   0xb   : > { %v4374_v0 = vld [vmem:[%s5378_s1 + $0x10] sm:$0xff]  ;;  %v4441_v1 = vld [vmem:[%s5378_s1 + $0x28] sm:$0xff]  ;;  %s5382_s13 = smov (!%p161_p3, %s3627_s13), 1  ;;  %v4440_v3 = vld [vmem:[%s5378_s1 + $0x20] sm:$0xff]  ;;  %vm644_vm0 = vcmask 392192  }
   0xc   : > { %842 = vmatpush.bf16.msra.mxu0 %v4374_v0  ;;  %4825 = vmatpush.bf16.msra.mxu2 %v4374_v0  ;;  %v4373_v2 = vld [vmem:[%s5378_s1 + $0x8] sm:$0xff]  ;;  %s4831_s22 = smul.u32 528, %s5382_s13  ;;  %v4372_v4 = vld [vmem:[%s5378_s1] sm:$0xff]  ;;  %v4439_v5 = vld [vmem:[%s5378_s1 + $0x18] sm:$0xff]  ;;  %s4307_s5 = sshll.u32 %s5382_s13, 9 }
   0xd   : > { %2092 = vmatpush.bf16.msra.mxu1 %v4441_v1  ;;  %4828 = vmatpush.bf16.msra.mxu3 %v4441_v1  ;;  %v4978_v45 = vld [vmem:[%s5379_s2] ss:$0 sm:$0xff]  ;;  %s4991_s8 = scalar_lea.vmem %s5380_s3, %s4307_s5 }
   0xe   : > { %s4900_s27 = scalar_lea.vmem %s5377_s0, %s4831_s22 }
   0xf   : > { %v4308_v6 = vld [vmem:[%s4900_s27] sm:$0xff]  ;;  %v4375_v8 = vld [vmem:[%s4900_s27 + $0x10] sm:$0xff]  ;;  %v4309_v10 = vld [vmem:[%s4900_s27 + $0x8] sm:$0xff] }
  0x10   : > { %843 = vmatpush.bf16.msra.mxu0 %v4373_v2  ;;  %4826 = vmatpush.bf16.msra.mxu2 %v4373_v2  ;;  %v4340_v7 = vld [vmem:[%s4900_s27 + $0x100] sm:$0xff]  ;;  %v4407_v9 = vld [vmem:[%s4900_s27 + $0x110] sm:$0xff]  ;;  %v4341_v11 = vld [vmem:[%s4900_s27 + $0x108] sm:$0xff] }
  0x11   : > { %2093 = vmatpush.bf16.msra.mxu1 %v4440_v3  ;;  %4829 = vmatpush.bf16.msra.mxu3 %v4440_v3  ;;  %v4376_v12 = vld [vmem:[%s4900_s27 + $0x18] sm:$0xff]  ;;  %v4310_v14 = vld [vmem:[%s4900_s27 + $0x10] sm:$0xff]  ;;  %v4377_v16 = vld [vmem:[%s4900_s27 + $0x20] sm:$0xff] }
  0x12   : > { %v4408_v13 = vld [vmem:[%s4900_s27 + $0x118] sm:$0xff]  ;;  %v4342_v15 = vld [vmem:[%s4900_s27 + $0x110] sm:$0xff]  ;;  %v4409_v17 = vld [vmem:[%s4900_s27 + $0x120] sm:$0xff] }
  0x13   : > { %v4311_v18 = vld [vmem:[%s4900_s27 + $0x18] sm:$0xff]  ;;  %v4378_v20 = vld [vmem:[%s4900_s27 + $0x28] sm:$0xff]  ;;  %v4312_v22 = vld [vmem:[%s4900_s27 + $0x20] sm:$0xff] }
  0x14   : > { %844 = vmatpush.bf16.msra.mxu0 %v4372_v4  ;;  %4827 = vmatpush.bf16.msra.mxu2 %v4372_v4  ;;  %v4343_v19 = vld [vmem:[%s4900_s27 + $0x118] sm:$0xff]  ;;  %v4410_v21 = vld [vmem:[%s4900_s27 + $0x128] sm:$0xff]  ;;  %v4344_v23 = vld [vmem:[%s4900_s27 + $0x120] sm:$0xff] }
  0x15   : > { %2094 = vmatpush.bf16.msra.mxu1 %v4439_v5  ;;  %4830 = vmatpush.bf16.msra.mxu3 %v4439_v5  ;;  %v4379_v24 = vld [vmem:[%s4900_s27 + $0x30] sm:$0xff]  ;;  %v4313_v26 = vld [vmem:[%s4900_s27 + $0x28] sm:$0xff]  ;;  %v4380_v28 = vld [vmem:[%s4900_s27 + $0x38] sm:$0xff] }
  0x16   : > { %v4411_v25 = vld [vmem:[%s4900_s27 + $0x130] sm:$0xff]  ;;  %v4345_v27 = vld [vmem:[%s4900_s27 + $0x128] sm:$0xff]  ;;  %v4412_v29 = vld [vmem:[%s4900_s27 + $0x138] sm:$0xff] }
  0x17   : > { %3903 = vmatmul.msk.bf16.vlgmr.msra.gmra.mxu0 %vm644_vm0, %v4308_v6  ;;  %3935 = vmatmul.msk.bf16.vlgmr.msra.gmra.mxu2 %vm644_vm0, %v4340_v7  ;;  %v4314_v30 = vld [vmem:[%s4900_s27 + $0x30] sm:$0xff]  ;;  %v4381_v32 = vld [vmem:[%s4900_s27 + $0x40] sm:$0xff]  ;;  %v4315_v34 = vld [vmem:[%s4900_s27 + $0x38] sm:$0xff] }
  0x18   : > { %4241 = vmatmul.msk.bf16.vlgmr.msra.gmra.mxu1 %vm644_vm0, %v4375_v8  ;;  %4273 = vmatmul.msk.bf16.vlgmr.msra.gmra.mxu3 %vm644_vm0, %v4407_v9  ;;  %v4346_v31 = vld [vmem:[%s4900_s27 + $0x130] sm:$0xff]  ;;  %v4413_v33 = vld [vmem:[%s4900_s27 + $0x140] sm:$0xff]  ;;  %v4347_v35 = vld [vmem:[%s4900_s27 + $0x138] sm:$0xff] }
  0x19   : > { %v4382_v36 = vld [vmem:[%s4900_s27 + $0x48] sm:$0xff]  ;;  %v4316_v38 = vld [vmem:[%s4900_s27 + $0x40] sm:$0xff]  ;;  %v4383_v41 = vld [vmem:[%s4900_s27 + $0x50] sm:$0xff] }
  0x1a   : > { %v4414_v37 = vld [vmem:[%s4900_s27 + $0x148] sm:$0xff]  ;;  %v4348_v39 = vld [vmem:[%s4900_s27 + $0x140] sm:$0xff]  ;;  %v4415_v42 = vld [vmem:[%s4900_s27 + $0x150] sm:$0xff] }
  0x1b   : > { %v4317_v59 = vld [vmem:[%s4900_s27 + $0x48] sm:$0xff]  ;;  %v4384_v1 = vld [vmem:[%s4900_s27 + $0x58] sm:$0xff] }
  0x1c   : > { %v4349_v60 = vld [vmem:[%s4900_s27 + $0x148] sm:$0xff]  ;;  %v4416_v2 = vld [vmem:[%s4900_s27 + $0x158] sm:$0xff] }
  0x27   : > { %3904 = vmatmul.msk.bf16.gmra.mxu0 %vm644_vm0, %v4309_v10  ;;  %3936 = vmatmul.msk.bf16.gmra.mxu2 %vm644_vm0, %v4341_v11 }
  0x28   : > { %4242 = vmatmul.msk.bf16.gmra.mxu1 %vm644_vm0, %v4376_v12  ;;  %4274 = vmatmul.msk.bf16.gmra.mxu3 %vm644_vm0, %v4408_v13 }
  0x37   : > { %3905 = vmatmul.msk.bf16.gmra.mxu0 %vm644_vm0, %v4310_v14  ;;  %3937 = vmatmul.msk.bf16.gmra.mxu2 %vm644_vm0, %v4342_v15 }
  0x38   : > { %4243 = vmatmul.msk.bf16.gmra.mxu1 %vm644_vm0, %v4377_v16  ;;  %4275 = vmatmul.msk.bf16.gmra.mxu3 %vm644_vm0, %v4409_v17 }
  0x47   : > { %3906 = vmatmul.msk.bf16.gmra.mxu0 %vm644_vm0, %v4311_v18  ;;  %3938 = vmatmul.msk.bf16.gmra.mxu2 %vm644_vm0, %v4343_v19 }
  0x48   : > { %4244 = vmatmul.msk.bf16.gmra.mxu1 %vm644_vm0, %v4378_v20  ;;  %4276 = vmatmul.msk.bf16.gmra.mxu3 %vm644_vm0, %v4410_v21 }
  0x57   : > { %3907 = vmatmul.msk.bf16.gmra.mxu0 %vm644_vm0, %v4312_v22  ;;  %3939 = vmatmul.msk.bf16.gmra.mxu2 %vm644_vm0, %v4344_v23 }
  0x58   : > { %4245 = vmatmul.msk.bf16.gmra.mxu1 %vm644_vm0, %v4379_v24  ;;  %4277 = vmatmul.msk.bf16.gmra.mxu3 %vm644_vm0, %v4411_v25  ;;  %v4318_v25 = vld [vmem:[%s4900_s27 + $0x50] sm:$0xff] }
  0x67   : > { %3908 = vmatmul.msk.bf16.gmra.mxu0 %vm644_vm0, %v4313_v26  ;;  %3940 = vmatmul.msk.bf16.gmra.mxu2 %vm644_vm0, %v4345_v27  ;;  %v4350_v26 = vld [vmem:[%s4900_s27 + $0x150] sm:$0xff] }
  0x68   : > { %4246 = vmatmul.msk.bf16.gmra.mxu1 %vm644_vm0, %v4380_v28  ;;  %4278 = vmatmul.msk.bf16.gmra.mxu3 %vm644_vm0, %v4412_v29 }
  0x77   : > { %3909 = vmatmul.msk.bf16.gmra.mxu0 %vm644_vm0, %v4314_v30  ;;  %3941 = vmatmul.msk.bf16.gmra.mxu2 %vm644_vm0, %v4346_v31  ;;  %v4385_v31 = vld [vmem:[%s4900_s27 + $0x60] sm:$0xff] }
  0x78   : > { %4247 = vmatmul.msk.bf16.gmra.mxu1 %vm644_vm0, %v4381_v32  ;;  %4279 = vmatmul.msk.bf16.gmra.mxu3 %vm644_vm0, %v4413_v33  ;;  %v4417_v32 = vld [vmem:[%s4900_s27 + $0x160] sm:$0xff] }
  0x87   : > { %3910 = vmatmul.msk.bf16.gmra.mxu0 %vm644_vm0, %v4315_v34  ;;  %3942 = vmatmul.msk.bf16.gmra.mxu2 %vm644_vm0, %v4347_v35 }
  0x88   : > { %4248 = vmatmul.msk.bf16.gmra.mxu1 %vm644_vm0, %v4382_v36  ;;  %4280 = vmatmul.msk.bf16.gmra.mxu3 %vm644_vm0, %v4414_v37 }
  0x94   : > { %v846_v40 = vpop.f32.mrf.mxu0 }
  0x95   : > { %v2096_v43 = vpop.f32.mrf.mxu1 }
  0x96   : > { %v2416_v44 = vadd.f32 %v2096_v43, %v846_v40 }
  0x97   : > { %3911 = vmatmul.msk.bf16.gmra.mxu0 %vm644_vm0, %v4316_v38  ;;  %3943 = vmatmul.msk.bf16.gmra.mxu2 %vm644_vm0, %v4348_v39 }
  0x98   : > { %4249 = vmatmul.msk.bf16.gmra.mxu1 %vm644_vm0, %v4383_v41  ;;  %4281 = vmatmul.msk.bf16.gmra.mxu3 %vm644_vm0, %v4415_v42  ;;  %v2804_v48 = vadd.f32 %v4978_v45, %v2416_v44 }
  0x9a   : > { %v1006_v46 = vpop.f32.mrf.mxu2  ;;  %v3060_v53 = vmul.f32 0.2, %v2804_v48  ;;  %vm2932_vm1 = vcmp.ge.f32.partialorder %v2804_v48, 0.0 }
  0x9b   : > { %v2256_v47 = vpop.f32.mrf.mxu3 }
  0x9c   : > { %v848_v49 = vpop.f32.mrf.mxu0  ;;  %v2480_v51 = vadd.f32 %v2256_v47, %v1006_v46  ;;  %v3188_v61 = vsel %vm2932_vm1, %v2804_v48, %v3060_v53 }
  0x9d   : > { %v2098_v50 = vpop.f32.mrf.mxu1 }
  0x9e   : > { %v2417_v52 = vadd.f32 %v2098_v50, %v848_v49  ;;  %v2868_v55 = vadd.f32 %v4978_v45, %v2480_v51 }
  0xa0   : > { %v2805_v54 = vadd.f32 %v4978_v45, %v2417_v52  ;;  %v3124_v5 = vmul.f32 0.2, %v2868_v55  ;;  %vm2996_vm3 = vcmp.ge.f32.partialorder %v2868_v55, 0.0 }
  0xa2   : > { %vm2933_vm2 = vcmp.ge.f32.partialorder %v2805_v54, 0.0  ;;  %v3061_v56 = vmul.f32 0.2, %v2805_v54  ;;  %v1008_v57 = vpop.f32.mrf.mxu2  ;;  %v3252_v9 = vsel %vm2996_vm3, %v2868_v55, %v3124_v5 }
  0xa3   : > { %v2258_v58 = vpop.f32.mrf.mxu3 }
  0xa4   : > { %v3189_v62 = vsel %vm2933_vm2, %v2805_v54, %v3061_v56  ;;  %v2481_v63 = vadd.f32 %v2258_v58, %v1008_v57  ;;  %v851_v0 = vpop.f32.mrf.mxu0  ;;  %v4319_v56 = vld [vmem:[%s4900_s27 + $0x58] sm:$0xff] }
  0xa5   : > { %v4445_v3 = vpack.c.bf16 %v3189_v62, %v3188_v61  ;;  %v2101_v4 = vpop.f32.mrf.mxu1  ;;  %v4351_v57 = vld [vmem:[%s4900_s27 + $0x158] sm:$0xff]  ;;  %v4386_v62 = vld [vmem:[%s4900_s27 + $0x68] sm:$0xff] }
  0xa6   : > { %v2869_v6 = vadd.f32 %v4978_v45, %v2481_v63  ;;  %v2418_v8 = vadd.f32 %v2101_v4, %v851_v0  ;;  %v4418_v63 = vld [vmem:[%s4900_s27 + $0x168] sm:$0xff] }
  0xa7   : > { %4446 = vst [vmem:[%s4991_s8] sm:$0xff] %v4445_v3   ;;  %3912 = vmatmul.msk.bf16.gmra.mxu0 %vm644_vm0, %v4317_v59  ;;  %3944 = vmatmul.msk.bf16.gmra.mxu2 %vm644_vm0, %v4349_v60 }
  0xa8   : > { %vm2997_vm4 = vcmp.ge.f32.partialorder %v2869_v6, 0.0  ;;  %v3125_v7 = vmul.f32 0.2, %v2869_v6  ;;  %4250 = vmatmul.msk.bf16.gmra.mxu1 %vm644_vm0, %v4384_v1  ;;  %4282 = vmatmul.msk.bf16.gmra.mxu3 %vm644_vm0, %v4416_v2  ;;  %v2806_v14 = vadd.f32 %v4978_v45, %v2418_v8 }
  0xaa   : > { %v3253_v10 = vsel %vm2997_vm4, %v2869_v6, %v3125_v7  ;;  %v1011_v11 = vpop.f32.mrf.mxu2  ;;  %v3062_v19 = vmul.f32 0.2, %v2806_v14  ;;  %vm2934_vm5 = vcmp.ge.f32.partialorder %v2806_v14, 0.0 }
  0xab   : > { %v4605_v12 = vpack.c.bf16 %v3253_v10, %v3252_v9  ;;  %v2261_v13 = vpop.f32.mrf.mxu3 }
  0xac   : > { %v853_v15 = vpop.f32.mrf.mxu0  ;;  %v2482_v17 = vadd.f32 %v2261_v13, %v1011_v11  ;;  %v3190_v27 = vsel %vm2934_vm5, %v2806_v14, %v3062_v19 }
  0xad   : > { %4793 = vst [vmem:[%s4991_s8 + $0x100] sm:$0xff] %v4605_v12   ;;  %v2103_v16 = vpop.f32.mrf.mxu1 }
  0xae   : > { %v2419_v18 = vadd.f32 %v2103_v16, %v853_v15  ;;  %v2870_v21 = vadd.f32 %v4978_v45, %v2482_v17 }
  0xb0   : > { %v2807_v20 = vadd.f32 %v4978_v45, %v2419_v18  ;;  %v3126_v35 = vmul.f32 0.2, %v2870_v21  ;;  %vm2998_vm7 = vcmp.ge.f32.partialorder %v2870_v21, 0.0 }
  0xb2   : > { %vm2935_vm6 = vcmp.ge.f32.partialorder %v2807_v20, 0.0  ;;  %v3063_v22 = vmul.f32 0.2, %v2807_v20  ;;  %v1013_v23 = vpop.f32.mrf.mxu2  ;;  %v3254_v39 = vsel %vm2998_vm7, %v2870_v21, %v3126_v35 }
  0xb3   : > { %v2263_v24 = vpop.f32.mrf.mxu3 }
  0xb4   : > { %v3191_v28 = vsel %vm2935_vm6, %v2807_v20, %v3063_v22  ;;  %v2483_v29 = vadd.f32 %v2263_v24, %v1013_v23  ;;  %v856_v30 = vpop.f32.mrf.mxu0  ;;  %v4320_v22 = vld [vmem:[%s4900_s27 + $0x60] sm:$0xff] }
  0xb5   : > { %v4450_v33 = vpack.c.bf16 %v3191_v28, %v3190_v27  ;;  %v2106_v34 = vpop.f32.mrf.mxu1  ;;  %v4352_v23 = vld [vmem:[%s4900_s27 + $0x160] sm:$0xff]  ;;  %v4387_v28 = vld [vmem:[%s4900_s27 + $0x70] sm:$0xff] }
  0xb6   : > { %v2871_v36 = vadd.f32 %v4978_v45, %v2483_v29  ;;  %v2420_v38 = vadd.f32 %v2106_v34, %v856_v30  ;;  %v4419_v29 = vld [vmem:[%s4900_s27 + $0x170] sm:$0xff] }
  0xb7   : > { %4762 = vst [vmem:[%s4991_s8 + $0x8] sm:$0xff] %v4450_v33   ;;  %3913 = vmatmul.msk.bf16.gmra.mxu0 %vm644_vm0, %v4318_v25  ;;  %3945 = vmatmul.msk.bf16.gmra.mxu2 %vm644_vm0, %v4350_v26 }
  0xb8   : > { %vm2999_vm8 = vcmp.ge.f32.partialorder %v2871_v36, 0.0  ;;  %v3127_v37 = vmul.f32 0.2, %v2871_v36  ;;  %4251 = vmatmul.msk.bf16.gmra.mxu1 %vm644_vm0, %v4385_v31  ;;  %4283 = vmatmul.msk.bf16.gmra.mxu3 %vm644_vm0, %v4417_v32  ;;  %v2808_v44 = vadd.f32 %v4978_v45, %v2420_v38 }
  0xba   : > { %v3255_v40 = vsel %vm2999_vm8, %v2871_v36, %v3127_v37  ;;  %v1016_v41 = vpop.f32.mrf.mxu2  ;;  %v3064_v50 = vmul.f32 0.2, %v2808_v44  ;;  %vm2936_vm9 = vcmp.ge.f32.partialorder %v2808_v44, 0.0 }
  0xbb   : > { %v4610_v42 = vpack.c.bf16 %v3255_v40, %v3254_v39  ;;  %v2266_v43 = vpop.f32.mrf.mxu3 }
  0xbc   : > { %v858_v46 = vpop.f32.mrf.mxu0  ;;  %v2484_v48 = vadd.f32 %v2266_v43, %v1016_v41  ;;  %v3192_v58 = vsel %vm2936_vm9, %v2808_v44, %v3064_v50 }
  0xbd   : > { %4794 = vst [vmem:[%s4991_s8 + $0x108] sm:$0xff] %v4610_v42   ;;  %v2108_v47 = vpop.f32.mrf.mxu1 }
  0xbe   : > { %v2421_v49 = vadd.f32 %v2108_v47, %v858_v46  ;;  %v2872_v52 = vadd.f32 %v4978_v45, %v2484_v48 }
  0xc0   : > { %v2809_v51 = vadd.f32 %v4978_v45, %v2421_v49  ;;  %v3128_v2 = vmul.f32 0.2, %v2872_v52  ;;  %vm3000_vm11 = vcmp.ge.f32.partialorder %v2872_v52, 0.0 }
  0xc2   : > { %vm2937_vm10 = vcmp.ge.f32.partialorder %v2809_v51, 0.0  ;;  %v3065_v53 = vmul.f32 0.2, %v2809_v51  ;;  %v1018_v54 = vpop.f32.mrf.mxu2  ;;  %v3256_v6 = vsel %vm3000_vm11, %v2872_v52, %v3128_v2 }
  0xc3   : > { %v2268_v55 = vpop.f32.mrf.mxu3 }
  0xc4   : > { %v3193_v59 = vsel %vm2937_vm10, %v2809_v51, %v3065_v53  ;;  %v2485_v60 = vadd.f32 %v2268_v55, %v1018_v54  ;;  %v861_v61 = vpop.f32.mrf.mxu0  ;;  %v4321_v53 = vld [vmem:[%s4900_s27 + $0x68] sm:$0xff] }
  0xc5   : > { %v4455_v0 = vpack.c.bf16 %v3193_v59, %v3192_v58  ;;  %v2111_v1 = vpop.f32.mrf.mxu1  ;;  %v4353_v54 = vld [vmem:[%s4900_s27 + $0x168] sm:$0xff]  ;;  %v4388_v59 = vld [vmem:[%s4900_s27 + $0x78] sm:$0xff] }
  0xc6   : > { %v2873_v3 = vadd.f32 %v4978_v45, %v2485_v60  ;;  %v2422_v5 = vadd.f32 %v2111_v1, %v861_v61  ;;  %v4420_v60 = vld [vmem:[%s4900_s27 + $0x178] sm:$0xff] }
  0xc7   : > { %4763 = vst [vmem:[%s4991_s8 + $0x10] sm:$0xff] %v4455_v0   ;;  %3914 = vmatmul.msk.bf16.gmra.mxu0 %vm644_vm0, %v4319_v56  ;;  %3946 = vmatmul.msk.bf16.gmra.mxu2 %vm644_vm0, %v4351_v57 }
  0xc8   : > { %vm3001_vm12 = vcmp.ge.f32.partialorder %v2873_v3, 0.0  ;;  %v3129_v4 = vmul.f32 0.2, %v2873_v3  ;;  %4252 = vmatmul.msk.bf16.gmra.mxu1 %vm644_vm0, %v4386_v62  ;;  %4284 = vmatmul.msk.bf16.gmra.mxu3 %vm644_vm0, %v4418_v63  ;;  %v2810_v11 = vadd.f32 %v4978_v45, %v2422_v5 }
  0xca   : > { %v3257_v7 = vsel %vm3001_vm12, %v2873_v3, %v3129_v4  ;;  %v1021_v8 = vpop.f32.mrf.mxu2  ;;  %v3066_v16 = vmul.f32 0.2, %v2810_v11  ;;  %vm2938_vm13 = vcmp.ge.f32.partialorder %v2810_v11, 0.0 }
  0xcb   : > { %v4615_v9 = vpack.c.bf16 %v3257_v7, %v3256_v6  ;;  %v2271_v10 = vpop.f32.mrf.mxu3 }
  0xcc   : > { %v863_v12 = vpop.f32.mrf.mxu0  ;;  %v2486_v14 = vadd.f32 %v2271_v10, %v1021_v8  ;;  %v3194_v24 = vsel %vm2938_vm13, %v2810_v11, %v3066_v16 }
  0xcd   : > { %4795 = vst [vmem:[%s4991_s8 + $0x110] sm:$0xff] %v4615_v9   ;;  %v2113_v13 = vpop.f32.mrf.mxu1 }
  0xce   : > { %v2423_v15 = vadd.f32 %v2113_v13, %v863_v12  ;;  %v2874_v18 = vadd.f32 %v4978_v45, %v2486_v14 }
  0xd0   : > { %v2811_v17 = vadd.f32 %v4978_v45, %v2423_v15  ;;  %v3130_v32 = vmul.f32 0.2, %v2874_v18  ;;  %vm3002_vm15 = vcmp.ge.f32.partialorder %v2874_v18, 0.0 }
  0xd2   : > { %vm2939_vm14 = vcmp.ge.f32.partialorder %v2811_v17, 0.0  ;;  %v3067_v19 = vmul.f32 0.2, %v2811_v17  ;;  %v1023_v20 = vpop.f32.mrf.mxu2  ;;  %v3258_v36 = vsel %vm3002_vm15, %v2874_v18, %v3130_v32 }
  0xd3   : > { %v2273_v21 = vpop.f32.mrf.mxu3 }
  0xd4   : > { %v3195_v25 = vsel %vm2939_vm14, %v2811_v17, %v3067_v19  ;;  %v2487_v26 = vadd.f32 %v2273_v21, %v1023_v20  ;;  %v866_v27 = vpop.f32.mrf.mxu0  ;;  %v4322_v19 = vld [vmem:[%s4900_s27 + $0x70] sm:$0xff] }
  0xd5   : > { %v4460_v30 = vpack.c.bf16 %v3195_v25, %v3194_v24  ;;  %v2116_v31 = vpop.f32.mrf.mxu1  ;;  %v4354_v20 = vld [vmem:[%s4900_s27 + $0x170] sm:$0xff]  ;;  %v4389_v25 = vld [vmem:[%s4900_s27 + $0x80] sm:$0xff] }
  0xd6   : > { %v2875_v33 = vadd.f32 %v4978_v45, %v2487_v26  ;;  %v2424_v35 = vadd.f32 %v2116_v31, %v866_v27  ;;  %v4421_v26 = vld [vmem:[%s4900_s27 + $0x180] sm:$0xff] }
  0xd7   : > { %4764 = vst [vmem:[%s4991_s8 + $0x18] sm:$0xff] %v4460_v30   ;;  %3915 = vmatmul.msk.bf16.gmra.mxu0 %vm644_vm0, %v4320_v22  ;;  %3947 = vmatmul.msk.bf16.gmra.mxu2 %vm644_vm0, %v4352_v23 }
  0xd8   : > { %vm3003_vm1 = vcmp.ge.f32.partialorder %v2875_v33, 0.0  ;;  %v3131_v34 = vmul.f32 0.2, %v2875_v33  ;;  %4253 = vmatmul.msk.bf16.gmra.mxu1 %vm644_vm0, %v4387_v28  ;;  %4285 = vmatmul.msk.bf16.gmra.mxu3 %vm644_vm0, %v4419_v29  ;;  %v2812_v41 = vadd.f32 %v4978_v45, %v2424_v35 }
  0xda   : > { %v3259_v37 = vsel %vm3003_vm1, %v2875_v33, %v3131_v34  ;;  %v1026_v38 = vpop.f32.mrf.mxu2  ;;  %v3068_v47 = vmul.f32 0.2, %v2812_v41  ;;  %vm2940_vm2 = vcmp.ge.f32.partialorder %v2812_v41, 0.0 }
  0xdb   : > { %v4620_v39 = vpack.c.bf16 %v3259_v37, %v3258_v36  ;;  %v2276_v40 = vpop.f32.mrf.mxu3 }
  0xdc   : > { %v868_v42 = vpop.f32.mrf.mxu0  ;;  %v2488_v44 = vadd.f32 %v2276_v40, %v1026_v38  ;;  %v3196_v55 = vsel %vm2940_vm2, %v2812_v41, %v3068_v47 }
  0xdd   : > { %4796 = vst [vmem:[%s4991_s8 + $0x118] sm:$0xff] %v4620_v39   ;;  %v2118_v43 = vpop.f32.mrf.mxu1 }
  0xde   : > { %v2425_v46 = vadd.f32 %v2118_v43, %v868_v42  ;;  %v2876_v49 = vadd.f32 %v4978_v45, %v2488_v44 }
  0xe0   : > { %v2813_v48 = vadd.f32 %v4978_v45, %v2425_v46  ;;  %v3132_v63 = vmul.f32 0.2, %v2876_v49  ;;  %vm3004_vm4 = vcmp.ge.f32.partialorder %v2876_v49, 0.0 }
  0xe2   : > { %vm2941_vm3 = vcmp.ge.f32.partialorder %v2813_v48, 0.0  ;;  %v3069_v50 = vmul.f32 0.2, %v2813_v48  ;;  %v1028_v51 = vpop.f32.mrf.mxu2  ;;  %v3260_v3 = vsel %vm3004_vm4, %v2876_v49, %v3132_v63 }
  0xe3   : > { %v2278_v52 = vpop.f32.mrf.mxu3 }
  0xe4   : > { %v3197_v56 = vsel %vm2941_vm3, %v2813_v48, %v3069_v50  ;;  %v2489_v57 = vadd.f32 %v2278_v52, %v1028_v51  ;;  %v871_v58 = vpop.f32.mrf.mxu0  ;;  %v4323_v50 = vld [vmem:[%s4900_s27 + $0x78] sm:$0xff] }
  0xe5   : > { %v4465_v61 = vpack.c.bf16 %v3197_v56, %v3196_v55  ;;  %v2121_v62 = vpop.f32.mrf.mxu1  ;;  %v4355_v51 = vld [vmem:[%s4900_s27 + $0x178] sm:$0xff]  ;;  %v4390_v56 = vld [vmem:[%s4900_s27 + $0x88] sm:$0xff] }
  0xe6   : > { %v2877_v0 = vadd.f32 %v4978_v45, %v2489_v57  ;;  %v2426_v2 = vadd.f32 %v2121_v62, %v871_v58  ;;  %v4422_v57 = vld [vmem:[%s4900_s27 + $0x188] sm:$0xff] }
  0xe7   : > { %4765 = vst [vmem:[%s4991_s8 + $0x20] sm:$0xff] %v4465_v61   ;;  %3916 = vmatmul.msk.bf16.gmra.mxu0 %vm644_vm0, %v4321_v53  ;;  %3948 = vmatmul.msk.bf16.gmra.mxu2 %vm644_vm0, %v4353_v54 }
  0xe8   : > { %vm3005_vm5 = vcmp.ge.f32.partialorder %v2877_v0, 0.0  ;;  %v3133_v1 = vmul.f32 0.2, %v2877_v0  ;;  %4254 = vmatmul.msk.bf16.gmra.mxu1 %vm644_vm0, %v4388_v59  ;;  %4286 = vmatmul.msk.bf16.gmra.mxu3 %vm644_vm0, %v4420_v60  ;;  %v2814_v8 = vadd.f32 %v4978_v45, %v2426_v2 }
  0xea   : > { %v3261_v4 = vsel %vm3005_vm5, %v2877_v0, %v3133_v1  ;;  %v1031_v5 = vpop.f32.mrf.mxu2  ;;  %v3070_v13 = vmul.f32 0.2, %v2814_v8  ;;  %vm2942_vm6 = vcmp.ge.f32.partialorder %v2814_v8, 0.0 }
  0xeb   : > { %v4625_v6 = vpack.c.bf16 %v3261_v4, %v3260_v3  ;;  %v2281_v7 = vpop.f32.mrf.mxu3 }
  0xec   : > { %v873_v9 = vpop.f32.mrf.mxu0  ;;  %v2490_v11 = vadd.f32 %v2281_v7, %v1031_v5  ;;  %v3198_v21 = vsel %vm2942_vm6, %v2814_v8, %v3070_v13 }
  0xed   : > { %4797 = vst [vmem:[%s4991_s8 + $0x120] sm:$0xff] %v4625_v6   ;;  %v2123_v10 = vpop.f32.mrf.mxu1 }
  0xee   : > { %v2427_v12 = vadd.f32 %v2123_v10, %v873_v9  ;;  %v2878_v15 = vadd.f32 %v4978_v45, %v2490_v11 }
  0xf0   : > { %v2815_v14 = vadd.f32 %v4978_v45, %v2427_v12  ;;  %v3134_v29 = vmul.f32 0.2, %v2878_v15  ;;  %vm3006_vm8 = vcmp.ge.f32.partialorder %v2878_v15, 0.0 }
  0xf2   : > { %vm2943_vm7 = vcmp.ge.f32.partialorder %v2815_v14, 0.0  ;;  %v3071_v16 = vmul.f32 0.2, %v2815_v14  ;;  %v1033_v17 = vpop.f32.mrf.mxu2  ;;  %v3262_v33 = vsel %vm3006_vm8, %v2878_v15, %v3134_v29 }
  0xf3   : > { %v2283_v18 = vpop.f32.mrf.mxu3 }
  0xf4   : > { %v3199_v22 = vsel %vm2943_vm7, %v2815_v14, %v3071_v16  ;;  %v2491_v23 = vadd.f32 %v2283_v18, %v1033_v17  ;;  %v876_v24 = vpop.f32.mrf.mxu0  ;;  %v4324_v16 = vld [vmem:[%s4900_s27 + $0x80] sm:$0xff] }
  0xf5   : > { %v4470_v27 = vpack.c.bf16 %v3199_v22, %v3198_v21  ;;  %v2126_v28 = vpop.f32.mrf.mxu1  ;;  %v4356_v17 = vld [vmem:[%s4900_s27 + $0x180] sm:$0xff]  ;;  %v4391_v22 = vld [vmem:[%s4900_s27 + $0x90] sm:$0xff] }
  0xf6   : > { %v2879_v30 = vadd.f32 %v4978_v45, %v2491_v23  ;;  %v2428_v32 = vadd.f32 %v2126_v28, %v876_v24  ;;  %v4423_v23 = vld [vmem:[%s4900_s27 + $0x190] sm:$0xff] }
  0xf7   : > { %4766 = vst [vmem:[%s4991_s8 + $0x28] sm:$0xff] %v4470_v27   ;;  %3917 = vmatmul.msk.bf16.gmra.mxu0 %vm644_vm0, %v4322_v19  ;;  %3949 = vmatmul.msk.bf16.gmra.mxu2 %vm644_vm0, %v4354_v20 }
  0xf8   : > { %vm3007_vm9 = vcmp.ge.f32.partialorder %v2879_v30, 0.0  ;;  %v3135_v31 = vmul.f32 0.2, %v2879_v30  ;;  %4255 = vmatmul.msk.bf16.gmra.mxu1 %vm644_vm0, %v4389_v25  ;;  %4287 = vmatmul.msk.bf16.gmra.mxu3 %vm644_vm0, %v4421_v26  ;;  %v2816_v38 = vadd.f32 %v4978_v45, %v2428_v32 }
  0xfa   : > { %v3263_v34 = vsel %vm3007_vm9, %v2879_v30, %v3135_v31  ;;  %v1036_v35 = vpop.f32.mrf.mxu2  ;;  %v3072_v43 = vmul.f32 0.2, %v2816_v38  ;;  %vm2944_vm10 = vcmp.ge.f32.partialorder %v2816_v38, 0.0 }
  0xfb   : > { %v4630_v36 = vpack.c.bf16 %v3263_v34, %v3262_v33  ;;  %v2286_v37 = vpop.f32.mrf.mxu3 }
  0xfc   : > { %v878_v39 = vpop.f32.mrf.mxu0  ;;  %v2492_v41 = vadd.f32 %v2286_v37, %v1036_v35  ;;  %v3200_v52 = vsel %vm2944_vm10, %v2816_v38, %v3072_v43 }
  0xfd   : > { %4798 = vst [vmem:[%s4991_s8 + $0x128] sm:$0xff] %v4630_v36   ;;  %v2128_v40 = vpop.f32.mrf.mxu1 }
  0xfe   : > { %v2429_v42 = vadd.f32 %v2128_v40, %v878_v39  ;;  %v2880_v46 = vadd.f32 %v4978_v45, %v2492_v41 }
 0x100   : > { %v2817_v44 = vadd.f32 %v4978_v45, %v2429_v42  ;;  %v3136_v60 = vmul.f32 0.2, %v2880_v46  ;;  %vm3008_vm12 = vcmp.ge.f32.partialorder %v2880_v46, 0.0 }
 0x102   : > { %vm2945_vm11 = vcmp.ge.f32.partialorder %v2817_v44, 0.0  ;;  %v3073_v47 = vmul.f32 0.2, %v2817_v44  ;;  %v1038_v48 = vpop.f32.mrf.mxu2  ;;  %v3264_v0 = vsel %vm3008_vm12, %v2880_v46, %v3136_v60 }
 0x103   : > { %v2288_v49 = vpop.f32.mrf.mxu3 }
 0x104   : > { %v3201_v53 = vsel %vm2945_vm11, %v2817_v44, %v3073_v47  ;;  %v2493_v54 = vadd.f32 %v2288_v49, %v1038_v48  ;;  %v881_v55 = vpop.f32.mrf.mxu0  ;;  %v4325_v47 = vld [vmem:[%s4900_s27 + $0x88] sm:$0xff] }
 0x105   : > { %v4475_v58 = vpack.c.bf16 %v3201_v53, %v3200_v52  ;;  %v2131_v59 = vpop.f32.mrf.mxu1  ;;  %v4357_v48 = vld [vmem:[%s4900_s27 + $0x188] sm:$0xff]  ;;  %v4392_v53 = vld [vmem:[%s4900_s27 + $0x98] sm:$0xff] }
 0x106   : > { %v2881_v61 = vadd.f32 %v4978_v45, %v2493_v54  ;;  %v2430_v63 = vadd.f32 %v2131_v59, %v881_v55  ;;  %v4424_v54 = vld [vmem:[%s4900_s27 + $0x198] sm:$0xff] }
 0x107   : > { %4767 = vst [vmem:[%s4991_s8 + $0x30] sm:$0xff] %v4475_v58   ;;  %3918 = vmatmul.msk.bf16.gmra.mxu0 %vm644_vm0, %v4323_v50  ;;  %3950 = vmatmul.msk.bf16.gmra.mxu2 %vm644_vm0, %v4355_v51 }
 0x108   : > { %vm3009_vm13 = vcmp.ge.f32.partialorder %v2881_v61, 0.0  ;;  %v3137_v62 = vmul.f32 0.2, %v2881_v61  ;;  %4256 = vmatmul.msk.bf16.gmra.mxu1 %vm644_vm0, %v4390_v56  ;;  %4288 = vmatmul.msk.bf16.gmra.mxu3 %vm644_vm0, %v4422_v57  ;;  %v2818_v5 = vadd.f32 %v4978_v45, %v2430_v63 }
 0x10a   : > { %v3265_v1 = vsel %vm3009_vm13, %v2881_v61, %v3137_v62  ;;  %v1041_v2 = vpop.f32.mrf.mxu2  ;;  %v3074_v10 = vmul.f32 0.2, %v2818_v5  ;;  %vm2946_vm14 = vcmp.ge.f32.partialorder %v2818_v5, 0.0 }
 0x10b   : > { %v4635_v3 = vpack.c.bf16 %v3265_v1, %v3264_v0  ;;  %v2291_v4 = vpop.f32.mrf.mxu3 }
 0x10c   : > { %v883_v6 = vpop.f32.mrf.mxu0  ;;  %v2494_v8 = vadd.f32 %v2291_v4, %v1041_v2  ;;  %v3202_v18 = vsel %vm2946_vm14, %v2818_v5, %v3074_v10 }
 0x10d   : > { %4799 = vst [vmem:[%s4991_s8 + $0x130] sm:$0xff] %v4635_v3   ;;  %v2133_v7 = vpop.f32.mrf.mxu1 }
 0x10e   : > { %v2431_v9 = vadd.f32 %v2133_v7, %v883_v6  ;;  %v2882_v12 = vadd.f32 %v4978_v45, %v2494_v8 }
 0x110   : > { %v2819_v11 = vadd.f32 %v4978_v45, %v2431_v9  ;;  %v3138_v26 = vmul.f32 0.2, %v2882_v12  ;;  %vm3010_vm1 = vcmp.ge.f32.partialorder %v2882_v12, 0.0 }
 0x112   : > { %vm2947_vm15 = vcmp.ge.f32.partialorder %v2819_v11, 0.0  ;;  %v3075_v13 = vmul.f32 0.2, %v2819_v11  ;;  %v1043_v14 = vpop.f32.mrf.mxu2  ;;  %v3266_v30 = vsel %vm3010_vm1, %v2882_v12, %v3138_v26 }
 0x113   : > { %v2293_v15 = vpop.f32.mrf.mxu3 }
 0x114   : > { %v3203_v19 = vsel %vm2947_vm15, %v2819_v11, %v3075_v13  ;;  %v2495_v20 = vadd.f32 %v2293_v15, %v1043_v14  ;;  %v886_v21 = vpop.f32.mrf.mxu0  ;;  %v4326_v13 = vld [vmem:[%s4900_s27 + $0x90] sm:$0xff] }
 0x115   : > { %v4480_v24 = vpack.c.bf16 %v3203_v19, %v3202_v18  ;;  %v2136_v25 = vpop.f32.mrf.mxu1  ;;  %v4358_v14 = vld [vmem:[%s4900_s27 + $0x190] sm:$0xff]  ;;  %v4393_v19 = vld [vmem:[%s4900_s27 + $0xa0] sm:$0xff] }
 0x116   : > { %v2883_v27 = vadd.f32 %v4978_v45, %v2495_v20  ;;  %v2432_v29 = vadd.f32 %v2136_v25, %v886_v21  ;;  %v4425_v20 = vld [vmem:[%s4900_s27 + $0x1a0] sm:$0xff] }
 0x117   : > { %4768 = vst [vmem:[%s4991_s8 + $0x38] sm:$0xff] %v4480_v24   ;;  %3919 = vmatmul.msk.bf16.gmra.mxu0 %vm644_vm0, %v4324_v16  ;;  %3951 = vmatmul.msk.bf16.gmra.mxu2 %vm644_vm0, %v4356_v17 }
 0x118   : > { %vm3011_vm2 = vcmp.ge.f32.partialorder %v2883_v27, 0.0  ;;  %v3139_v28 = vmul.f32 0.2, %v2883_v27  ;;  %4257 = vmatmul.msk.bf16.gmra.mxu1 %vm644_vm0, %v4391_v22  ;;  %4289 = vmatmul.msk.bf16.gmra.mxu3 %vm644_vm0, %v4423_v23  ;;  %v2820_v35 = vadd.f32 %v4978_v45, %v2432_v29 }
 0x11a   : > { %v3267_v31 = vsel %vm3011_vm2, %v2883_v27, %v3139_v28  ;;  %v1046_v32 = vpop.f32.mrf.mxu2  ;;  %v3076_v40 = vmul.f32 0.2, %v2820_v35  ;;  %vm2948_vm3 = vcmp.ge.f32.partialorder %v2820_v35, 0.0 }
 0x11b   : > { %v4640_v33 = vpack.c.bf16 %v3267_v31, %v3266_v30  ;;  %v2296_v34 = vpop.f32.mrf.mxu3 }
 0x11c   : > { %v888_v36 = vpop.f32.mrf.mxu0  ;;  %v2496_v38 = vadd.f32 %v2296_v34, %v1046_v32  ;;  %v3204_v49 = vsel %vm2948_vm3, %v2820_v35, %v3076_v40 }
 0x11d   : > { %4800 = vst [vmem:[%s4991_s8 + $0x138] sm:$0xff] %v4640_v33   ;;  %v2138_v37 = vpop.f32.mrf.mxu1 }
 0x11e   : > { %v2433_v39 = vadd.f32 %v2138_v37, %v888_v36  ;;  %v2884_v42 = vadd.f32 %v4978_v45, %v2496_v38 }
 0x120   : > { %v2821_v41 = vadd.f32 %v4978_v45, %v2433_v39  ;;  %v3140_v57 = vmul.f32 0.2, %v2884_v42  ;;  %vm3012_vm5 = vcmp.ge.f32.partialorder %v2884_v42, 0.0 }
 0x122   : > { %vm2949_vm4 = vcmp.ge.f32.partialorder %v2821_v41, 0.0  ;;  %v3077_v43 = vmul.f32 0.2, %v2821_v41  ;;  %v1048_v44 = vpop.f32.mrf.mxu2  ;;  %v3268_v61 = vsel %vm3012_vm5, %v2884_v42, %v3140_v57 }
 0x123   : > { %v2298_v46 = vpop.f32.mrf.mxu3 }
 0x124   : > { %v3205_v50 = vsel %vm2949_vm4, %v2821_v41, %v3077_v43  ;;  %v2497_v51 = vadd.f32 %v2298_v46, %v1048_v44  ;;  %v891_v52 = vpop.f32.mrf.mxu0  ;;  %v4327_v43 = vld [vmem:[%s4900_s27 + $0x98] sm:$0xff] }
 0x125   : > { %v4485_v55 = vpack.c.bf16 %v3205_v50, %v3204_v49  ;;  %v2141_v56 = vpop.f32.mrf.mxu1  ;;  %v4359_v44 = vld [vmem:[%s4900_s27 + $0x198] sm:$0xff]  ;;  %v4394_v50 = vld [vmem:[%s4900_s27 + $0xa8] sm:$0xff] }
 0x126   : > { %v2885_v58 = vadd.f32 %v4978_v45, %v2497_v51  ;;  %v2434_v60 = vadd.f32 %v2141_v56, %v891_v52  ;;  %v4426_v51 = vld [vmem:[%s4900_s27 + $0x1a8] sm:$0xff] }
 0x127   : > { %4769 = vst [vmem:[%s4991_s8 + $0x40] sm:$0xff] %v4485_v55   ;;  %3920 = vmatmul.msk.bf16.gmra.mxu0 %vm644_vm0, %v4325_v47  ;;  %3952 = vmatmul.msk.bf16.gmra.mxu2 %vm644_vm0, %v4357_v48 }
 0x128   : > { %vm3013_vm6 = vcmp.ge.f32.partialorder %v2885_v58, 0.0  ;;  %v3141_v59 = vmul.f32 0.2, %v2885_v58  ;;  %4258 = vmatmul.msk.bf16.gmra.mxu1 %vm644_vm0, %v4392_v53  ;;  %4290 = vmatmul.msk.bf16.gmra.mxu3 %vm644_vm0, %v4424_v54  ;;  %v2822_v2 = vadd.f32 %v4978_v45, %v2434_v60 }
 0x12a   : > { %v3269_v62 = vsel %vm3013_vm6, %v2885_v58, %v3141_v59  ;;  %v1051_v63 = vpop.f32.mrf.mxu2  ;;  %v3078_v7 = vmul.f32 0.2, %v2822_v2  ;;  %vm2950_vm7 = vcmp.ge.f32.partialorder %v2822_v2, 0.0 }
 0x12b   : > { %v4645_v0 = vpack.c.bf16 %v3269_v62, %v3268_v61  ;;  %v2301_v1 = vpop.f32.mrf.mxu3 }
 0x12c   : > { %v893_v3 = vpop.f32.mrf.mxu0  ;;  %v2498_v5 = vadd.f32 %v2301_v1, %v1051_v63  ;;  %v3206_v15 = vsel %vm2950_vm7, %v2822_v2, %v3078_v7 }
 0x12d   : > { %4801 = vst [vmem:[%s4991_s8 + $0x140] sm:$0xff] %v4645_v0   ;;  %v2143_v4 = vpop.f32.mrf.mxu1 }
 0x12e   : > { %v2435_v6 = vadd.f32 %v2143_v4, %v893_v3  ;;  %v2886_v9 = vadd.f32 %v4978_v45, %v2498_v5 }
 0x130   : > { %v2823_v8 = vadd.f32 %v4978_v45, %v2435_v6  ;;  %v3142_v23 = vmul.f32 0.2, %v2886_v9  ;;  %vm3014_vm9 = vcmp.ge.f32.partialorder %v2886_v9, 0.0 }
 0x132   : > { %vm2951_vm8 = vcmp.ge.f32.partialorder %v2823_v8, 0.0  ;;  %v3079_v10 = vmul.f32 0.2, %v2823_v8  ;;  %v1053_v11 = vpop.f32.mrf.mxu2  ;;  %v3270_v27 = vsel %vm3014_vm9, %v2886_v9, %v3142_v23 }
 0x133   : > { %v2303_v12 = vpop.f32.mrf.mxu3 }
 0x134   : > { %v3207_v16 = vsel %vm2951_vm8, %v2823_v8, %v3079_v10  ;;  %v2499_v17 = vadd.f32 %v2303_v12, %v1053_v11  ;;  %v896_v18 = vpop.f32.mrf.mxu0  ;;  %v4328_v10 = vld [vmem:[%s4900_s27 + $0xa0] sm:$0xff] }
 0x135   : > { %v4490_v21 = vpack.c.bf16 %v3207_v16, %v3206_v15  ;;  %v2146_v22 = vpop.f32.mrf.mxu1  ;;  %v4360_v11 = vld [vmem:[%s4900_s27 + $0x1a0] sm:$0xff]  ;;  %v4395_v16 = vld [vmem:[%s4900_s27 + $0xb0] sm:$0xff] }
 0x136   : > { %v2887_v24 = vadd.f32 %v4978_v45, %v2499_v17  ;;  %v2436_v26 = vadd.f32 %v2146_v22, %v896_v18  ;;  %v4427_v17 = vld [vmem:[%s4900_s27 + $0x1b0] sm:$0xff] }
 0x137   : > { %4770 = vst [vmem:[%s4991_s8 + $0x48] sm:$0xff] %v4490_v21   ;;  %3921 = vmatmul.msk.bf16.gmra.mxu0 %vm644_vm0, %v4326_v13  ;;  %3953 = vmatmul.msk.bf16.gmra.mxu2 %vm644_vm0, %v4358_v14 }
 0x138   : > { %vm3015_vm10 = vcmp.ge.f32.partialorder %v2887_v24, 0.0  ;;  %v3143_v25 = vmul.f32 0.2, %v2887_v24  ;;  %4259 = vmatmul.msk.bf16.gmra.mxu1 %vm644_vm0, %v4393_v19  ;;  %4291 = vmatmul.msk.bf16.gmra.mxu3 %vm644_vm0, %v4425_v20  ;;  %v2824_v32 = vadd.f32 %v4978_v45, %v2436_v26 }
 0x13a   : > { %v3271_v28 = vsel %vm3015_vm10, %v2887_v24, %v3143_v25  ;;  %v1056_v29 = vpop.f32.mrf.mxu2  ;;  %v3080_v37 = vmul.f32 0.2, %v2824_v32  ;;  %vm2952_vm11 = vcmp.ge.f32.partialorder %v2824_v32, 0.0 }
 0x13b   : > { %v4650_v30 = vpack.c.bf16 %v3271_v28, %v3270_v27  ;;  %v2306_v31 = vpop.f32.mrf.mxu3 }
 0x13c   : > { %v898_v33 = vpop.f32.mrf.mxu0  ;;  %v2500_v35 = vadd.f32 %v2306_v31, %v1056_v29  ;;  %v3208_v46 = vsel %vm2952_vm11, %v2824_v32, %v3080_v37 }
 0x13d   : > { %4802 = vst [vmem:[%s4991_s8 + $0x148] sm:$0xff] %v4650_v30   ;;  %v2148_v34 = vpop.f32.mrf.mxu1 }
 0x13e   : > { %v2437_v36 = vadd.f32 %v2148_v34, %v898_v33  ;;  %v2888_v39 = vadd.f32 %v4978_v45, %v2500_v35 }
 0x140   : > { %v2825_v38 = vadd.f32 %v4978_v45, %v2437_v36  ;;  %v3144_v54 = vmul.f32 0.2, %v2888_v39  ;;  %vm3016_vm13 = vcmp.ge.f32.partialorder %v2888_v39, 0.0 }
 0x142   : > { %vm2953_vm12 = vcmp.ge.f32.partialorder %v2825_v38, 0.0  ;;  %v3081_v40 = vmul.f32 0.2, %v2825_v38  ;;  %v1058_v41 = vpop.f32.mrf.mxu2  ;;  %v3272_v58 = vsel %vm3016_vm13, %v2888_v39, %v3144_v54 }
 0x143   : > { %v2308_v42 = vpop.f32.mrf.mxu3 }
 0x144   : > { %v3209_v47 = vsel %vm2953_vm12, %v2825_v38, %v3081_v40  ;;  %v2501_v48 = vadd.f32 %v2308_v42, %v1058_v41  ;;  %v901_v49 = vpop.f32.mrf.mxu0  ;;  %v4329_v40 = vld [vmem:[%s4900_s27 + $0xa8] sm:$0xff] }
 0x145   : > { %v4495_v52 = vpack.c.bf16 %v3209_v47, %v3208_v46  ;;  %v2151_v53 = vpop.f32.mrf.mxu1  ;;  %v4361_v41 = vld [vmem:[%s4900_s27 + $0x1a8] sm:$0xff]  ;;  %v4396_v47 = vld [vmem:[%s4900_s27 + $0xb8] sm:$0xff] }
 0x146   : > { %v2889_v55 = vadd.f32 %v4978_v45, %v2501_v48  ;;  %v2438_v57 = vadd.f32 %v2151_v53, %v901_v49  ;;  %v4428_v48 = vld [vmem:[%s4900_s27 + $0x1b8] sm:$0xff] }
 0x147   : > { %4771 = vst [vmem:[%s4991_s8 + $0x50] sm:$0xff] %v4495_v52   ;;  %3922 = vmatmul.msk.bf16.gmra.mxu0 %vm644_vm0, %v4327_v43  ;;  %3954 = vmatmul.msk.bf16.gmra.mxu2 %vm644_vm0, %v4359_v44 }
 0x148   : > { %vm3017_vm14 = vcmp.ge.f32.partialorder %v2889_v55, 0.0  ;;  %v3145_v56 = vmul.f32 0.2, %v2889_v55  ;;  %4260 = vmatmul.msk.bf16.gmra.mxu1 %vm644_vm0, %v4394_v50  ;;  %4292 = vmatmul.msk.bf16.gmra.mxu3 %vm644_vm0, %v4426_v51  ;;  %v2826_v63 = vadd.f32 %v4978_v45, %v2438_v57 }
 0x14a   : > { %v3273_v59 = vsel %vm3017_vm14, %v2889_v55, %v3145_v56  ;;  %v1061_v60 = vpop.f32.mrf.mxu2  ;;  %v3082_v4 = vmul.f32 0.2, %v2826_v63  ;;  %vm2954_vm15 = vcmp.ge.f32.partialorder %v2826_v63, 0.0 }
 0x14b   : > { %v4655_v61 = vpack.c.bf16 %v3273_v59, %v3272_v58  ;;  %v2311_v62 = vpop.f32.mrf.mxu3 }
 0x14c   : > { %v903_v0 = vpop.f32.mrf.mxu0  ;;  %v2502_v2 = vadd.f32 %v2311_v62, %v1061_v60  ;;  %v3210_v12 = vsel %vm2954_vm15, %v2826_v63, %v3082_v4 }
 0x14d   : > { %4803 = vst [vmem:[%s4991_s8 + $0x150] sm:$0xff] %v4655_v61   ;;  %v2153_v1 = vpop.f32.mrf.mxu1 }
 0x14e   : > { %v2439_v3 = vadd.f32 %v2153_v1, %v903_v0  ;;  %v2890_v6 = vadd.f32 %v4978_v45, %v2502_v2 }
 0x150   : > { %v2827_v5 = vadd.f32 %v4978_v45, %v2439_v3  ;;  %v3146_v20 = vmul.f32 0.2, %v2890_v6  ;;  %vm3018_vm2 = vcmp.ge.f32.partialorder %v2890_v6, 0.0 }
 0x152   : > { %vm2955_vm1 = vcmp.ge.f32.partialorder %v2827_v5, 0.0  ;;  %v3083_v7 = vmul.f32 0.2, %v2827_v5  ;;  %v1063_v8 = vpop.f32.mrf.mxu2  ;;  %v3274_v24 = vsel %vm3018_vm2, %v2890_v6, %v3146_v20 }
 0x153   : > { %v2313_v9 = vpop.f32.mrf.mxu3 }
 0x154   : > { %v3211_v13 = vsel %vm2955_vm1, %v2827_v5, %v3083_v7  ;;  %v2503_v14 = vadd.f32 %v2313_v9, %v1063_v8  ;;  %v906_v15 = vpop.f32.mrf.mxu0  ;;  %v4330_v7 = vld [vmem:[%s4900_s27 + $0xb0] sm:$0xff] }
 0x155   : > { %v4500_v18 = vpack.c.bf16 %v3211_v13, %v3210_v12  ;;  %v2156_v19 = vpop.f32.mrf.mxu1  ;;  %v4362_v8 = vld [vmem:[%s4900_s27 + $0x1b0] sm:$0xff]  ;;  %v4397_v13 = vld [vmem:[%s4900_s27 + $0xc0] sm:$0xff] }
 0x156   : > { %v2891_v21 = vadd.f32 %v4978_v45, %v2503_v14  ;;  %v2440_v23 = vadd.f32 %v2156_v19, %v906_v15  ;;  %v4429_v14 = vld [vmem:[%s4900_s27 + $0x1c0] sm:$0xff] }
 0x157   : > { %4772 = vst [vmem:[%s4991_s8 + $0x58] sm:$0xff] %v4500_v18   ;;  %3923 = vmatmul.msk.bf16.gmra.mxu0 %vm644_vm0, %v4328_v10  ;;  %3955 = vmatmul.msk.bf16.gmra.mxu2 %vm644_vm0, %v4360_v11 }
 0x158   : > { %vm3019_vm3 = vcmp.ge.f32.partialorder %v2891_v21, 0.0  ;;  %v3147_v22 = vmul.f32 0.2, %v2891_v21  ;;  %4261 = vmatmul.msk.bf16.gmra.mxu1 %vm644_vm0, %v4395_v16  ;;  %4293 = vmatmul.msk.bf16.gmra.mxu3 %vm644_vm0, %v4427_v17  ;;  %v2828_v29 = vadd.f32 %v4978_v45, %v2440_v23 }
 0x15a   : > { %v3275_v25 = vsel %vm3019_vm3, %v2891_v21, %v3147_v22  ;;  %v1066_v26 = vpop.f32.mrf.mxu2  ;;  %v3084_v34 = vmul.f32 0.2, %v2828_v29  ;;  %vm2956_vm4 = vcmp.ge.f32.partialorder %v2828_v29, 0.0 }
 0x15b   : > { %v4660_v27 = vpack.c.bf16 %v3275_v25, %v3274_v24  ;;  %v2316_v28 = vpop.f32.mrf.mxu3 }
 0x15c   : > { %v908_v30 = vpop.f32.mrf.mxu0  ;;  %v2504_v32 = vadd.f32 %v2316_v28, %v1066_v26  ;;  %v3212_v42 = vsel %vm2956_vm4, %v2828_v29, %v3084_v34 }
 0x15d   : > { %4804 = vst [vmem:[%s4991_s8 + $0x158] sm:$0xff] %v4660_v27   ;;  %v2158_v31 = vpop.f32.mrf.mxu1 }
 0x15e   : > { %v2441_v33 = vadd.f32 %v2158_v31, %v908_v30  ;;  %v2892_v36 = vadd.f32 %v4978_v45, %v2504_v32 }
 0x160   : > { %v2829_v35 = vadd.f32 %v4978_v45, %v2441_v33  ;;  %v3148_v51 = vmul.f32 0.2, %v2892_v36  ;;  %vm3020_vm6 = vcmp.ge.f32.partialorder %v2892_v36, 0.0 }
 0x162   : > { %vm2957_vm5 = vcmp.ge.f32.partialorder %v2829_v35, 0.0  ;;  %v3085_v37 = vmul.f32 0.2, %v2829_v35  ;;  %v1068_v38 = vpop.f32.mrf.mxu2  ;;  %v3276_v55 = vsel %vm3020_vm6, %v2892_v36, %v3148_v51 }
 0x163   : > { %v2318_v39 = vpop.f32.mrf.mxu3 }
 0x164   : > { %v3213_v43 = vsel %vm2957_vm5, %v2829_v35, %v3085_v37  ;;  %v2505_v44 = vadd.f32 %v2318_v39, %v1068_v38  ;;  %v911_v46 = vpop.f32.mrf.mxu0  ;;  %v4331_v37 = vld [vmem:[%s4900_s27 + $0xb8] sm:$0xff] }
 0x165   : > { %v4505_v49 = vpack.c.bf16 %v3213_v43, %v3212_v42  ;;  %v2161_v50 = vpop.f32.mrf.mxu1  ;;  %v4363_v38 = vld [vmem:[%s4900_s27 + $0x1b8] sm:$0xff]  ;;  %v4398_v43 = vld [vmem:[%s4900_s27 + $0xc8] sm:$0xff] }
 0x166   : > { %v2893_v52 = vadd.f32 %v4978_v45, %v2505_v44  ;;  %v2442_v54 = vadd.f32 %v2161_v50, %v911_v46  ;;  %v5172_v45 = vld [vmem:[%s5379_s2] ss:$0 sm:$0xff]  ;;  %v4430_v44 = vld [vmem:[%s4900_s27 + $0x1c8] sm:$0xff] }
 0x167   : > { %4773 = vst [vmem:[%s4991_s8 + $0x60] sm:$0xff] %v4505_v49   ;;  %3924 = vmatmul.msk.bf16.gmra.mxu0 %vm644_vm0, %v4329_v40  ;;  %3956 = vmatmul.msk.bf16.gmra.mxu2 %vm644_vm0, %v4361_v41 }
 0x168   : > { %vm3021_vm7 = vcmp.ge.f32.partialorder %v2893_v52, 0.0  ;;  %v3149_v53 = vmul.f32 0.2, %v2893_v52  ;;  %4262 = vmatmul.msk.bf16.gmra.mxu1 %vm644_vm0, %v4396_v47  ;;  %4294 = vmatmul.msk.bf16.gmra.mxu3 %vm644_vm0, %v4428_v48  ;;  %v2830_v60 = vadd.f32 %v5172_v45, %v2442_v54 }
 0x16a   : > { %v3277_v56 = vsel %vm3021_vm7, %v2893_v52, %v3149_v53  ;;  %v1071_v57 = vpop.f32.mrf.mxu2  ;;  %v3086_v1 = vmul.f32 0.2, %v2830_v60  ;;  %vm2958_vm8 = vcmp.ge.f32.partialorder %v2830_v60, 0.0 }
 0x16b   : > { %v4665_v58 = vpack.c.bf16 %v3277_v56, %v3276_v55  ;;  %v2321_v59 = vpop.f32.mrf.mxu3 }
 0x16c   : > { %v913_v61 = vpop.f32.mrf.mxu0  ;;  %v2506_v63 = vadd.f32 %v2321_v59, %v1071_v57  ;;  %v3214_v9 = vsel %vm2958_vm8, %v2830_v60, %v3086_v1 }
 0x16d   : > { %4805 = vst [vmem:[%s4991_s8 + $0x160] sm:$0xff] %v4665_v58   ;;  %v2163_v62 = vpop.f32.mrf.mxu1 }
 0x16e   : > { %v2443_v0 = vadd.f32 %v2163_v62, %v913_v61  ;;  %v2894_v3 = vadd.f32 %v5172_v45, %v2506_v63 }
 0x170   : > { %v2831_v2 = vadd.f32 %v5172_v45, %v2443_v0  ;;  %v3150_v17 = vmul.f32 0.2, %v2894_v3  ;;  %vm3022_vm10 = vcmp.ge.f32.partialorder %v2894_v3, 0.0 }
 0x172   : > { %vm2959_vm9 = vcmp.ge.f32.partialorder %v2831_v2, 0.0  ;;  %v3087_v4 = vmul.f32 0.2, %v2831_v2  ;;  %v1073_v5 = vpop.f32.mrf.mxu2  ;;  %v3278_v21 = vsel %vm3022_vm10, %v2894_v3, %v3150_v17 }
 0x173   : > { %v2323_v6 = vpop.f32.mrf.mxu3 }
 0x174   : > { %v3215_v10 = vsel %vm2959_vm9, %v2831_v2, %v3087_v4  ;;  %v2507_v11 = vadd.f32 %v2323_v6, %v1073_v5  ;;  %v916_v12 = vpop.f32.mrf.mxu0  ;;  %v4332_v4 = vld [vmem:[%s4900_s27 + $0xc0] sm:$0xff] }
 0x175   : > { %v4510_v15 = vpack.c.bf16 %v3215_v10, %v3214_v9  ;;  %v2166_v16 = vpop.f32.mrf.mxu1  ;;  %v4364_v5 = vld [vmem:[%s4900_s27 + $0x1c0] sm:$0xff]  ;;  %v4399_v10 = vld [vmem:[%s4900_s27 + $0xd0] sm:$0xff] }
 0x176   : > { %v2895_v18 = vadd.f32 %v5172_v45, %v2507_v11  ;;  %v2444_v20 = vadd.f32 %v2166_v16, %v916_v12  ;;  %v4431_v11 = vld [vmem:[%s4900_s27 + $0x1d0] sm:$0xff] }
 0x177   : > { %4774 = vst [vmem:[%s4991_s8 + $0x68] sm:$0xff] %v4510_v15   ;;  %3925 = vmatmul.msk.bf16.gmra.mxu0 %vm644_vm0, %v4330_v7  ;;  %3957 = vmatmul.msk.bf16.gmra.mxu2 %vm644_vm0, %v4362_v8 }
 0x178   : > { %vm3023_vm11 = vcmp.ge.f32.partialorder %v2895_v18, 0.0  ;;  %v3151_v19 = vmul.f32 0.2, %v2895_v18  ;;  %4263 = vmatmul.msk.bf16.gmra.mxu1 %vm644_vm0, %v4397_v13  ;;  %4295 = vmatmul.msk.bf16.gmra.mxu3 %vm644_vm0, %v4429_v14  ;;  %v2832_v26 = vadd.f32 %v5172_v45, %v2444_v20 }
 0x17a   : > { %v3279_v22 = vsel %vm3023_vm11, %v2895_v18, %v3151_v19  ;;  %v1076_v23 = vpop.f32.mrf.mxu2  ;;  %v3088_v31 = vmul.f32 0.2, %v2832_v26  ;;  %vm2960_vm12 = vcmp.ge.f32.partialorder %v2832_v26, 0.0 }
 0x17b   : > { %v4670_v24 = vpack.c.bf16 %v3279_v22, %v3278_v21  ;;  %v2326_v25 = vpop.f32.mrf.mxu3 }
 0x17c   : > { %v918_v27 = vpop.f32.mrf.mxu0  ;;  %v2508_v29 = vadd.f32 %v2326_v25, %v1076_v23  ;;  %v3216_v39 = vsel %vm2960_vm12, %v2832_v26, %v3088_v31 }
 0x17d   : > { %4806 = vst [vmem:[%s4991_s8 + $0x168] sm:$0xff] %v4670_v24   ;;  %v2168_v28 = vpop.f32.mrf.mxu1 }
 0x17e   : > { %v2445_v30 = vadd.f32 %v2168_v28, %v918_v27  ;;  %v2896_v33 = vadd.f32 %v5172_v45, %v2508_v29 }
 0x180   : > { %v2833_v32 = vadd.f32 %v5172_v45, %v2445_v30  ;;  %v3152_v48 = vmul.f32 0.2, %v2896_v33  ;;  %vm3024_vm14 = vcmp.ge.f32.partialorder %v2896_v33, 0.0 }
 0x182   : > { %vm2961_vm13 = vcmp.ge.f32.partialorder %v2833_v32, 0.0  ;;  %v3089_v34 = vmul.f32 0.2, %v2833_v32  ;;  %v1078_v35 = vpop.f32.mrf.mxu2  ;;  %v3280_v52 = vsel %vm3024_vm14, %v2896_v33, %v3152_v48 }
 0x183   : > { %v2328_v36 = vpop.f32.mrf.mxu3 }
 0x184   : > { %v3217_v40 = vsel %vm2961_vm13, %v2833_v32, %v3089_v34  ;;  %v2509_v41 = vadd.f32 %v2328_v36, %v1078_v35  ;;  %v921_v42 = vpop.f32.mrf.mxu0  ;;  %v4333_v34 = vld [vmem:[%s4900_s27 + $0xc8] sm:$0xff] }
 0x185   : > { %v4515_v46 = vpack.c.bf16 %v3217_v40, %v3216_v39  ;;  %v2171_v47 = vpop.f32.mrf.mxu1  ;;  %v4365_v35 = vld [vmem:[%s4900_s27 + $0x1c8] sm:$0xff]  ;;  %v4400_v40 = vld [vmem:[%s4900_s27 + $0xd8] sm:$0xff] }
 0x186   : > { %v2897_v49 = vadd.f32 %v5172_v45, %v2509_v41  ;;  %v2446_v51 = vadd.f32 %v2171_v47, %v921_v42  ;;  %v4432_v41 = vld [vmem:[%s4900_s27 + $0x1d8] sm:$0xff] }
 0x187   : > { %4775 = vst [vmem:[%s4991_s8 + $0x70] sm:$0xff] %v4515_v46   ;;  %3926 = vmatmul.msk.bf16.gmra.mxu0 %vm644_vm0, %v4331_v37  ;;  %3958 = vmatmul.msk.bf16.gmra.mxu2 %vm644_vm0, %v4363_v38 }
 0x188   : > { %vm3025_vm15 = vcmp.ge.f32.partialorder %v2897_v49, 0.0  ;;  %v3153_v50 = vmul.f32 0.2, %v2897_v49  ;;  %4264 = vmatmul.msk.bf16.gmra.mxu1 %vm644_vm0, %v4398_v43  ;;  %4296 = vmatmul.msk.bf16.gmra.mxu3 %vm644_vm0, %v4430_v44  ;;  %v2834_v57 = vadd.f32 %v5172_v45, %v2446_v51 }
 0x18a   : > { %v3281_v53 = vsel %vm3025_vm15, %v2897_v49, %v3153_v50  ;;  %v1081_v54 = vpop.f32.mrf.mxu2  ;;  %v3090_v62 = vmul.f32 0.2, %v2834_v57  ;;  %vm2962_vm1 = vcmp.ge.f32.partialorder %v2834_v57, 0.0 }
 0x18b   : > { %v4675_v55 = vpack.c.bf16 %v3281_v53, %v3280_v52  ;;  %v2331_v56 = vpop.f32.mrf.mxu3 }
 0x18c   : > { %v923_v58 = vpop.f32.mrf.mxu0  ;;  %v2510_v60 = vadd.f32 %v2331_v56, %v1081_v54  ;;  %v3218_v6 = vsel %vm2962_vm1, %v2834_v57, %v3090_v62 }
 0x18d   : > { %4807 = vst [vmem:[%s4991_s8 + $0x170] sm:$0xff] %v4675_v55   ;;  %v2173_v59 = vpop.f32.mrf.mxu1 }
 0x18e   : > { %v2447_v61 = vadd.f32 %v2173_v59, %v923_v58  ;;  %v2898_v0 = vadd.f32 %v5172_v45, %v2510_v60 }
 0x190   : > { %v2835_v63 = vadd.f32 %v5172_v45, %v2447_v61  ;;  %v3154_v14 = vmul.f32 0.2, %v2898_v0  ;;  %vm3026_vm3 = vcmp.ge.f32.partialorder %v2898_v0, 0.0 }
 0x192   : > { %vm2963_vm2 = vcmp.ge.f32.partialorder %v2835_v63, 0.0  ;;  %v3091_v1 = vmul.f32 0.2, %v2835_v63  ;;  %v1083_v2 = vpop.f32.mrf.mxu2  ;;  %v3282_v18 = vsel %vm3026_vm3, %v2898_v0, %v3154_v14 }
 0x193   : > { %v2333_v3 = vpop.f32.mrf.mxu3 }
 0x194   : > { %v3219_v7 = vsel %vm2963_vm2, %v2835_v63, %v3091_v1  ;;  %v2511_v8 = vadd.f32 %v2333_v3, %v1083_v2  ;;  %v926_v9 = vpop.f32.mrf.mxu0  ;;  %v4334_v1 = vld [vmem:[%s4900_s27 + $0xd0] sm:$0xff] }
 0x195   : > { %v4520_v12 = vpack.c.bf16 %v3219_v7, %v3218_v6  ;;  %v2176_v13 = vpop.f32.mrf.mxu1  ;;  %v4366_v2 = vld [vmem:[%s4900_s27 + $0x1d0] sm:$0xff]  ;;  %v4401_v7 = vld [vmem:[%s4900_s27 + $0xe0] sm:$0xff] }
 0x196   : > { %v2899_v15 = vadd.f32 %v5172_v45, %v2511_v8  ;;  %v2448_v17 = vadd.f32 %v2176_v13, %v926_v9  ;;  %v4433_v8 = vld [vmem:[%s4900_s27 + $0x1e0] sm:$0xff] }
 0x197   : > { %4776 = vst [vmem:[%s4991_s8 + $0x78] sm:$0xff] %v4520_v12   ;;  %3927 = vmatmul.msk.bf16.gmra.mxu0 %vm644_vm0, %v4332_v4  ;;  %3959 = vmatmul.msk.bf16.gmra.mxu2 %vm644_vm0, %v4364_v5 }
 0x198   : > { %vm3027_vm4 = vcmp.ge.f32.partialorder %v2899_v15, 0.0  ;;  %v3155_v16 = vmul.f32 0.2, %v2899_v15  ;;  %4265 = vmatmul.msk.bf16.gmra.mxu1 %vm644_vm0, %v4399_v10  ;;  %4297 = vmatmul.msk.bf16.gmra.mxu3 %vm644_vm0, %v4431_v11  ;;  %v2836_v23 = vadd.f32 %v5172_v45, %v2448_v17 }
 0x19a   : > { %v3283_v19 = vsel %vm3027_vm4, %v2899_v15, %v3155_v16  ;;  %v1086_v20 = vpop.f32.mrf.mxu2  ;;  %v3092_v28 = vmul.f32 0.2, %v2836_v23  ;;  %vm2964_vm5 = vcmp.ge.f32.partialorder %v2836_v23, 0.0 }
 0x19b   : > { %v4680_v21 = vpack.c.bf16 %v3283_v19, %v3282_v18  ;;  %v2336_v22 = vpop.f32.mrf.mxu3 }
 0x19c   : > { %v928_v24 = vpop.f32.mrf.mxu0  ;;  %v2512_v26 = vadd.f32 %v2336_v22, %v1086_v20  ;;  %v3220_v36 = vsel %vm2964_vm5, %v2836_v23, %v3092_v28 }
 0x19d   : > { %4808 = vst [vmem:[%s4991_s8 + $0x178] sm:$0xff] %v4680_v21   ;;  %v2178_v25 = vpop.f32.mrf.mxu1 }
 0x19e   : > { %v2449_v27 = vadd.f32 %v2178_v25, %v928_v24  ;;  %v2900_v30 = vadd.f32 %v5172_v45, %v2512_v26 }
 0x1a0   : > { %v2837_v29 = vadd.f32 %v5172_v45, %v2449_v27  ;;  %v3156_v44 = vmul.f32 0.2, %v2900_v30  ;;  %vm3028_vm7 = vcmp.ge.f32.partialorder %v2900_v30, 0.0 }
 0x1a2   : > { %vm2965_vm6 = vcmp.ge.f32.partialorder %v2837_v29, 0.0  ;;  %v3093_v31 = vmul.f32 0.2, %v2837_v29  ;;  %v1088_v32 = vpop.f32.mrf.mxu2  ;;  %v3284_v49 = vsel %vm3028_vm7, %v2900_v30, %v3156_v44 }
 0x1a3   : > { %v2338_v33 = vpop.f32.mrf.mxu3 }
 0x1a4   : > { %v3221_v37 = vsel %vm2965_vm6, %v2837_v29, %v3093_v31  ;;  %v2513_v38 = vadd.f32 %v2338_v33, %v1088_v32  ;;  %v931_v39 = vpop.f32.mrf.mxu0  ;;  %v4335_v31 = vld [vmem:[%s4900_s27 + $0xd8] sm:$0xff] }
 0x1a5   : > { %v4525_v42 = vpack.c.bf16 %v3221_v37, %v3220_v36  ;;  %v2181_v43 = vpop.f32.mrf.mxu1  ;;  %v4367_v32 = vld [vmem:[%s4900_s27 + $0x1d8] sm:$0xff]  ;;  %v4402_v37 = vld [vmem:[%s4900_s27 + $0xe8] sm:$0xff] }
 0x1a6   : > { %v2901_v46 = vadd.f32 %v5172_v45, %v2513_v38  ;;  %v2450_v48 = vadd.f32 %v2181_v43, %v931_v39  ;;  %v4434_v38 = vld [vmem:[%s4900_s27 + $0x1e8] sm:$0xff] }
 0x1a7   : > { %4777 = vst [vmem:[%s4991_s8 + $0x80] sm:$0xff] %v4525_v42   ;;  %3928 = vmatmul.msk.bf16.gmra.mxu0 %vm644_vm0, %v4333_v34  ;;  %3960 = vmatmul.msk.bf16.gmra.mxu2 %vm644_vm0, %v4365_v35 }
 0x1a8   : > { %vm3029_vm8 = vcmp.ge.f32.partialorder %v2901_v46, 0.0  ;;  %v3157_v47 = vmul.f32 0.2, %v2901_v46  ;;  %4266 = vmatmul.msk.bf16.gmra.mxu1 %vm644_vm0, %v4400_v40  ;;  %4298 = vmatmul.msk.bf16.gmra.mxu3 %vm644_vm0, %v4432_v41  ;;  %v2838_v54 = vadd.f32 %v5172_v45, %v2450_v48 }
 0x1aa   : > { %v3285_v50 = vsel %vm3029_vm8, %v2901_v46, %v3157_v47  ;;  %v1091_v51 = vpop.f32.mrf.mxu2  ;;  %v3094_v59 = vmul.f32 0.2, %v2838_v54  ;;  %vm2966_vm9 = vcmp.ge.f32.partialorder %v2838_v54, 0.0 }
 0x1ab   : > { %v4685_v52 = vpack.c.bf16 %v3285_v50, %v3284_v49  ;;  %v2341_v53 = vpop.f32.mrf.mxu3 }
 0x1ac   : > { %v933_v55 = vpop.f32.mrf.mxu0  ;;  %v2514_v57 = vadd.f32 %v2341_v53, %v1091_v51  ;;  %v3222_v3 = vsel %vm2966_vm9, %v2838_v54, %v3094_v59 }
 0x1ad   : > { %4809 = vst [vmem:[%s4991_s8 + $0x180] sm:$0xff] %v4685_v52   ;;  %v2183_v56 = vpop.f32.mrf.mxu1 }
 0x1ae   : > { %v2451_v58 = vadd.f32 %v2183_v56, %v933_v55  ;;  %v2902_v61 = vadd.f32 %v5172_v45, %v2514_v57 }
 0x1b0   : > { %v2839_v60 = vadd.f32 %v5172_v45, %v2451_v58  ;;  %v3158_v11 = vmul.f32 0.2, %v2902_v61  ;;  %vm3030_vm11 = vcmp.ge.f32.partialorder %v2902_v61, 0.0 }
 0x1b2   : > { %vm2967_vm10 = vcmp.ge.f32.partialorder %v2839_v60, 0.0  ;;  %v3095_v62 = vmul.f32 0.2, %v2839_v60  ;;  %v1093_v63 = vpop.f32.mrf.mxu2  ;;  %v3286_v15 = vsel %vm3030_vm11, %v2902_v61, %v3158_v11 }
 0x1b3   : > { %v2343_v0 = vpop.f32.mrf.mxu3 }
 0x1b4   : > { %v3223_v4 = vsel %vm2967_vm10, %v2839_v60, %v3095_v62  ;;  %v2515_v5 = vadd.f32 %v2343_v0, %v1093_v63  ;;  %v936_v6 = vpop.f32.mrf.mxu0  ;;  %v4336_v62 = vld [vmem:[%s4900_s27 + $0xe0] sm:$0xff] }
 0x1b5   : > { %v4530_v9 = vpack.c.bf16 %v3223_v4, %v3222_v3  ;;  %v2186_v10 = vpop.f32.mrf.mxu1  ;;  %v4368_v63 = vld [vmem:[%s4900_s27 + $0x1e0] sm:$0xff]  ;;  %v4403_v4 = vld [vmem:[%s4900_s27 + $0xf0] sm:$0xff] }
 0x1b6   : > { %v2903_v12 = vadd.f32 %v5172_v45, %v2515_v5  ;;  %v2452_v14 = vadd.f32 %v2186_v10, %v936_v6  ;;  %v4435_v5 = vld [vmem:[%s4900_s27 + $0x1f0] sm:$0xff] }
 0x1b7   : > { %4778 = vst [vmem:[%s4991_s8 + $0x88] sm:$0xff] %v4530_v9   ;;  %3929 = vmatmul.msk.bf16.gmra.mxu0 %vm644_vm0, %v4334_v1  ;;  %3961 = vmatmul.msk.bf16.gmra.mxu2 %vm644_vm0, %v4366_v2 }
 0x1b8   : > { %vm3031_vm12 = vcmp.ge.f32.partialorder %v2903_v12, 0.0  ;;  %v3159_v13 = vmul.f32 0.2, %v2903_v12  ;;  %4267 = vmatmul.msk.bf16.gmra.mxu1 %vm644_vm0, %v4401_v7  ;;  %4299 = vmatmul.msk.bf16.gmra.mxu3 %vm644_vm0, %v4433_v8  ;;  %v2840_v20 = vadd.f32 %v5172_v45, %v2452_v14 }
 0x1ba   : > { %v3287_v16 = vsel %vm3031_vm12, %v2903_v12, %v3159_v13  ;;  %v1096_v17 = vpop.f32.mrf.mxu2  ;;  %v3096_v25 = vmul.f32 0.2, %v2840_v20  ;;  %vm2968_vm13 = vcmp.ge.f32.partialorder %v2840_v20, 0.0 }
 0x1bb   : > { %v4690_v18 = vpack.c.bf16 %v3287_v16, %v3286_v15  ;;  %v2346_v19 = vpop.f32.mrf.mxu3 }
 0x1bc   : > { %v938_v21 = vpop.f32.mrf.mxu0  ;;  %v2516_v23 = vadd.f32 %v2346_v19, %v1096_v17  ;;  %v3224_v33 = vsel %vm2968_vm13, %v2840_v20, %v3096_v25 }
 0x1bd   : > { %4810 = vst [vmem:[%s4991_s8 + $0x188] sm:$0xff] %v4690_v18   ;;  %v2188_v22 = vpop.f32.mrf.mxu1 }
 0x1be   : > { %v2453_v24 = vadd.f32 %v2188_v22, %v938_v21  ;;  %v2904_v27 = vadd.f32 %v5172_v45, %v2516_v23 }
 0x1c0   : > { %v2841_v26 = vadd.f32 %v5172_v45, %v2453_v24  ;;  %v3160_v41 = vmul.f32 0.2, %v2904_v27  ;;  %vm3032_vm15 = vcmp.ge.f32.partialorder %v2904_v27, 0.0 }
 0x1c2   : > { %vm2969_vm14 = vcmp.ge.f32.partialorder %v2841_v26, 0.0  ;;  %v3097_v28 = vmul.f32 0.2, %v2841_v26  ;;  %v1098_v29 = vpop.f32.mrf.mxu2  ;;  %v3288_v46 = vsel %vm3032_vm15, %v2904_v27, %v3160_v41 }
 0x1c3   : > { %v2348_v30 = vpop.f32.mrf.mxu3 }
 0x1c4   : > { %v3225_v34 = vsel %vm2969_vm14, %v2841_v26, %v3097_v28  ;;  %v2517_v35 = vadd.f32 %v2348_v30, %v1098_v29  ;;  %v941_v36 = vpop.f32.mrf.mxu0  ;;  %v4337_v28 = vld [vmem:[%s4900_s27 + $0xe8] sm:$0xff] }
 0x1c5   : > { %v4535_v39 = vpack.c.bf16 %v3225_v34, %v3224_v33  ;;  %v2191_v40 = vpop.f32.mrf.mxu1  ;;  %v4369_v29 = vld [vmem:[%s4900_s27 + $0x1e8] sm:$0xff]  ;;  %v4404_v34 = vld [vmem:[%s4900_s27 + $0xf8] sm:$0xff] }
 0x1c6   : > { %v2905_v42 = vadd.f32 %v5172_v45, %v2517_v35  ;;  %v2454_v44 = vadd.f32 %v2191_v40, %v941_v36  ;;  %v4436_v35 = vld [vmem:[%s4900_s27 + $0x1f8] sm:$0xff] }
 0x1c7   : > { %4779 = vst [vmem:[%s4991_s8 + $0x90] sm:$0xff] %v4535_v39   ;;  %3930 = vmatmul.msk.bf16.gmra.mxu0 %vm644_vm0, %v4335_v31  ;;  %3962 = vmatmul.msk.bf16.gmra.mxu2 %vm644_vm0, %v4367_v32 }
 0x1c8   : > { %vm3033_vm1 = vcmp.ge.f32.partialorder %v2905_v42, 0.0  ;;  %v3161_v43 = vmul.f32 0.2, %v2905_v42  ;;  %4268 = vmatmul.msk.bf16.gmra.mxu1 %vm644_vm0, %v4402_v37  ;;  %4300 = vmatmul.msk.bf16.gmra.mxu3 %vm644_vm0, %v4434_v38  ;;  %v2842_v51 = vadd.f32 %v5172_v45, %v2454_v44 }
 0x1ca   : > { %v3289_v47 = vsel %vm3033_vm1, %v2905_v42, %v3161_v43  ;;  %v1101_v48 = vpop.f32.mrf.mxu2  ;;  %v3098_v56 = vmul.f32 0.2, %v2842_v51  ;;  %vm2970_vm2 = vcmp.ge.f32.partialorder %v2842_v51, 0.0 }
 0x1cb   : > { %v4695_v49 = vpack.c.bf16 %v3289_v47, %v3288_v46  ;;  %v2351_v50 = vpop.f32.mrf.mxu3 }
 0x1cc   : > { %v943_v52 = vpop.f32.mrf.mxu0  ;;  %v2518_v54 = vadd.f32 %v2351_v50, %v1101_v48  ;;  %v3226_v0 = vsel %vm2970_vm2, %v2842_v51, %v3098_v56 }
 0x1cd   : > { %4811 = vst [vmem:[%s4991_s8 + $0x190] sm:$0xff] %v4695_v49   ;;  %v2193_v53 = vpop.f32.mrf.mxu1 }
 0x1ce   : > { %v2455_v55 = vadd.f32 %v2193_v53, %v943_v52  ;;  %v2906_v58 = vadd.f32 %v5172_v45, %v2518_v54 }
 0x1d0   : > { %v2843_v57 = vadd.f32 %v5172_v45, %v2455_v55  ;;  %v3162_v8 = vmul.f32 0.2, %v2906_v58  ;;  %vm3034_vm4 = vcmp.ge.f32.partialorder %v2906_v58, 0.0 }
 0x1d2   : > { %vm2971_vm3 = vcmp.ge.f32.partialorder %v2843_v57, 0.0  ;;  %v3099_v59 = vmul.f32 0.2, %v2843_v57  ;;  %v1103_v60 = vpop.f32.mrf.mxu2  ;;  %v3290_v12 = vsel %vm3034_vm4, %v2906_v58, %v3162_v8 }
 0x1d3   : > { %v2353_v61 = vpop.f32.mrf.mxu3 }
 0x1d4   : > { %v3227_v1 = vsel %vm2971_vm3, %v2843_v57, %v3099_v59  ;;  %v2519_v2 = vadd.f32 %v2353_v61, %v1103_v60  ;;  %v946_v3 = vpop.f32.mrf.mxu0  ;;  %v4338_v59 = vld [vmem:[%s4900_s27 + $0xf0] sm:$0xff] }
 0x1d5   : > { %v4540_v6 = vpack.c.bf16 %v3227_v1, %v3226_v0  ;;  %v2196_v7 = vpop.f32.mrf.mxu1  ;;  %v4370_v60 = vld [vmem:[%s4900_s27 + $0x1f0] sm:$0xff]  ;;  %v4405_v1 = vld [vmem:[%s4900_s27 + $0x100] sm:$0xff] }
 0x1d6   : > { %v2907_v9 = vadd.f32 %v5172_v45, %v2519_v2  ;;  %v2456_v11 = vadd.f32 %v2196_v7, %v946_v3  ;;  %v4437_v2 = vld [vmem:[%s4900_s27 + $0x200] sm:$0xff] }
 0x1d7   : > { %4780 = vst [vmem:[%s4991_s8 + $0x98] sm:$0xff] %v4540_v6   ;;  %3931 = vmatmul.msk.bf16.gmra.mxu0 %vm644_vm0, %v4336_v62  ;;  %3963 = vmatmul.msk.bf16.gmra.mxu2 %vm644_vm0, %v4368_v63 }
 0x1d8   : > { %vm3035_vm5 = vcmp.ge.f32.partialorder %v2907_v9, 0.0  ;;  %v3163_v10 = vmul.f32 0.2, %v2907_v9  ;;  %4269 = vmatmul.msk.bf16.gmra.mxu1 %vm644_vm0, %v4403_v4  ;;  %4301 = vmatmul.msk.bf16.gmra.mxu3 %vm644_vm0, %v4435_v5  ;;  %v2844_v17 = vadd.f32 %v5172_v45, %v2456_v11 }
 0x1da   : > { %v3291_v13 = vsel %vm3035_vm5, %v2907_v9, %v3163_v10  ;;  %v1106_v14 = vpop.f32.mrf.mxu2  ;;  %v3100_v22 = vmul.f32 0.2, %v2844_v17  ;;  %vm2972_vm6 = vcmp.ge.f32.partialorder %v2844_v17, 0.0 }
 0x1db   : > { %v4700_v15 = vpack.c.bf16 %v3291_v13, %v3290_v12  ;;  %v2356_v16 = vpop.f32.mrf.mxu3 }
 0x1dc   : > { %v948_v18 = vpop.f32.mrf.mxu0  ;;  %v2520_v20 = vadd.f32 %v2356_v16, %v1106_v14  ;;  %v3228_v30 = vsel %vm2972_vm6, %v2844_v17, %v3100_v22 }
 0x1dd   : > { %4812 = vst [vmem:[%s4991_s8 + $0x198] sm:$0xff] %v4700_v15   ;;  %v2198_v19 = vpop.f32.mrf.mxu1 }
 0x1de   : > { %v2457_v21 = vadd.f32 %v2198_v19, %v948_v18  ;;  %v2908_v24 = vadd.f32 %v5172_v45, %v2520_v20 }
 0x1e0   : > { %v2845_v23 = vadd.f32 %v5172_v45, %v2457_v21  ;;  %v3164_v38 = vmul.f32 0.2, %v2908_v24  ;;  %vm3036_vm8 = vcmp.ge.f32.partialorder %v2908_v24, 0.0 }
 0x1e2   : > { %vm2973_vm7 = vcmp.ge.f32.partialorder %v2845_v23, 0.0  ;;  %v3101_v25 = vmul.f32 0.2, %v2845_v23  ;;  %v1108_v26 = vpop.f32.mrf.mxu2  ;;  %v3292_v42 = vsel %vm3036_vm8, %v2908_v24, %v3164_v38 }
 0x1e3   : > { %v2358_v27 = vpop.f32.mrf.mxu3 }
 0x1e4   : > { %v3229_v31 = vsel %vm2973_vm7, %v2845_v23, %v3101_v25  ;;  %v2521_v32 = vadd.f32 %v2358_v27, %v1108_v26  ;;  %v951_v33 = vpop.f32.mrf.mxu0  ;;  %v4339_v25 = vld [vmem:[%s4900_s27 + $0xf8] sm:$0xff] }
 0x1e5   : > { %v4545_v36 = vpack.c.bf16 %v3229_v31, %v3228_v30  ;;  %v2201_v37 = vpop.f32.mrf.mxu1  ;;  %v4371_v26 = vld [vmem:[%s4900_s27 + $0x1f8] sm:$0xff]  ;;  %v4406_v31 = vld [vmem:[%s4900_s27 + $0x108] sm:$0xff] }
 0x1e6   : > { %v2909_v39 = vadd.f32 %v5172_v45, %v2521_v32  ;;  %v2458_v41 = vadd.f32 %v2201_v37, %v951_v33  ;;  %v4438_v32 = vld [vmem:[%s4900_s27 + $0x208] sm:$0xff] }
 0x1e7   : > { %4781 = vst [vmem:[%s4991_s8 + $0xa0] sm:$0xff] %v4545_v36   ;;  %3932 = vmatmul.msk.bf16.gmra.mxu0 %vm644_vm0, %v4337_v28  ;;  %3964 = vmatmul.msk.bf16.gmra.mxu2 %vm644_vm0, %v4369_v29 }
 0x1e8   : > { %vm3037_vm9 = vcmp.ge.f32.partialorder %v2909_v39, 0.0  ;;  %v3165_v40 = vmul.f32 0.2, %v2909_v39  ;;  %4270 = vmatmul.msk.bf16.gmra.mxu1 %vm644_vm0, %v4404_v34  ;;  %4302 = vmatmul.msk.bf16.gmra.mxu3 %vm644_vm0, %v4436_v35  ;;  %v2846_v48 = vadd.f32 %v5172_v45, %v2458_v41 }
 0x1ea   : > { %v3293_v43 = vsel %vm3037_vm9, %v2909_v39, %v3165_v40  ;;  %v1111_v44 = vpop.f32.mrf.mxu2  ;;  %v3102_v53 = vmul.f32 0.2, %v2846_v48  ;;  %vm2974_vm10 = vcmp.ge.f32.partialorder %v2846_v48, 0.0 }
 0x1eb   : > { %v4705_v46 = vpack.c.bf16 %v3293_v43, %v3292_v42  ;;  %v2361_v47 = vpop.f32.mrf.mxu3 }
 0x1ec   : > { %v953_v49 = vpop.f32.mrf.mxu0  ;;  %v2522_v51 = vadd.f32 %v2361_v47, %v1111_v44  ;;  %v3230_v61 = vsel %vm2974_vm10, %v2846_v48, %v3102_v53 }
 0x1ed   : > { %4813 = vst [vmem:[%s4991_s8 + $0x1a0] sm:$0xff] %v4705_v46   ;;  %v2203_v50 = vpop.f32.mrf.mxu1 }
 0x1ee   : > { %v2459_v52 = vadd.f32 %v2203_v50, %v953_v49  ;;  %v2910_v55 = vadd.f32 %v5172_v45, %v2522_v51 }
 0x1f0   : > { %v2847_v54 = vadd.f32 %v5172_v45, %v2459_v52  ;;  %v3166_v5 = vmul.f32 0.2, %v2910_v55  ;;  %vm3038_vm12 = vcmp.ge.f32.partialorder %v2910_v55, 0.0 }
 0x1f2   : > { %vm2975_vm11 = vcmp.ge.f32.partialorder %v2847_v54, 0.0  ;;  %v3103_v56 = vmul.f32 0.2, %v2847_v54  ;;  %v1113_v57 = vpop.f32.mrf.mxu2  ;;  %v3294_v9 = vsel %vm3038_vm12, %v2910_v55, %v3166_v5 }
 0x1f3   : > { %v2363_v58 = vpop.f32.mrf.mxu3 }
 0x1f4   : > { %v3231_v62 = vsel %vm2975_vm11, %v2847_v54, %v3103_v56  ;;  %v2523_v63 = vadd.f32 %v2363_v58, %v1113_v57  ;;  %v956_v0 = vpop.f32.mrf.mxu0 }
 0x1f5   : > { %v4550_v3 = vpack.c.bf16 %v3231_v62, %v3230_v61  ;;  %v2206_v4 = vpop.f32.mrf.mxu1 }
 0x1f6   : > { %v2911_v6 = vadd.f32 %v5172_v45, %v2523_v63  ;;  %v2460_v8 = vadd.f32 %v2206_v4, %v956_v0 }
 0x1f7   : > { %4782 = vst [vmem:[%s4991_s8 + $0xa8] sm:$0xff] %v4550_v3   ;;  %3933 = vmatmul.msk.bf16.gmra.mxu0 %vm644_vm0, %v4338_v59  ;;  %3965 = vmatmul.msk.bf16.gmra.mxu2 %vm644_vm0, %v4370_v60 }
 0x1f8   : > { %vm3039_vm13 = vcmp.ge.f32.partialorder %v2911_v6, 0.0  ;;  %v3167_v7 = vmul.f32 0.2, %v2911_v6  ;;  %4271 = vmatmul.msk.bf16.gmra.mxu1 %vm644_vm0, %v4405_v1  ;;  %4303 = vmatmul.msk.bf16.gmra.mxu3 %vm644_vm0, %v4437_v2  ;;  %v2848_v14 = vadd.f32 %v5172_v45, %v2460_v8 }
 0x1fa   : > { %v3295_v10 = vsel %vm3039_vm13, %v2911_v6, %v3167_v7  ;;  %v1116_v11 = vpop.f32.mrf.mxu2  ;;  %v3104_v19 = vmul.f32 0.2, %v2848_v14  ;;  %vm2976_vm14 = vcmp.ge.f32.partialorder %v2848_v14, 0.0 }
 0x1fb   : > { %v4710_v12 = vpack.c.bf16 %v3295_v10, %v3294_v9  ;;  %v2366_v13 = vpop.f32.mrf.mxu3 }
 0x1fc   : > { %v958_v15 = vpop.f32.mrf.mxu0  ;;  %v2524_v17 = vadd.f32 %v2366_v13, %v1116_v11  ;;  %v3232_v27 = vsel %vm2976_vm14, %v2848_v14, %v3104_v19 }
 0x1fd   : > { %4814 = vst [vmem:[%s4991_s8 + $0x1a8] sm:$0xff] %v4710_v12   ;;  %v2208_v16 = vpop.f32.mrf.mxu1 }
 0x1fe   : > { %v2461_v18 = vadd.f32 %v2208_v16, %v958_v15  ;;  %v2912_v21 = vadd.f32 %v5172_v45, %v2524_v17 }
 0x200   : > { %v2849_v20 = vadd.f32 %v5172_v45, %v2461_v18  ;;  %v3168_v35 = vmul.f32 0.2, %v2912_v21  ;;  %vm3040_vm1 = vcmp.ge.f32.partialorder %v2912_v21, 0.0 }
 0x202   : > { %vm2977_vm15 = vcmp.ge.f32.partialorder %v2849_v20, 0.0  ;;  %v3105_v22 = vmul.f32 0.2, %v2849_v20  ;;  %v1118_v23 = vpop.f32.mrf.mxu2  ;;  %v3296_v39 = vsel %vm3040_vm1, %v2912_v21, %v3168_v35 }
 0x203   : > { %v2368_v24 = vpop.f32.mrf.mxu3 }
 0x204   : > { %v3233_v28 = vsel %vm2977_vm15, %v2849_v20, %v3105_v22  ;;  %v2525_v29 = vadd.f32 %v2368_v24, %v1118_v23  ;;  %v961_v30 = vpop.f32.mrf.mxu0 }
 0x205   : > { %v4555_v33 = vpack.c.bf16 %v3233_v28, %v3232_v27  ;;  %v2211_v34 = vpop.f32.mrf.mxu1 }
 0x206   : > { %v2913_v36 = vadd.f32 %v5172_v45, %v2525_v29  ;;  %v2462_v38 = vadd.f32 %v2211_v34, %v961_v30 }
 0x207   : > { %4783 = vst [vmem:[%s4991_s8 + $0xb0] sm:$0xff] %v4555_v33   ;;  %3934 = vmatmul.msk.bf16.gmra.mxu0 %vm644_vm0, %v4339_v25  ;;  %3966 = vmatmul.msk.bf16.gmra.mxu2 %vm644_vm0, %v4371_v26 }
 0x208   : > { %vm3041_vm2 = vcmp.ge.f32.partialorder %v2913_v36, 0.0  ;;  %v3169_v37 = vmul.f32 0.2, %v2913_v36  ;;  %4272 = vmatmul.msk.bf16.gmra.mxu1 %vm644_vm0, %v4406_v31  ;;  %4304 = vmatmul.msk.bf16.gmra.mxu3 %vm644_vm0, %v4438_v32  ;;  %v2850_v44 = vadd.f32 %v5172_v45, %v2462_v38 }
 0x20a   : > { %v3297_v40 = vsel %vm3041_vm2, %v2913_v36, %v3169_v37  ;;  %v1121_v41 = vpop.f32.mrf.mxu2  ;;  %v3106_v50 = vmul.f32 0.2, %v2850_v44  ;;  %vm2978_vm3 = vcmp.ge.f32.partialorder %v2850_v44, 0.0 }
 0x20b   : > { %v4715_v42 = vpack.c.bf16 %v3297_v40, %v3296_v39  ;;  %v2371_v43 = vpop.f32.mrf.mxu3 }
 0x20c   : > { %v963_v46 = vpop.f32.mrf.mxu0  ;;  %v2526_v48 = vadd.f32 %v2371_v43, %v1121_v41  ;;  %v3234_v56 = vsel %vm2978_vm3, %v2850_v44, %v3106_v50 }
 0x20d   : > { %4815 = vst [vmem:[%s4991_s8 + $0x1b0] sm:$0xff] %v4715_v42   ;;  %v2213_v47 = vpop.f32.mrf.mxu1 }
 0x20e   : > { %v2463_v49 = vadd.f32 %v2213_v47, %v963_v46  ;;  %v2914_v52 = vadd.f32 %v5172_v45, %v2526_v48 }
 0x210   : > { %v2851_v51 = vadd.f32 %v5172_v45, %v2463_v49  ;;  %v3170_v62 = vmul.f32 0.2, %v2914_v52  ;;  %vm3042_vm4 = vcmp.ge.f32.partialorder %v2914_v52, 0.0 }
 0x212   : > { %vm2979_vm0 = vcmp.ge.f32.partialorder %v2851_v51, 0.0  ;;  %v3107_v53 = vmul.f32 0.2, %v2851_v51  ;;  %v1123_v54 = vpop.f32.mrf.mxu2  ;;  %v3298_v2 = vsel %vm3042_vm4, %v2914_v52, %v3170_v62 }
 0x213   : > { %v2373_v55 = vpop.f32.mrf.mxu3 }
 0x214   : > { %v3235_v57 = vsel %vm2979_vm0, %v2851_v51, %v3107_v53  ;;  %v2527_v58 = vadd.f32 %v2373_v55, %v1123_v54  ;;  %v966_v59 = vpop.f32.mrf.mxu0 }
 0x215   : > { %v4560_v60 = vpack.c.bf16 %v3235_v57, %v3234_v56  ;;  %v2216_v61 = vpop.f32.mrf.mxu1 }
 0x216   : > { %v2915_v63 = vadd.f32 %v5172_v45, %v2527_v58  ;;  %v2464_v1 = vadd.f32 %v2216_v61, %v966_v59 }
 0x217   : > { %4784 = vst [vmem:[%s4991_s8 + $0xb8] sm:$0xff] %v4560_v60  }
 0x218   : > { %vm3043_vm5 = vcmp.ge.f32.partialorder %v2915_v63, 0.0  ;;  %v3171_v0 = vmul.f32 0.2, %v2915_v63  ;;  %v2852_v7 = vadd.f32 %v5172_v45, %v2464_v1 }
 0x21a   : > { %v3299_v3 = vsel %vm3043_vm5, %v2915_v63, %v3171_v0  ;;  %v1126_v4 = vpop.f32.mrf.mxu2  ;;  %v3108_v12 = vmul.f32 0.2, %v2852_v7  ;;  %vm2980_vm6 = vcmp.ge.f32.partialorder %v2852_v7, 0.0 }
 0x21b   : > { %v4720_v5 = vpack.c.bf16 %v3299_v3, %v3298_v2  ;;  %v2376_v6 = vpop.f32.mrf.mxu3 }
 0x21c   : > { %v968_v8 = vpop.f32.mrf.mxu0  ;;  %v2528_v10 = vadd.f32 %v2376_v6, %v1126_v4  ;;  %v3236_v18 = vsel %vm2980_vm6, %v2852_v7, %v3108_v12 }
 0x21d   : > { %4816 = vst [vmem:[%s4991_s8 + $0x1b8] sm:$0xff] %v4720_v5   ;;  %v2218_v9 = vpop.f32.mrf.mxu1 }
 0x21e   : > { %v2465_v11 = vadd.f32 %v2218_v9, %v968_v8  ;;  %v2916_v14 = vadd.f32 %v5172_v45, %v2528_v10 }
 0x220   : > { %v2853_v13 = vadd.f32 %v5172_v45, %v2465_v11  ;;  %v3172_v24 = vmul.f32 0.2, %v2916_v14  ;;  %vm3044_vm8 = vcmp.ge.f32.partialorder %v2916_v14, 0.0 }
 0x222   : > { %vm2981_vm7 = vcmp.ge.f32.partialorder %v2853_v13, 0.0  ;;  %v3109_v15 = vmul.f32 0.2, %v2853_v13  ;;  %v1128_v16 = vpop.f32.mrf.mxu2  ;;  %v3300_v28 = vsel %vm3044_vm8, %v2916_v14, %v3172_v24  ;;  %v5339_v14 = vld [vmem:[%s5379_s2] ss:$0 sm:$0xff] }
 0x223   : > { %v2378_v17 = vpop.f32.mrf.mxu3 }
 0x224   : > { %v3237_v19 = vsel %vm2981_vm7, %v2853_v13, %v3109_v15  ;;  %v2529_v20 = vadd.f32 %v2378_v17, %v1128_v16  ;;  %v971_v21 = vpop.f32.mrf.mxu0 }
 0x225   : > { %v4565_v22 = vpack.c.bf16 %v3237_v19, %v3236_v18  ;;  %v2221_v23 = vpop.f32.mrf.mxu1 }
 0x226   : > { %v2917_v25 = vadd.f32 %v5172_v45, %v2529_v20  ;;  %v2466_v27 = vadd.f32 %v2221_v23, %v971_v21 }
 0x227   : > { %4785 = vst [vmem:[%s4991_s8 + $0xc0] sm:$0xff] %v4565_v22  }
 0x228   : > { %vm3045_vm9 = vcmp.ge.f32.partialorder %v2917_v25, 0.0  ;;  %v3173_v26 = vmul.f32 0.2, %v2917_v25  ;;  %v2854_v33 = vadd.f32 %v5172_v45, %v2466_v27 }
 0x22a   : > { %v3301_v29 = vsel %vm3045_vm9, %v2917_v25, %v3173_v26  ;;  %v1131_v30 = vpop.f32.mrf.mxu2  ;;  %v3110_v38 = vmul.f32 0.2, %v2854_v33  ;;  %vm2982_vm10 = vcmp.ge.f32.partialorder %v2854_v33, 0.0 }
 0x22b   : > { %v4725_v31 = vpack.c.bf16 %v3301_v29, %v3300_v28  ;;  %v2381_v32 = vpop.f32.mrf.mxu3 }
 0x22c   : > { %v973_v34 = vpop.f32.mrf.mxu0  ;;  %v2530_v36 = vadd.f32 %v2381_v32, %v1131_v30  ;;  %v3238_v44 = vsel %vm2982_vm10, %v2854_v33, %v3110_v38 }
 0x22d   : > { %4817 = vst [vmem:[%s4991_s8 + $0x1c0] sm:$0xff] %v4725_v31   ;;  %v2223_v35 = vpop.f32.mrf.mxu1 }
 0x22e   : > { %v2467_v37 = vadd.f32 %v2223_v35, %v973_v34  ;;  %v2918_v40 = vadd.f32 %v5172_v45, %v2530_v36 }
 0x230   : > { %v2855_v39 = vadd.f32 %v5172_v45, %v2467_v37  ;;  %v3174_v51 = vmul.f32 0.2, %v2918_v40  ;;  %vm3046_vm12 = vcmp.ge.f32.partialorder %v2918_v40, 0.0 }
 0x232   : > { %vm2983_vm11 = vcmp.ge.f32.partialorder %v2855_v39, 0.0  ;;  %v3111_v41 = vmul.f32 0.2, %v2855_v39  ;;  %v1133_v42 = vpop.f32.mrf.mxu2  ;;  %v3302_v55 = vsel %vm3046_vm12, %v2918_v40, %v3174_v51 }
 0x233   : > { %v2383_v43 = vpop.f32.mrf.mxu3 }
 0x234   : > { %v3239_v46 = vsel %vm2983_vm11, %v2855_v39, %v3111_v41  ;;  %v2531_v47 = vadd.f32 %v2383_v43, %v1133_v42  ;;  %v976_v48 = vpop.f32.mrf.mxu0 }
 0x235   : > { %v4570_v49 = vpack.c.bf16 %v3239_v46, %v3238_v44  ;;  %v2226_v50 = vpop.f32.mrf.mxu1 }
 0x236   : > { %v2919_v52 = vadd.f32 %v5172_v45, %v2531_v47  ;;  %v2468_v54 = vadd.f32 %v2226_v50, %v976_v48 }
 0x237   : > { %4786 = vst [vmem:[%s4991_s8 + $0xc8] sm:$0xff] %v4570_v49  }
 0x238   : > { %vm3047_vm13 = vcmp.ge.f32.partialorder %v2919_v52, 0.0  ;;  %v3175_v53 = vmul.f32 0.2, %v2919_v52  ;;  %v2856_v60 = vadd.f32 %v5172_v45, %v2468_v54 }
 0x23a   : > { %v3303_v56 = vsel %vm3047_vm13, %v2919_v52, %v3175_v53  ;;  %v1136_v57 = vpop.f32.mrf.mxu2  ;;  %v3112_v1 = vmul.f32 0.2, %v2856_v60  ;;  %vm2984_vm14 = vcmp.ge.f32.partialorder %v2856_v60, 0.0 }
 0x23b   : > { %v4730_v58 = vpack.c.bf16 %v3303_v56, %v3302_v55  ;;  %v2386_v59 = vpop.f32.mrf.mxu3 }
 0x23c   : > { %v978_v61 = vpop.f32.mrf.mxu0  ;;  %v2532_v63 = vadd.f32 %v2386_v59, %v1136_v57  ;;  %v3240_v7 = vsel %vm2984_vm14, %v2856_v60, %v3112_v1 }
 0x23d   : > { %4818 = vst [vmem:[%s4991_s8 + $0x1c8] sm:$0xff] %v4730_v58   ;;  %v2228_v62 = vpop.f32.mrf.mxu1 }
 0x23e   : > { %v2469_v0 = vadd.f32 %v2228_v62, %v978_v61  ;;  %v2920_v3 = vadd.f32 %v5172_v45, %v2532_v63 }
 0x240   : > { %v2857_v2 = vadd.f32 %v5172_v45, %v2469_v0  ;;  %v3176_v13 = vmul.f32 0.2, %v2920_v3  ;;  %vm3048_vm1 = vcmp.ge.f32.partialorder %v2920_v3, 0.0 }
 0x242   : > { %vm2985_vm15 = vcmp.ge.f32.partialorder %v2857_v2, 0.0  ;;  %v3113_v4 = vmul.f32 0.2, %v2857_v2  ;;  %v1138_v5 = vpop.f32.mrf.mxu2  ;;  %v3304_v17 = vsel %vm3048_vm1, %v2920_v3, %v3176_v13 }
 0x243   : > { %v2388_v6 = vpop.f32.mrf.mxu3 }
 0x244   : > { %v3241_v8 = vsel %vm2985_vm15, %v2857_v2, %v3113_v4  ;;  %v2533_v9 = vadd.f32 %v2388_v6, %v1138_v5  ;;  %v981_v10 = vpop.f32.mrf.mxu0 }
 0x245   : > { %v4575_v11 = vpack.c.bf16 %v3241_v8, %v3240_v7  ;;  %v2231_v12 = vpop.f32.mrf.mxu1 }
 0x246   : > { %v2921_v15 = vadd.f32 %v5339_v14, %v2533_v9  ;;  %v2470_v16 = vadd.f32 %v2231_v12, %v981_v10 }
 0x247   : > { %4787 = vst [vmem:[%s4991_s8 + $0xd0] sm:$0xff] %v4575_v11  }
 0x248   : > { %vm3049_vm2 = vcmp.ge.f32.partialorder %v2921_v15, 0.0  ;;  %v3177_v45 = vmul.f32 0.2, %v2921_v15  ;;  %v2858_v22 = vadd.f32 %v5339_v14, %v2470_v16 }
 0x24a   : > { %v3305_v18 = vsel %vm3049_vm2, %v2921_v15, %v3177_v45  ;;  %v1141_v19 = vpop.f32.mrf.mxu2  ;;  %v3114_v27 = vmul.f32 0.2, %v2858_v22  ;;  %vm2986_vm3 = vcmp.ge.f32.partialorder %v2858_v22, 0.0 }
 0x24b   : > { %v4735_v20 = vpack.c.bf16 %v3305_v18, %v3304_v17  ;;  %v2391_v21 = vpop.f32.mrf.mxu3 }
 0x24c   : > { %v983_v23 = vpop.f32.mrf.mxu0  ;;  %v2534_v25 = vadd.f32 %v2391_v21, %v1141_v19  ;;  %v3242_v33 = vsel %vm2986_vm3, %v2858_v22, %v3114_v27 }
 0x24d   : > { %4819 = vst [vmem:[%s4991_s8 + $0x1d0] sm:$0xff] %v4735_v20   ;;  %v2233_v24 = vpop.f32.mrf.mxu1 }
 0x24e   : > { %v2471_v26 = vadd.f32 %v2233_v24, %v983_v23  ;;  %v2922_v29 = vadd.f32 %v5339_v14, %v2534_v25 }
 0x250   : > { %v2859_v28 = vadd.f32 %v5339_v14, %v2471_v26  ;;  %v3178_v39 = vmul.f32 0.2, %v2922_v29  ;;  %vm3050_vm4 = vcmp.ge.f32.partialorder %v2922_v29, 0.0 }
 0x252   : > { %vm2987_vm0 = vcmp.ge.f32.partialorder %v2859_v28, 0.0  ;;  %v3115_v30 = vmul.f32 0.2, %v2859_v28  ;;  %v1143_v31 = vpop.f32.mrf.mxu2  ;;  %v3306_v43 = vsel %vm3050_vm4, %v2922_v29, %v3178_v39 }
 0x253   : > { %v2393_v32 = vpop.f32.mrf.mxu3 }
 0x254   : > { %v3243_v34 = vsel %vm2987_vm0, %v2859_v28, %v3115_v30  ;;  %v2535_v35 = vadd.f32 %v2393_v32, %v1143_v31  ;;  %v986_v36 = vpop.f32.mrf.mxu0 }
 0x255   : > { %v4580_v37 = vpack.c.bf16 %v3243_v34, %v3242_v33  ;;  %v2236_v38 = vpop.f32.mrf.mxu1 }
 0x256   : > { %v2923_v40 = vadd.f32 %v5339_v14, %v2535_v35  ;;  %v2472_v42 = vadd.f32 %v2236_v38, %v986_v36 }
 0x257   : > { %4788 = vst [vmem:[%s4991_s8 + $0xd8] sm:$0xff] %v4580_v37  }
 0x258   : > { %vm3051_vm5 = vcmp.ge.f32.partialorder %v2923_v40, 0.0  ;;  %v3179_v41 = vmul.f32 0.2, %v2923_v40  ;;  %v2860_v49 = vadd.f32 %v5339_v14, %v2472_v42 }
 0x25a   : > { %v3307_v44 = vsel %vm3051_vm5, %v2923_v40, %v3179_v41  ;;  %v1146_v46 = vpop.f32.mrf.mxu2  ;;  %v3116_v54 = vmul.f32 0.2, %v2860_v49  ;;  %vm2988_vm6 = vcmp.ge.f32.partialorder %v2860_v49, 0.0 }
 0x25b   : > { %v4740_v47 = vpack.c.bf16 %v3307_v44, %v3306_v43  ;;  %v2396_v48 = vpop.f32.mrf.mxu3 }
 0x25c   : > { %v988_v50 = vpop.f32.mrf.mxu0  ;;  %v2536_v52 = vadd.f32 %v2396_v48, %v1146_v46  ;;  %v3244_v60 = vsel %vm2988_vm6, %v2860_v49, %v3116_v54 }
 0x25d   : > { %4820 = vst [vmem:[%s4991_s8 + $0x1d8] sm:$0xff] %v4740_v47   ;;  %v2238_v51 = vpop.f32.mrf.mxu1 }
 0x25e   : > { %v2473_v53 = vadd.f32 %v2238_v51, %v988_v50  ;;  %v2924_v56 = vadd.f32 %v5339_v14, %v2536_v52 }
 0x260   : > { %v2861_v55 = vadd.f32 %v5339_v14, %v2473_v53  ;;  %v3180_v2 = vmul.f32 0.2, %v2924_v56  ;;  %vm3052_vm8 = vcmp.ge.f32.partialorder %v2924_v56, 0.0 }
 0x262   : > { %vm2989_vm7 = vcmp.ge.f32.partialorder %v2861_v55, 0.0  ;;  %v3117_v57 = vmul.f32 0.2, %v2861_v55  ;;  %v1148_v58 = vpop.f32.mrf.mxu2  ;;  %v3308_v6 = vsel %vm3052_vm8, %v2924_v56, %v3180_v2 }
 0x263   : > { %v2398_v59 = vpop.f32.mrf.mxu3 }
 0x264   : > { %v3245_v61 = vsel %vm2989_vm7, %v2861_v55, %v3117_v57  ;;  %v2537_v62 = vadd.f32 %v2398_v59, %v1148_v58  ;;  %v991_v63 = vpop.f32.mrf.mxu0 }
 0x265   : > { %v4585_v0 = vpack.c.bf16 %v3245_v61, %v3244_v60  ;;  %v2241_v1 = vpop.f32.mrf.mxu1 }
 0x266   : > { %v2925_v3 = vadd.f32 %v5339_v14, %v2537_v62  ;;  %v2474_v5 = vadd.f32 %v2241_v1, %v991_v63 }
 0x267   : > { %4789 = vst [vmem:[%s4991_s8 + $0xe0] sm:$0xff] %v4585_v0  }
 0x268   : > { %vm3053_vm9 = vcmp.ge.f32.partialorder %v2925_v3, 0.0  ;;  %v3181_v4 = vmul.f32 0.2, %v2925_v3  ;;  %v2862_v11 = vadd.f32 %v5339_v14, %v2474_v5 }
 0x26a   : > { %v3309_v7 = vsel %vm3053_vm9, %v2925_v3, %v3181_v4  ;;  %v1151_v8 = vpop.f32.mrf.mxu2  ;;  %v3118_v16 = vmul.f32 0.2, %v2862_v11  ;;  %vm2990_vm10 = vcmp.ge.f32.partialorder %v2862_v11, 0.0 }
 0x26b   : > { %v4745_v9 = vpack.c.bf16 %v3309_v7, %v3308_v6  ;;  %v2401_v10 = vpop.f32.mrf.mxu3 }
 0x26c   : > { %v993_v12 = vpop.f32.mrf.mxu0  ;;  %v2538_v15 = vadd.f32 %v2401_v10, %v1151_v8  ;;  %v3246_v22 = vsel %vm2990_vm10, %v2862_v11, %v3118_v16 }
 0x26d   : > { %4821 = vst [vmem:[%s4991_s8 + $0x1e0] sm:$0xff] %v4745_v9   ;;  %v2243_v13 = vpop.f32.mrf.mxu1 }
 0x26e   : > { %v2475_v45 = vadd.f32 %v2243_v13, %v993_v12  ;;  %v2926_v18 = vadd.f32 %v5339_v14, %v2538_v15 }
 0x270   : > { %v2863_v17 = vadd.f32 %v5339_v14, %v2475_v45  ;;  %v3182_v28 = vmul.f32 0.2, %v2926_v18  ;;  %vm3054_vm12 = vcmp.ge.f32.partialorder %v2926_v18, 0.0 }
 0x272   : > { %vm2991_vm11 = vcmp.ge.f32.partialorder %v2863_v17, 0.0  ;;  %v3119_v19 = vmul.f32 0.2, %v2863_v17  ;;  %v1153_v20 = vpop.f32.mrf.mxu2  ;;  %v3310_v32 = vsel %vm3054_vm12, %v2926_v18, %v3182_v28 }
 0x273   : > { %v2403_v21 = vpop.f32.mrf.mxu3 }
 0x274   : > { %v3247_v23 = vsel %vm2991_vm11, %v2863_v17, %v3119_v19  ;;  %v2539_v24 = vadd.f32 %v2403_v21, %v1153_v20  ;;  %v996_v25 = vpop.f32.mrf.mxu0 }
 0x275   : > { %v4590_v26 = vpack.c.bf16 %v3247_v23, %v3246_v22  ;;  %v2246_v27 = vpop.f32.mrf.mxu1 }
 0x276   : > { %v2927_v29 = vadd.f32 %v5339_v14, %v2539_v24  ;;  %v2476_v31 = vadd.f32 %v2246_v27, %v996_v25 }
 0x277   : > { %4790 = vst [vmem:[%s4991_s8 + $0xe8] sm:$0xff] %v4590_v26  }
 0x278   : > { %vm3055_vm13 = vcmp.ge.f32.partialorder %v2927_v29, 0.0  ;;  %v3183_v30 = vmul.f32 0.2, %v2927_v29  ;;  %v2864_v37 = vadd.f32 %v5339_v14, %v2476_v31 }
 0x27a   : > { %v3311_v33 = vsel %vm3055_vm13, %v2927_v29, %v3183_v30  ;;  %v1156_v34 = vpop.f32.mrf.mxu2  ;;  %v3120_v42 = vmul.f32 0.2, %v2864_v37  ;;  %vm2992_vm14 = vcmp.ge.f32.partialorder %v2864_v37, 0.0 }
 0x27b   : > { %v4750_v35 = vpack.c.bf16 %v3311_v33, %v3310_v32  ;;  %v2406_v36 = vpop.f32.mrf.mxu3 }
 0x27c   : > { %v998_v38 = vpop.f32.mrf.mxu0  ;;  %v2540_v40 = vadd.f32 %v2406_v36, %v1156_v34  ;;  %v3248_v49 = vsel %vm2992_vm14, %v2864_v37, %v3120_v42 }
 0x27d   : > { %4822 = vst [vmem:[%s4991_s8 + $0x1e8] sm:$0xff] %v4750_v35   ;;  %v2248_v39 = vpop.f32.mrf.mxu1 }
 0x27e   : > { %v2477_v41 = vadd.f32 %v2248_v39, %v998_v38  ;;  %v2928_v44 = vadd.f32 %v5339_v14, %v2540_v40 }
 0x280   : > { %v2865_v43 = vadd.f32 %v5339_v14, %v2477_v41  ;;  %v3184_v55 = vmul.f32 0.2, %v2928_v44  ;;  %vm3056_vm1 = vcmp.ge.f32.partialorder %v2928_v44, 0.0 }
 0x282   : > { %vm2993_vm15 = vcmp.ge.f32.partialorder %v2865_v43, 0.0  ;;  %v3121_v46 = vmul.f32 0.2, %v2865_v43  ;;  %v1158_v47 = vpop.f32.mrf.mxu2  ;;  %v3312_v59 = vsel %vm3056_vm1, %v2928_v44, %v3184_v55 }
 0x283   : > { %v2408_v48 = vpop.f32.mrf.mxu3 }
 0x284   : > { %v3249_v50 = vsel %vm2993_vm15, %v2865_v43, %v3121_v46  ;;  %v2541_v51 = vadd.f32 %v2408_v48, %v1158_v47  ;;  %v1001_v52 = vpop.f32.mrf.mxu0 }
 0x285   : > { %v4595_v53 = vpack.c.bf16 %v3249_v50, %v3248_v49  ;;  %v2251_v54 = vpop.f32.mrf.mxu1 }
 0x286   : > { %v2929_v56 = vadd.f32 %v5339_v14, %v2541_v51  ;;  %v2478_v58 = vadd.f32 %v2251_v54, %v1001_v52 }
 0x287   : > { %4791 = vst [vmem:[%s4991_s8 + $0xf0] sm:$0xff] %v4595_v53  }
 0x288   : > { %vm3057_vm2 = vcmp.ge.f32.partialorder %v2929_v56, 0.0  ;;  %v3185_v57 = vmul.f32 0.2, %v2929_v56  ;;  %v2866_v0 = vadd.f32 %v5339_v14, %v2478_v58 }
 0x28a   : > { %v3313_v60 = vsel %vm3057_vm2, %v2929_v56, %v3185_v57  ;;  %v1161_v61 = vpop.f32.mrf.mxu2  ;;  %v3122_v5 = vmul.f32 0.2, %v2866_v0  ;;  %vm2994_vm3 = vcmp.ge.f32.partialorder %v2866_v0, 0.0 }
 0x28b   : > { %v4755_v62 = vpack.c.bf16 %v3313_v60, %v3312_v59  ;;  %v2411_v63 = vpop.f32.mrf.mxu3 }
 0x28c   : > { %v1003_v1 = vpop.f32.mrf.mxu0  ;;  %v2542_v3 = vadd.f32 %v2411_v63, %v1161_v61  ;;  %v3250_v11 = vsel %vm2994_vm3, %v2866_v0, %v3122_v5 }
 0x28d   : > { %4823 = vst [vmem:[%s4991_s8 + $0x1f0] sm:$0xff] %v4755_v62   ;;  %v2253_v2 = vpop.f32.mrf.mxu1 }
 0x28e   : > { %v2479_v4 = vadd.f32 %v2253_v2, %v1003_v1  ;;  %v2930_v7 = vadd.f32 %v5339_v14, %v2542_v3 }
 0x290   : > { %v2867_v6 = vadd.f32 %v5339_v14, %v2479_v4  ;;  %v3186_v45 = vmul.f32 0.2, %v2930_v7  ;;  %vm3058_vm4 = vcmp.ge.f32.partialorder %v2930_v7, 0.0 }
 0x292   : > { %vm2995_vm0 = vcmp.ge.f32.partialorder %v2867_v6, 0.0  ;;  %v3123_v8 = vmul.f32 0.2, %v2867_v6  ;;  %v1163_v9 = vpop.f32.mrf.mxu2  ;;  %v3314_v18 = vsel %vm3058_vm4, %v2930_v7, %v3186_v45 }
 0x293   : > { %v2413_v10 = vpop.f32.mrf.mxu3 }
 0x294   : > { %v3251_v12 = vsel %vm2995_vm0, %v2867_v6, %v3123_v8  ;;  %v2543_v13 = vadd.f32 %v2413_v10, %v1163_v9 }
 0x295   : > { %v4600_v15 = vpack.c.bf16 %v3251_v12, %v3250_v11 }
 0x296   : > { %v2931_v16 = vadd.f32 %v5339_v14, %v2543_v13 }
 0x297   : > { %4792 = vst [vmem:[%s4991_s8 + $0xf8] sm:$0xff] %v4600_v15  }
 0x298   : > { %vm3059_vm5 = vcmp.ge.f32.partialorder %v2931_v16, 0.0  ;;  %v3187_v17 = vmul.f32 0.2, %v2931_v16 }
 0x29a   : > { %v3315_v19 = vsel %vm3059_vm5, %v2931_v16, %v3187_v17 }
 0x29b   : > { %v4760_v20 = vpack.c.bf16 %v3315_v19, %v3314_v18 }
 0x29d   : > { %4824 = vst [vmem:[%s4991_s8 + $0x1f8] sm:$0xff] %v4760_v20  }
 0x29e PF: > { %s13_s12 = sadd.s32 1, %s4849_s12  }
 0x29f   : > { %p10_p4 = scmp.ge.s32.totalorder %s13_s12, 4  }
 0x2a1   :  { %12 = sbr.rel (!%p10_p4) target bundleno = 1 (0x1), region = 63 }

// kernel: _patchgan_forward.7
= control target key start
LH: loop header
LB: loop body
LE: loop exit
PB: predicated region body
PF: predicated region fallthrough
CT: control target
= control target key end

     0   :  { %s1626_s15 = smov 0   ;;  %s1916_s0 = inlined_call_operand.vmem [shape: bf16[2,272,64], index: 0, kind: input, shape index: {}]   ;;  %s1917_s1 = inlined_call_operand.vmem [shape: bf16[2,64,128], index: 1, kind: input, shape index: {}]   ;;  %s1918_s2 = inlined_call_operand.vmem [shape: f32[1,128], index: 2, kind: input, shape index: {}]   ;;  %s1919_s3 = inlined_call_operand.vmem [shape: bf16[2,256,128], index: 3, kind: output, shape index: {0}]   ;;  %s1920_s4 = inlined_call_operand.vmem [shape: f32[2,2,128], index: 4, kind: output, shape index: {1}]  }
   0x1 LB: > { %s1228_s16 = sadd.s32 4294967295, %s1599_s15   ;;  %p1232_p0 = scmp.ge.s32.totalorder %s1599_s15, 1  ;;  %s1599_s15 = sphi %s1626_s15, %s15_s15  }
   0x2   : > { %p165_p1 = scmp.lt.s32.totalorder %s1599_s15, 3 }
   0x4   : > { %p166_p2 = pnand %p1232_p0, %p165_p1 }
   0x5   : > { %p195_p3 = scmp.lt.s32.totalorder (!%p166_p2), %s1228_s16, 1 }
   0x6   : > { %169 = sbr.rel (%p166_p2) target bundleno = 327 (0x147), region = 32 }
   0xb   : > { %v1459_v0 = vld [vmem:[%s1917_s1 + $0x18] sm:$0xff]  ;;  %v1458_v2 = vld [vmem:[%s1917_s1 + $0x10] sm:$0xff]  ;;  %s1922_s16 = smov (!%p195_p3, %s1228_s16), 1  ;;  %v1457_v4 = vld [vmem:[%s1917_s1 + $0x8] sm:$0xff]  ;;  %vm354_vm0 = vcmask 523264  }
   0xc   : > { %v1479_v1 = vld [vmem:[%s1917_s1 + $0x38] sm:$0xff]  ;;  %407 = vmatpush.bf16.msra.mxu0 %v1459_v0  ;;  %v1478_v3 = vld [vmem:[%s1917_s1 + $0x30] sm:$0xff]  ;;  %1575 = vmatpush.bf16.msra.mxu2 %v1459_v0  ;;  %v1477_v5 = vld [vmem:[%s1917_s1 + $0x28] sm:$0xff]  ;;  %s1583_s29 = smul.u32 136, %s1922_s16  ;;  %s1439_s13 = sshll.u32 %s1922_s16, 7 }
   0xd   : > { %753 = vmatpush.bf16.msra.mxu1 %v1479_v1  ;;  %1579 = vmatpush.bf16.msra.mxu3 %v1479_v1  ;;  %v1456_v6 = vld [vmem:[%s1917_s1] sm:$0xff]  ;;  %s1741_s18 = scalar_lea.vmem %s1919_s3, %s1439_s13  ;;  %s1236_s19 = sshll.u32 %s1922_s16, 1 }
   0xe   : > { %v1476_v7 = vld [vmem:[%s1917_s1 + $0x20] sm:$0xff]  ;;  %s1664_s10 = scalar_lea.vmem %s1916_s0, %s1583_s29  ;;  %s208_s22 = scalar_lea.vmem %s1920_s4, %s1236_s19 }
   0xf   : > { %v1440_v8 = vld [vmem:[%s1664_s10] sm:$0xff]  ;;  %v1460_v9 = vld [vmem:[%s1664_s10 + $0x8] sm:$0xff]  ;;  %v1461_v13 = vld [vmem:[%s1664_s10 + $0x10] sm:$0xff] }
  0x10   : > { %408 = vmatpush.bf16.msra.mxu0 %v1458_v2  ;;  %1576 = vmatpush.bf16.msra.mxu2 %v1458_v2  ;;  %v1448_v10 = vld [vmem:[%s1664_s10 + $0x40] sm:$0xff]  ;;  %v1468_v11 = vld [vmem:[%s1664_s10 + $0x48] sm:$0xff]  ;;  %v1469_v15 = vld [vmem:[%s1664_s10 + $0x50] sm:$0xff] }
  0x11   : > { %754 = vmatpush.bf16.msra.mxu1 %v1478_v3  ;;  %1580 = vmatpush.bf16.msra.mxu3 %v1478_v3  ;;  %v1441_v12 = vld [vmem:[%s1664_s10 + $0x8] sm:$0xff]  ;;  %v1442_v16 = vld [vmem:[%s1664_s10 + $0x10] sm:$0xff]  ;;  %v1462_v17 = vld [vmem:[%s1664_s10 + $0x18] sm:$0xff] }
  0x12   : > { %v1449_v14 = vld [vmem:[%s1664_s10 + $0x48] sm:$0xff]  ;;  %v1450_v18 = vld [vmem:[%s1664_s10 + $0x50] sm:$0xff]  ;;  %v1470_v19 = vld [vmem:[%s1664_s10 + $0x58] sm:$0xff] }
  0x13   : > { %v1443_v20 = vld [vmem:[%s1664_s10 + $0x18] sm:$0xff]  ;;  %v1463_v21 = vld [vmem:[%s1664_s10 + $0x20] sm:$0xff]  ;;  %v1464_v25 = vld [vmem:[%s1664_s10 + $0x28] sm:$0xff] }
  0x14   : > { %409 = vmatpush.bf16.msra.mxu0 %v1457_v4  ;;  %1577 = vmatpush.bf16.msra.mxu2 %v1457_v4  ;;  %v1451_v22 = vld [vmem:[%s1664_s10 + $0x58] sm:$0xff]  ;;  %v1471_v23 = vld [vmem:[%s1664_s10 + $0x60] sm:$0xff]  ;;  %v1472_v27 = vld [vmem:[%s1664_s10 + $0x68] sm:$0xff] }
  0x15   : > { %755 = vmatpush.bf16.msra.mxu1 %v1477_v5  ;;  %1581 = vmatpush.bf16.msra.mxu3 %v1477_v5  ;;  %v1444_v24 = vld [vmem:[%s1664_s10 + $0x20] sm:$0xff]  ;;  %v1445_v28 = vld [vmem:[%s1664_s10 + $0x28] sm:$0xff]  ;;  %v1465_v29 = vld [vmem:[%s1664_s10 + $0x30] sm:$0xff] }
  0x16   : > { %v1452_v26 = vld [vmem:[%s1664_s10 + $0x60] sm:$0xff]  ;;  %v1453_v30 = vld [vmem:[%s1664_s10 + $0x68] sm:$0xff]  ;;  %v1473_v31 = vld [vmem:[%s1664_s10 + $0x70] sm:$0xff] }
  0x17   : > { %v1446_v32 = vld [vmem:[%s1664_s10 + $0x30] sm:$0xff]  ;;  %v1466_v33 = vld [vmem:[%s1664_s10 + $0x38] sm:$0xff]  ;;  %v1467_v37 = vld [vmem:[%s1664_s10 + $0x40] sm:$0xff] }
  0x18   : > { %410 = vmatpush.bf16.msra.mxu0 %v1456_v6  ;;  %1578 = vmatpush.bf16.msra.mxu2 %v1456_v6  ;;  %v1454_v34 = vld [vmem:[%s1664_s10 + $0x70] sm:$0xff]  ;;  %v1474_v35 = vld [vmem:[%s1664_s10 + $0x78] sm:$0xff]  ;;  %v1475_v39 = vld [vmem:[%s1664_s10 + $0x80] sm:$0xff] }
  0x19   : > { %756 = vmatpush.bf16.msra.mxu1 %v1476_v7  ;;  %1582 = vmatpush.bf16.msra.mxu3 %v1476_v7  ;;  %v1447_v36 = vld [vmem:[%s1664_s10 + $0x38] sm:$0xff]  ;;  %v1733_v43 = vld [vmem:[%s1918_s2] ss:$0 sm:$0xff] }
  0x1a   : > { %v1455_v38 = vld [vmem:[%s1664_s10 + $0x78] sm:$0xff] }
  0x1b   : > { %1317 = vmatmul.msk.bf16.vlgmr.msra.gmra.mxu0 %vm354_vm0, %v1440_v8  ;;  %1325 = vmatmul.msk.bf16.vlgmr.msra.gmra.mxu2 %vm354_vm0, %v1448_v10 }
  0x1c   : > { %1421 = vmatmul.msk.bf16.vlgmr.msra.gmra.mxu1 %vm354_vm0, %v1460_v9  ;;  %1429 = vmatmul.msk.bf16.vlgmr.msra.gmra.mxu3 %vm354_vm0, %v1468_v11 }
  0x2b   : > { %1318 = vmatmul.msk.bf16.gmra.mxu0 %vm354_vm0, %v1441_v12  ;;  %1326 = vmatmul.msk.bf16.gmra.mxu2 %vm354_vm0, %v1449_v14 }
  0x2c   : > { %1422 = vmatmul.msk.bf16.gmra.mxu1 %vm354_vm0, %v1461_v13  ;;  %1430 = vmatmul.msk.bf16.gmra.mxu3 %vm354_vm0, %v1469_v15 }
  0x3b   : > { %1319 = vmatmul.msk.bf16.gmra.mxu0 %vm354_vm0, %v1442_v16  ;;  %1327 = vmatmul.msk.bf16.gmra.mxu2 %vm354_vm0, %v1450_v18 }
  0x3c   : > { %1423 = vmatmul.msk.bf16.gmra.mxu1 %vm354_vm0, %v1462_v17  ;;  %1431 = vmatmul.msk.bf16.gmra.mxu3 %vm354_vm0, %v1470_v19 }
  0x4b   : > { %1320 = vmatmul.msk.bf16.gmra.mxu0 %vm354_vm0, %v1443_v20  ;;  %1328 = vmatmul.msk.bf16.gmra.mxu2 %vm354_vm0, %v1451_v22 }
  0x4c   : > { %1424 = vmatmul.msk.bf16.gmra.mxu1 %vm354_vm0, %v1463_v21  ;;  %1432 = vmatmul.msk.bf16.gmra.mxu3 %vm354_vm0, %v1471_v23 }
  0x5b   : > { %1321 = vmatmul.msk.bf16.gmra.mxu0 %vm354_vm0, %v1444_v24  ;;  %1329 = vmatmul.msk.bf16.gmra.mxu2 %vm354_vm0, %v1452_v26 }
  0x5c   : > { %1425 = vmatmul.msk.bf16.gmra.mxu1 %vm354_vm0, %v1464_v25  ;;  %1433 = vmatmul.msk.bf16.gmra.mxu3 %vm354_vm0, %v1472_v27 }
  0x6b   : > { %1322 = vmatmul.msk.bf16.gmra.mxu0 %vm354_vm0, %v1445_v28  ;;  %1330 = vmatmul.msk.bf16.gmra.mxu2 %vm354_vm0, %v1453_v30 }
  0x6c   : > { %1426 = vmatmul.msk.bf16.gmra.mxu1 %vm354_vm0, %v1465_v29  ;;  %1434 = vmatmul.msk.bf16.gmra.mxu3 %vm354_vm0, %v1473_v31 }
  0x7b   : > { %1323 = vmatmul.msk.bf16.gmra.mxu0 %vm354_vm0, %v1446_v32  ;;  %1331 = vmatmul.msk.bf16.gmra.mxu2 %vm354_vm0, %v1454_v34 }
  0x7c   : > { %1427 = vmatmul.msk.bf16.gmra.mxu1 %vm354_vm0, %v1466_v33  ;;  %1435 = vmatmul.msk.bf16.gmra.mxu3 %vm354_vm0, %v1474_v35 }
  0x8b   : > { %1324 = vmatmul.msk.bf16.gmra.mxu0 %vm354_vm0, %v1447_v36  ;;  %1332 = vmatmul.msk.bf16.gmra.mxu2 %vm354_vm0, %v1455_v38 }
  0x8c   : > { %1428 = vmatmul.msk.bf16.gmra.mxu1 %vm354_vm0, %v1467_v37  ;;  %1436 = vmatmul.msk.bf16.gmra.mxu3 %vm354_vm0, %v1475_v39 }
  0x98   : > { %v412_v40 = vpop.f32.mrf.mxu0 }
  0x99   : > { %v758_v41 = vpop.f32.mrf.mxu1 }
  0x9a   : > { %v838_v42 = vadd.f32 %v758_v41, %v412_v40 }
  0x9c   : > { %v938_v48 = vadd.f32 %v1733_v43, %v838_v42 }
  0x9e   : > { %v452_v44 = vpop.f32.mrf.mxu2  ;;  %v1072_v52 = vmul.f32 %v938_v48, %v938_v48 }
  0x9f   : > { %v798_v45 = vpop.f32.mrf.mxu3 }
  0xa0   : > { %v414_v46 = vpop.f32.mrf.mxu0  ;;  %v854_v51 = vadd.f32 %v798_v45, %v452_v44 }
  0xa1   : > { %v760_v47 = vpop.f32.mrf.mxu1 }
  0xa2   : > { %v839_v49 = vadd.f32 %v760_v47, %v414_v46  ;;  %v1745_v61 = vadd.f32 %v1733_v43, %v854_v51 }
  0xa4   : > { %v939_v50 = vadd.f32 %v1733_v43, %v839_v49 }
  0xa6   : > { %v1483_v53 = vpack.c.bf16 %v939_v50, %v938_v48  ;;  %v1034_v54 = vadd.f32 %v939_v50, %v938_v48  ;;  %v1073_v55 = vmul.f32 %v939_v50, %v939_v50  ;;  %v454_v57 = vpop.f32.mrf.mxu2 }
  0xa7   : > { %v800_v58 = vpop.f32.mrf.mxu3 }
  0xa8   : > { %1484 = vst [vmem:[%s1741_s18] sm:$0xff] %v1483_v53   ;;  %v1104_v56 = vadd.f32 %v1073_v55, %v1072_v52  ;;  %v417_v59 = vpop.f32.mrf.mxu0  ;;  %v855_v62 = vadd.f32 %v800_v58, %v454_v57 }
  0xa9   : > { %v763_v60 = vpop.f32.mrf.mxu1 }
  0xaa   : > { %v840_v63 = vadd.f32 %v763_v60, %v417_v59  ;;  %v1748_v0 = vadd.f32 %v1733_v43, %v855_v62 }
  0xac   : > { %v940_v1 = vadd.f32 %v1733_v43, %v840_v63  ;;  %v1523_v2 = vpack.c.bf16 %v1748_v0, %v1745_v61 }
  0xae   : > { %v1035_v3 = vadd.f32 %v1034_v54, %v940_v1  ;;  %v1074_v4 = vmul.f32 %v940_v1, %v940_v1  ;;  %1567 = vst [vmem:[%s1741_s18 + $0x40] sm:$0xff] %v1523_v2   ;;  %v457_v6 = vpop.f32.mrf.mxu2 }
  0xaf   : > { %v803_v7 = vpop.f32.mrf.mxu3 }
  0xb0   : > { %v1105_v5 = vadd.f32 %v1104_v56, %v1074_v4  ;;  %v419_v8 = vpop.f32.mrf.mxu0  ;;  %v856_v12 = vadd.f32 %v803_v7, %v457_v6 }
  0xb1   : > { %v765_v9 = vpop.f32.mrf.mxu1 }
  0xb2   : > { %v841_v10 = vadd.f32 %v765_v9, %v419_v8  ;;  %v1761_v21 = vadd.f32 %v1733_v43, %v856_v12 }
  0xb4   : > { %v941_v11 = vadd.f32 %v1733_v43, %v841_v10 }
  0xb6   : > { %v1488_v13 = vpack.c.bf16 %v941_v11, %v940_v1  ;;  %v1755_v14 = vadd.f32 %v1035_v3, %v941_v11  ;;  %v1075_v15 = vmul.f32 %v941_v11, %v941_v11  ;;  %v459_v17 = vpop.f32.mrf.mxu2 }
  0xb7   : > { %v805_v18 = vpop.f32.mrf.mxu3 }
  0xb8   : > { %1560 = vst [vmem:[%s1741_s18 + $0x8] sm:$0xff] %v1488_v13   ;;  %v1758_v16 = vadd.f32 %v1105_v5, %v1075_v15  ;;  %v422_v19 = vpop.f32.mrf.mxu0  ;;  %v857_v22 = vadd.f32 %v805_v18, %v459_v17 }
  0xb9   : > { %v768_v20 = vpop.f32.mrf.mxu1 }
  0xba   : > { %v1764_v23 = vadd.f32 %v1733_v43, %v857_v22  ;;  %v842_v25 = vadd.f32 %v768_v20, %v422_v19 }
  0xbc   : > { %v1528_v24 = vpack.c.bf16 %v1764_v23, %v1761_v21  ;;  %v1770_v31 = vadd.f32 %v1733_v43, %v842_v25 }
  0xbe   : > { %1568 = vst [vmem:[%s1741_s18 + $0x48] sm:$0xff] %v1528_v24   ;;  %v462_v26 = vpop.f32.mrf.mxu2 }
  0xbf   : > { %v808_v27 = vpop.f32.mrf.mxu3 }
  0xc0   : > { %v424_v28 = vpop.f32.mrf.mxu0  ;;  %v858_v33 = vadd.f32 %v808_v27, %v462_v26 }
  0xc1   : > { %v770_v29 = vpop.f32.mrf.mxu1 }
  0xc2   : > { %v843_v30 = vadd.f32 %v770_v29, %v424_v28  ;;  %v1779_v39 = vadd.f32 %v1733_v43, %v858_v33 }
  0xc4   : > { %v1773_v32 = vadd.f32 %v1733_v43, %v843_v30 }
  0xc6   : > { %v1493_v34 = vpack.c.bf16 %v1773_v32, %v1770_v31  ;;  %v464_v35 = vpop.f32.mrf.mxu2 }
  0xc7   : > { %v810_v36 = vpop.f32.mrf.mxu3 }
  0xc8   : > { %1561 = vst [vmem:[%s1741_s18 + $0x10] sm:$0xff] %v1493_v34   ;;  %v427_v37 = vpop.f32.mrf.mxu0  ;;  %v859_v40 = vadd.f32 %v810_v36, %v464_v35 }
  0xc9   : > { %v773_v38 = vpop.f32.mrf.mxu1 }
  0xca   : > { %v1782_v41 = vadd.f32 %v1733_v43, %v859_v40  ;;  %v844_v44 = vadd.f32 %v773_v38, %v427_v37 }
  0xcc   : > { %v1533_v42 = vpack.c.bf16 %v1782_v41, %v1779_v39  ;;  %v1788_v50 = vadd.f32 %v1733_v43, %v844_v44  ;;  %v1076_v44 = vmul.f32 %v1770_v31, %v1770_v31 }
  0xce   : > { %1569 = vst [vmem:[%s1741_s18 + $0x50] sm:$0xff] %v1533_v42   ;;  %v467_v45 = vpop.f32.mrf.mxu2 }
  0xcf   : > { %v813_v46 = vpop.f32.mrf.mxu3 }
  0xd0   : > { %v429_v47 = vpop.f32.mrf.mxu0  ;;  %v860_v52 = vadd.f32 %v813_v46, %v467_v45  ;;  %v1077_v46 = vmul.f32 %v1773_v32, %v1773_v32 }
  0xd1   : > { %v775_v48 = vpop.f32.mrf.mxu1 }
  0xd2   : > { %v845_v49 = vadd.f32 %v775_v48, %v429_v47  ;;  %v1797_v58 = vadd.f32 %v1733_v43, %v860_v52  ;;  %v1037_v47 = vadd.f32 %v1755_v14, %v1770_v31 }
  0xd4   : > { %v1791_v51 = vadd.f32 %v1733_v43, %v845_v49 }
  0xd6   : > { %v1498_v53 = vpack.c.bf16 %v1791_v51, %v1788_v50  ;;  %v469_v54 = vpop.f32.mrf.mxu2  ;;  %v1079_v14 = vmul.f32 %v1791_v51, %v1791_v51 }
  0xd7   : > { %v815_v55 = vpop.f32.mrf.mxu3 }
  0xd8   : > { %1562 = vst [vmem:[%s1741_s18 + $0x18] sm:$0xff] %v1498_v53   ;;  %v432_v56 = vpop.f32.mrf.mxu0  ;;  %v861_v59 = vadd.f32 %v815_v55, %v469_v54  ;;  %v1107_v53 = vadd.f32 %v1758_v16, %v1076_v44 }
  0xd9   : > { %v778_v57 = vpop.f32.mrf.mxu1 }
  0xda   : > { %v1800_v60 = vadd.f32 %v1733_v43, %v861_v59  ;;  %v846_v63 = vadd.f32 %v778_v57, %v432_v56  ;;  %v1038_v56 = vadd.f32 %v1037_v47, %v1773_v32  ;;  %v1078_v57 = vmul.f32 %v1788_v50, %v1788_v50 }
  0xdc   : > { %v1538_v62 = vpack.c.bf16 %v1800_v60, %v1797_v58  ;;  %v946_v6 = vadd.f32 %v1733_v43, %v846_v63  ;;  %v1039_v63 = vadd.f32 %v1038_v56, %v1788_v50 }
  0xde   : > { %1570 = vst [vmem:[%s1741_s18 + $0x58] sm:$0xff] %v1538_v62   ;;  %v472_v1 = vpop.f32.mrf.mxu2  ;;  %v1108_v62 = vadd.f32 %v1107_v53, %v1077_v46  ;;  %v1080_v32 = vmul.f32 %v946_v6, %v946_v6 }
  0xdf   : > { %v818_v2 = vpop.f32.mrf.mxu3 }
  0xe0   : > { %v434_v3 = vpop.f32.mrf.mxu0  ;;  %v862_v8 = vadd.f32 %v818_v2, %v472_v1  ;;  %v1109_v2 = vadd.f32 %v1108_v62, %v1078_v57  ;;  %v1088_v62 = vmul.f32 %v1745_v61, %v1745_v61 }
  0xe1   : > { %v780_v4 = vpop.f32.mrf.mxu1 }
  0xe2   : > { %v847_v5 = vadd.f32 %v780_v4, %v434_v3  ;;  %v1812_v15 = vadd.f32 %v1733_v43, %v862_v8  ;;  %v1040_v3 = vadd.f32 %v1039_v63, %v1791_v51 }
  0xe4   : > { %v1807_v7 = vadd.f32 %v1733_v43, %v847_v5  ;;  %v1110_v5 = vadd.f32 %v1109_v2, %v1079_v14  ;;  %v1041_v8 = vadd.f32 %v1040_v3, %v946_v6  ;;  %v1089_v3 = vmul.f32 %v1748_v0, %v1748_v0 }
  0xe6   : > { %v1503_v9 = vpack.c.bf16 %v1807_v7, %v946_v6  ;;  %v474_v10 = vpop.f32.mrf.mxu2  ;;  %v1042_v51 = vadd.f32 %v1041_v8, %v1807_v7  ;;  %v1090_v8 = vmul.f32 %v1761_v21, %v1761_v21 }
  0xe7   : > { %v820_v11 = vpop.f32.mrf.mxu3 }
  0xe8   : > { %1563 = vst [vmem:[%s1741_s18 + $0x20] sm:$0xff] %v1503_v9   ;;  %v437_v12 = vpop.f32.mrf.mxu0  ;;  %v863_v17 = vadd.f32 %v820_v11, %v474_v10  ;;  %v1081_v9 = vmul.f32 %v1807_v7, %v1807_v7 }
  0xe9   : > { %v783_v13 = vpop.f32.mrf.mxu1 }
  0xea   : > { %v1815_v18 = vadd.f32 %v1733_v43, %v863_v17  ;;  %v848_v20 = vadd.f32 %v783_v13, %v437_v12 }
  0xec   : > { %v1543_v19 = vpack.c.bf16 %v1815_v18, %v1812_v15  ;;  %v948_v28 = vadd.f32 %v1733_v43, %v848_v20 }
  0xee   : > { %1571 = vst [vmem:[%s1741_s18 + $0x60] sm:$0xff] %v1543_v19   ;;  %v477_v22 = vpop.f32.mrf.mxu2  ;;  %v1111_v19 = vadd.f32 %v1110_v5, %v1080_v32  ;;  %v1082_v20 = vmul.f32 %v948_v28, %v948_v28 }
  0xef   : > { %v823_v24 = vpop.f32.mrf.mxu3 }
  0xf0   : > { %v439_v25 = vpop.f32.mrf.mxu0  ;;  %v864_v30 = vadd.f32 %v823_v24, %v477_v22  ;;  %v1112_v24 = vadd.f32 %v1111_v19, %v1081_v9  ;;  %v1093_v19 = vmul.f32 %v1782_v41, %v1782_v41 }
  0xf1   : > { %v785_v26 = vpop.f32.mrf.mxu1 }
  0xf2   : > { %v849_v27 = vadd.f32 %v785_v26, %v439_v25  ;;  %v1824_v38 = vadd.f32 %v1733_v43, %v864_v30  ;;  %v1043_v25 = vadd.f32 %v1042_v51, %v948_v28  ;;  %v1113_v30 = vadd.f32 %v1112_v24, %v1082_v20 }
  0xf3   : > { %v1094_v20 = vmul.f32 %v1797_v58, %v1797_v58  ;;  %v1095_v24 = vmul.f32 %v1800_v60, %v1800_v60 }
  0xf4   : > { %v949_v29 = vadd.f32 %v1733_v43, %v849_v27 }
  0xf6   : > { %v1508_v33 = vpack.c.bf16 %v949_v29, %v948_v28  ;;  %v479_v34 = vpop.f32.mrf.mxu2  ;;  %v1083_v26 = vmul.f32 %v949_v29, %v949_v29 }
  0xf7   : > { %v825_v35 = vpop.f32.mrf.mxu3 }
  0xf8   : > { %1564 = vst [vmem:[%s1741_s18 + $0x28] sm:$0xff] %v1508_v33   ;;  %v442_v36 = vpop.f32.mrf.mxu0  ;;  %v865_v40 = vadd.f32 %v825_v35, %v479_v34  ;;  %v1044_v33 = vadd.f32 %v1043_v25, %v949_v29 }
  0xf9   : > { %v788_v37 = vpop.f32.mrf.mxu1 }
  0xfa   : > { %v1827_v42 = vadd.f32 %v1733_v43, %v865_v40  ;;  %v850_v48 = vadd.f32 %v788_v37, %v442_v36  ;;  %v1114_v36 = vadd.f32 %v1113_v30, %v1083_v26 }
  0xfc   : > { %v1548_v45 = vpack.c.bf16 %v1827_v42, %v1824_v38  ;;  %v950_v31 = vadd.f32 %v1733_v43, %v850_v48 }
  0xfe   : > { %1572 = vst [vmem:[%s1741_s18 + $0x68] sm:$0xff] %v1548_v45   ;;  %v482_v49 = vpop.f32.mrf.mxu2  ;;  %v1084_v34 = vmul.f32 %v950_v31, %v950_v31  ;;  %v1045_v37 = vadd.f32 %v1044_v33, %v950_v31 }
  0xff   : > { %v828_v52 = vpop.f32.mrf.mxu3 }
 0x100   : > { %v444_v54 = vpop.f32.mrf.mxu0  ;;  %v866_v16 = vadd.f32 %v828_v52, %v482_v49  ;;  %v1115_v47 = vadd.f32 %v1114_v36, %v1084_v34 }
 0x101   : > { %v790_v55 = vpop.f32.mrf.mxu1 }
 0x102   : > { %v851_v59 = vadd.f32 %v790_v55, %v444_v54  ;;  %v1852_v13 = vadd.f32 %v1733_v43, %v866_v16 }
 0x104   : > { %v951_v1 = vadd.f32 %v1733_v43, %v851_v59 }
 0x106   : > { %v1513_v4 = vpack.c.bf16 %v951_v1, %v950_v31  ;;  %v484_v50 = vpop.f32.mrf.mxu2  ;;  %v1085_v7 = vmul.f32 %v951_v1, %v951_v1  ;;  %v1046_v28 = vadd.f32 %v1045_v37, %v951_v1 }
 0x107   : > { %v830_v10 = vpop.f32.mrf.mxu3 }
 0x108   : > { %1565 = vst [vmem:[%s1741_s18 + $0x30] sm:$0xff] %v1513_v4   ;;  %v447_v11 = vpop.f32.mrf.mxu0  ;;  %v867_v17 = vadd.f32 %v830_v10, %v484_v50  ;;  %v1116_v52 = vadd.f32 %v1115_v47, %v1085_v7  ;;  %v1091_v10 = vmul.f32 %v1764_v23, %v1764_v23 }
 0x109   : > { %v793_v12 = vpop.f32.mrf.mxu1 }
 0x10a   : > { %v852_v22 = vadd.f32 %v793_v12, %v447_v11  ;;  %v1856_v6 = vadd.f32 %v1733_v43, %v867_v17 }
 0x10c   : > { %v1553_v27 = vpack.c.bf16 %v1856_v6, %v1852_v13  ;;  %v952_v35 = vadd.f32 %v1733_v43, %v852_v22 }
 0x10e   : > { %1573 = vst [vmem:[%s1741_s18 + $0x70] sm:$0xff] %v1553_v27   ;;  %v487_v40 = vpop.f32.mrf.mxu2  ;;  %v1086_v48 = vmul.f32 %v952_v35, %v952_v35  ;;  %v1047_v53 = vadd.f32 %v1046_v28, %v952_v35 }
 0x10f   : > { %v833_v44 = vpop.f32.mrf.mxu3 }
 0x110   : > { %v449_v45 = vpop.f32.mrf.mxu0  ;;  %v868_v54 = vadd.f32 %v833_v44, %v487_v40  ;;  %v1117_v55 = vadd.f32 %v1116_v52, %v1086_v48  ;;  %v1100_v40 = vmul.f32 %v1852_v13, %v1852_v13 }
 0x111   : > { %v795_v46 = vpop.f32.mrf.mxu1 }
 0x112   : > { %v853_v49 = vadd.f32 %v795_v46, %v449_v45  ;;  %v968_v16 = vadd.f32 %v1733_v43, %v868_v54 }
 0x114   : > { %v953_v29 = vadd.f32 %v1733_v43, %v853_v49  ;;  %v1102_v28 = vmul.f32 %v968_v16, %v968_v16 }
 0x116   : > { %v1518_v56 = vpack.c.bf16 %v953_v29, %v952_v35  ;;  %v1048_v57 = vadd.f32 %v1047_v53, %v953_v29  ;;  %v1087_v59 = vmul.f32 %v953_v29, %v953_v29  ;;  %v489_v31 = vpop.f32.mrf.mxu2 }
 0x117   : > { %v835_v1 = vpop.f32.mrf.mxu3 }
 0x118   : > { %1566 = vst [vmem:[%s1741_s18 + $0x38] sm:$0xff] %v1518_v56   ;;  %v1049_v63 = vadd.f32 %v1048_v57, %v1745_v61  ;;  %v1118_v14 = vadd.f32 %v1117_v55, %v1087_v59  ;;  %v869_v2 = vadd.f32 %v835_v1, %v489_v31 }
 0x11a   : > { %v1050_v32 = vadd.f32 %v1049_v63, %v1748_v0  ;;  %v1119_v4 = vadd.f32 %v1118_v14, %v1088_v62  ;;  %v969_v5 = vadd.f32 %v1733_v43, %v869_v2  ;;  %v1092_v0 = vmul.f32 %v1779_v39, %v1779_v39 }
 0x11c   : > { %v1051_v61 = vadd.f32 %v1050_v32, %v1761_v21  ;;  %v1120_v9 = vadd.f32 %v1119_v4, %v1089_v3  ;;  %v1558_v50 = vpack.c.bf16 %v969_v5, %v968_v16 }
 0x11e   : > { %v1052_v11 = vadd.f32 %v1051_v61, %v1764_v23  ;;  %v1121_v12 = vadd.f32 %v1120_v9, %v1090_v8  ;;  %1574 = vst [vmem:[%s1741_s18 + $0x78] sm:$0xff] %v1558_v50  }
 0x120   : > { %v1053_v17 = vadd.f32 %v1052_v11, %v1779_v39  ;;  %v1122_v43 = vadd.f32 %v1121_v12, %v1091_v10  ;;  %v1096_v39 = vmul.f32 %v1812_v15, %v1812_v15 }
 0x122   : > { %v1054_v21 = vadd.f32 %v1053_v17, %v1782_v41  ;;  %v1123_v51 = vadd.f32 %v1122_v43, %v1092_v0  ;;  %v1097_v41 = vmul.f32 %v1815_v18, %v1815_v18 }
 0x124   : > { %v1124_v22 = vadd.f32 %v1123_v51, %v1093_v19  ;;  %v1055_v23 = vadd.f32 %v1054_v21, %v1797_v58  ;;  %v1098_v58 = vmul.f32 %v1824_v38, %v1824_v38 }
 0x126   : > { %v1056_v25 = vadd.f32 %v1055_v23, %v1800_v60  ;;  %v1125_v26 = vadd.f32 %v1124_v22, %v1094_v20  ;;  %v1099_v60 = vmul.f32 %v1827_v42, %v1827_v42 }
 0x128   : > { %v1057_v27 = vadd.f32 %v1056_v25, %v1812_v15  ;;  %v1126_v30 = vadd.f32 %v1125_v26, %v1095_v24 }
 0x12a   : > { %v1058_v33 = vadd.f32 %v1057_v27, %v1815_v18  ;;  %v1127_v34 = vadd.f32 %v1126_v30, %v1096_v39 }
 0x12c   : > { %v1059_v35 = vadd.f32 %v1058_v33, %v1824_v38  ;;  %v1128_v36 = vadd.f32 %v1127_v34, %v1097_v41  ;;  %v1101_v38 = vmul.f32 %v1856_v6, %v1856_v6 }
 0x12e   : > { %v1060_v37 = vadd.f32 %v1059_v35, %v1827_v42  ;;  %v1129_v7 = vadd.f32 %v1128_v36, %v1098_v58  ;;  %v1103_v42 = vmul.f32 %v969_v5, %v969_v5 }
 0x130   : > { %v1061_v15 = vadd.f32 %v1060_v37, %v1852_v13  ;;  %v1130_v44 = vadd.f32 %v1129_v7, %v1099_v60 }
 0x132   : > { %v1131_v18 = vadd.f32 %v1130_v44, %v1100_v40  ;;  %v1062_v45 = vadd.f32 %v1061_v15, %v1856_v6 }
 0x134   : > { %v1132_v46 = vadd.f32 %v1131_v18, %v1101_v38  ;;  %v1063_v47 = vadd.f32 %v1062_v45, %v968_v16 }
 0x136   : > { %v1133_v48 = vadd.f32 %v1132_v46, %v1102_v28  ;;  %v1064_v49 = vadd.f32 %v1063_v47, %v969_v5 }
 0x138   : > { %v1065_v52 = vrot.slane %v1064_v49, 4  ;;  %v1134_v53 = vadd.f32 %v1133_v48, %v1103_v42 }
 0x13a   : > { %v1066_v29 = vadd.f32 %v1065_v52, %v1064_v49  ;;  %v1135_v54 = vrot.slane %v1134_v53, 4 }
 0x13c   : > { %v1067_v55 = vrot.slane %v1066_v29, 2  ;;  %v1136_v13 = vadd.f32 %v1135_v54, %v1134_v53 }
 0x13e   : > { %v1068_v56 = vadd.f32 %v1067_v55, %v1066_v29  ;;  %v1137_v57 = vrot.slane %v1136_v13, 2 }
 0x140   : > { %v1069_v59 = vrot.slane %v1068_v56, 1  ;;  %v1138_v62 = vadd.f32 %v1137_v57, %v1136_v13 }
 0x142   : > { %v1070_v6 = vadd.f32 %v1069_v59, %v1068_v56  ;;  %v1139_v63 = vrot.slane %v1138_v62, 1 }
 0x144   : > { %1071 = vst [vmem:[%s208_s22] sm:$0x1] %v1070_v6  ;;  %v1140_v14 = vadd.f32 %v1139_v63, %v1138_v62 }
 0x146   : > { %1141 = vst [vmem:[%s208_s22 + $0x1] sm:$0x1] %v1140_v14 }
 0x147 PF: > { %s15_s15 = sadd.s32 1, %s1599_s15  }
 0x148   : > { %p12_p4 = scmp.ge.s32.totalorder %s15_s15, 4  }
 0x14a   :  { %14 = sbr.rel (!%p12_p4) target bundleno = 1 (0x1), region = 75 }

// kernel: _patchgan_forward.8
= control target key start
LH: loop header
LB: loop body
LE: loop exit
PB: predicated region body
PF: predicated region fallthrough
CT: control target
= control target key end

     0   :  { %s880_s15 = smov 0   ;;  %s966_s0 = inlined_call_operand.vmem [shape: bf16[2,72,128], index: 0, kind: input, shape index: {}]   ;;  %s967_s1 = inlined_call_operand.vmem [shape: bf16[2,128,128], index: 1, kind: input, shape index: {}]   ;;  %s968_s2 = inlined_call_operand.vmem [shape: f32[1,128], index: 2, kind: input, shape index: {}]   ;;  %s969_s3 = inlined_call_operand.vmem [shape: bf16[2,64,128], index: 3, kind: output, shape index: {0}]   ;;  %s970_s4 = inlined_call_operand.vmem [shape: f32[2,2,128], index: 4, kind: output, shape index: {1}]  }
   0x1 LB: > { %s650_s16 = sadd.s32 4294967295, %s853_s15   ;;  %p654_p0 = scmp.ge.s32.totalorder %s853_s15, 1  ;;  %s853_s15 = sphi %s880_s15, %s15_s15  }
   0x2   : > { %p165_p1 = scmp.lt.s32.totalorder %s853_s15, 3 }
   0x4   : > { %p166_p2 = pnand %p654_p0, %p165_p1 }
   0x5   : > { %p195_p3 = scmp.lt.s32.totalorder (!%p166_p2), %s650_s16, 1 }
   0x6   : > { %169 = sbr.rel (%p166_p2) target bundleno = 223 (0xdf), region = 32 }
   0xb   : > { %v785_v0 = vld [vmem:[%s967_s1 + $0x38] sm:$0xff]  ;;  %v784_v2 = vld [vmem:[%s967_s1 + $0x30] sm:$0xff]  ;;  %v783_v4 = vld [vmem:[%s967_s1 + $0x28] sm:$0xff]  ;;  %s972_s16 = smov (!%p195_p3, %s650_s16), 1 }
   0xc   : > { %v797_v1 = vld [vmem:[%s967_s1 + $0x78] sm:$0xff]  ;;  %305 = vmatpush.bf16.msra.mxu0 %v785_v0  ;;  %821 = vmatpush.bf16.msra.mxu2 %v785_v0  ;;  %v796_v3 = vld [vmem:[%s967_s1 + $0x70] sm:$0xff]  ;;  %v795_v5 = vld [vmem:[%s967_s1 + $0x68] sm:$0xff]  ;;  %s837_s19 = smul.u32 36, %s972_s16  ;;  %s773_s5 = sshll.u32 %s972_s16, 5 }
   0xd   : > { %447 = vmatpush.bf16.msra.mxu1 %v797_v1  ;;  %829 = vmatpush.bf16.msra.mxu3 %v797_v1  ;;  %v782_v6 = vld [vmem:[%s967_s1 + $0x20] sm:$0xff]  ;;  %v781_v8 = vld [vmem:[%s967_s1 + $0x18] sm:$0xff]  ;;  %v780_v10 = vld [vmem:[%s967_s1 + $0x10] sm:$0xff]  ;;  %s953_s8 = scalar_lea.vmem %s969_s3, %s773_s5  ;;  %s658_s9 = sshll.u32 %s972_s16, 1 }
   0xe   : > { %v794_v7 = vld [vmem:[%s967_s1 + $0x60] sm:$0xff]  ;;  %v793_v9 = vld [vmem:[%s967_s1 + $0x58] sm:$0xff]  ;;  %v792_v11 = vld [vmem:[%s967_s1 + $0x50] sm:$0xff]  ;;  %s199_s26 = scalar_lea.vmem %s966_s0, %s837_s19  ;;  %s208_s12 = scalar_lea.vmem %s970_s4, %s658_s9 }
   0xf   : > { %v779_v12 = vld [vmem:[%s967_s1 + $0x8] sm:$0xff]  ;;  %v778_v14 = vld [vmem:[%s967_s1] sm:$0xff]  ;;  %v776_v17 = vld [vmem:[%s199_s26 + $0x10] sm:$0xff] }
  0x10   : > { %306 = vmatpush.bf16.msra.mxu0 %v784_v2  ;;  %822 = vmatpush.bf16.msra.mxu2 %v784_v2  ;;  %v791_v13 = vld [vmem:[%s967_s1 + $0x48] sm:$0xff]  ;;  %v790_v15 = vld [vmem:[%s967_s1 + $0x40] sm:$0xff]  ;;  %v788_v19 = vld [vmem:[%s199_s26 + $0x14] sm:$0xff] }
  0x11   : > { %448 = vmatpush.bf16.msra.mxu1 %v796_v3  ;;  %830 = vmatpush.bf16.msra.mxu3 %v796_v3  ;;  %v774_v16 = vld [vmem:[%s199_s26] sm:$0xff]  ;;  %v775_v20 = vld [vmem:[%s199_s26 + $0x8] sm:$0xff]  ;;  %v777_v21 = vld [vmem:[%s199_s26 + $0x18] sm:$0xff] }
  0x12   : > { %v786_v18 = vld [vmem:[%s199_s26 + $0x4] sm:$0xff]  ;;  %v787_v22 = vld [vmem:[%s199_s26 + $0xc] sm:$0xff]  ;;  %v789_v23 = vld [vmem:[%s199_s26 + $0x1c] sm:$0xff] }
  0x13   : > { %v846_v29 = vld [vmem:[%s968_s2] ss:$0 sm:$0xff] }
  0x14   : > { %307 = vmatpush.bf16.msra.mxu0 %v783_v4  ;;  %823 = vmatpush.bf16.msra.mxu2 %v783_v4 }
  0x15   : > { %449 = vmatpush.bf16.msra.mxu1 %v795_v5  ;;  %831 = vmatpush.bf16.msra.mxu3 %v795_v5 }
  0x18   : > { %308 = vmatpush.bf16.msra.mxu0 %v782_v6  ;;  %824 = vmatpush.bf16.msra.mxu2 %v782_v6 }
  0x19   : > { %450 = vmatpush.bf16.msra.mxu1 %v794_v7  ;;  %832 = vmatpush.bf16.msra.mxu3 %v794_v7 }
  0x1c   : > { %309 = vmatpush.bf16.msra.mxu0 %v781_v8  ;;  %825 = vmatpush.bf16.msra.mxu2 %v781_v8 }
  0x1d   : > { %451 = vmatpush.bf16.msra.mxu1 %v793_v9  ;;  %833 = vmatpush.bf16.msra.mxu3 %v793_v9 }
  0x20   : > { %310 = vmatpush.bf16.msra.mxu0 %v780_v10  ;;  %826 = vmatpush.bf16.msra.mxu2 %v780_v10 }
  0x21   : > { %452 = vmatpush.bf16.msra.mxu1 %v792_v11  ;;  %834 = vmatpush.bf16.msra.mxu3 %v792_v11 }
  0x24   : > { %311 = vmatpush.bf16.msra.mxu0 %v779_v12  ;;  %827 = vmatpush.bf16.msra.mxu2 %v779_v12 }
  0x25   : > { %453 = vmatpush.bf16.msra.mxu1 %v791_v13  ;;  %835 = vmatpush.bf16.msra.mxu3 %v791_v13 }
  0x28   : > { %312 = vmatpush.bf16.msra.mxu0 %v778_v14  ;;  %828 = vmatpush.bf16.msra.mxu2 %v778_v14 }
  0x29   : > { %454 = vmatpush.bf16.msra.mxu1 %v790_v15  ;;  %836 = vmatpush.bf16.msra.mxu3 %v790_v15 }
  0x2b   : > { %313 = vmatmul.bf16.vlgmr.msra.gmra.mxu0 %v774_v16  ;;  %323 = vmatmul.bf16.vlgmr.msra.gmra.mxu2 %v776_v17 }
  0x2c   : > { %455 = vmatmul.bf16.vlgmr.msra.gmra.mxu1 %v786_v18  ;;  %465 = vmatmul.bf16.vlgmr.msra.gmra.mxu3 %v788_v19 }
  0x3b   : > { %318 = vmatmul.bf16.gmra.mxu0 %v775_v20  ;;  %328 = vmatmul.bf16.gmra.mxu2 %v777_v21 }
  0x3c   : > { %460 = vmatmul.bf16.gmra.mxu1 %v787_v22  ;;  %470 = vmatmul.bf16.gmra.mxu3 %v789_v23 }
  0xa8   : > { %v314_v24 = vpop.f32.mrf.mxu0 }
  0xa9   : > { %v456_v25 = vpop.f32.mrf.mxu1 }
  0xaa   : > { %v476_v28 = vadd.f32 %v456_v25, %v314_v24 }
  0xac   : > { %v504_v33 = vadd.f32 %v846_v29, %v476_v28 }
  0xae   : > { %v324_v26 = vpop.f32.mrf.mxu2  ;;  %v542_v52 = vmul.f32 %v504_v33, %v504_v33 }
  0xaf   : > { %v466_v27 = vpop.f32.mrf.mxu3 }
  0xb0   : > { %v316_v30 = vpop.f32.mrf.mxu0  ;;  %v480_v35 = vadd.f32 %v466_v27, %v324_v26 }
  0xb1   : > { %v458_v31 = vpop.f32.mrf.mxu1 }
  0xb2   : > { %v477_v32 = vadd.f32 %v458_v31, %v316_v30  ;;  %v508_v42 = vadd.f32 %v846_v29, %v480_v35 }
  0xb4   : > { %v505_v34 = vadd.f32 %v846_v29, %v477_v32  ;;  %v546_v1 = vmul.f32 %v508_v42, %v508_v42 }
  0xb6   : > { %v801_v36 = vpack.c.bf16 %v505_v34, %v504_v33  ;;  %v326_v37 = vpop.f32.mrf.mxu2  ;;  %v543_v49 = vmul.f32 %v505_v34, %v505_v34  ;;  %v528_v53 = vadd.f32 %v505_v34, %v504_v33 }
  0xb7   : > { %v468_v38 = vpop.f32.mrf.mxu3 }
  0xb8   : > { %802 = vst [vmem:[%s953_s8] sm:$0xff] %v801_v36   ;;  %v481_v39 = vadd.f32 %v468_v38, %v326_v37  ;;  %v319_v40 = vpop.f32.mrf.mxu0  ;;  %v550_v56 = vadd.f32 %v543_v49, %v542_v52 }
  0xb9   : > { %v461_v41 = vpop.f32.mrf.mxu1 }
  0xba   : > { %v509_v43 = vadd.f32 %v846_v29, %v481_v39  ;;  %v478_v44 = vadd.f32 %v461_v41, %v319_v40 }
  0xbc   : > { %v811_v45 = vpack.c.bf16 %v509_v43, %v508_v42  ;;  %v506_v46 = vadd.f32 %v846_v29, %v478_v44  ;;  %v547_v7 = vmul.f32 %v509_v43, %v509_v43 }
  0xbe   : > { %819 = vst [vmem:[%s953_s8 + $0x10] sm:$0xff] %v811_v45   ;;  %v329_v47 = vpop.f32.mrf.mxu2  ;;  %v544_v54 = vmul.f32 %v506_v46, %v506_v46  ;;  %v529_v57 = vadd.f32 %v528_v53, %v506_v46 }
  0xbf   : > { %v471_v48 = vpop.f32.mrf.mxu3 }
  0xc0   : > { %v321_v50 = vpop.f32.mrf.mxu0  ;;  %v482_v58 = vadd.f32 %v471_v48, %v329_v47  ;;  %v551_v60 = vadd.f32 %v550_v56, %v544_v54 }
  0xc1   : > { %v463_v51 = vpop.f32.mrf.mxu1 }
  0xc2   : > { %v479_v55 = vadd.f32 %v463_v51, %v321_v50  ;;  %v510_v3 = vadd.f32 %v846_v29, %v482_v58 }
  0xc4   : > { %v507_v59 = vadd.f32 %v846_v29, %v479_v55  ;;  %v548_v11 = vmul.f32 %v510_v3, %v510_v3 }
  0xc6   : > { %v806_v61 = vpack.c.bf16 %v507_v59, %v506_v46  ;;  %v530_v62 = vadd.f32 %v529_v57, %v507_v59  ;;  %v545_v63 = vmul.f32 %v507_v59, %v507_v59  ;;  %v331_v0 = vpop.f32.mrf.mxu2 }
  0xc7   : > { %v473_v2 = vpop.f32.mrf.mxu3 }
  0xc8   : > { %818 = vst [vmem:[%s953_s8 + $0x8] sm:$0xff] %v806_v61   ;;  %v531_v4 = vadd.f32 %v530_v62, %v508_v42  ;;  %v552_v5 = vadd.f32 %v551_v60, %v545_v63  ;;  %v483_v6 = vadd.f32 %v473_v2, %v331_v0 }
  0xca   : > { %v553_v8 = vadd.f32 %v552_v5, %v546_v1  ;;  %v511_v9 = vadd.f32 %v846_v29, %v483_v6  ;;  %v532_v10 = vadd.f32 %v531_v4, %v509_v43 }
  0xcc   : > { %v816_v12 = vpack.c.bf16 %v511_v9, %v510_v3  ;;  %v533_v13 = vadd.f32 %v532_v10, %v510_v3  ;;  %v554_v14 = vadd.f32 %v553_v8, %v547_v7  ;;  %v549_v16 = vmul.f32 %v511_v9, %v511_v9 }
  0xce   : > { %820 = vst [vmem:[%s953_s8 + $0x18] sm:$0xff] %v816_v12   ;;  %v534_v15 = vadd.f32 %v533_v13, %v511_v9  ;;  %v555_v17 = vadd.f32 %v554_v14, %v548_v11 }
  0xd0   : > { %v535_v18 = vrot.slane %v534_v15, 4  ;;  %v556_v19 = vadd.f32 %v555_v17, %v549_v16 }
  0xd2   : > { %v536_v20 = vadd.f32 %v535_v18, %v534_v15  ;;  %v557_v21 = vrot.slane %v556_v19, 4 }
  0xd4   : > { %v537_v22 = vrot.slane %v536_v20, 2  ;;  %v558_v23 = vadd.f32 %v557_v21, %v556_v19 }
  0xd6   : > { %v538_v24 = vadd.f32 %v537_v22, %v536_v20  ;;  %v559_v25 = vrot.slane %v558_v23, 2 }
  0xd8   : > { %v539_v26 = vrot.slane %v538_v24, 1  ;;  %v560_v27 = vadd.f32 %v559_v25, %v558_v23 }
  0xda   : > { %v540_v28 = vadd.f32 %v539_v26, %v538_v24  ;;  %v561_v29 = vrot.slane %v560_v27, 1 }
  0xdc   : > { %541 = vst [vmem:[%s208_s12] sm:$0x1] %v540_v28  ;;  %v562_v30 = vadd.f32 %v561_v29, %v560_v27 }
  0xde   : > { %563 = vst [vmem:[%s208_s12 + $0x1] sm:$0x1] %v562_v30 }
  0xdf PF: > { %s15_s15 = sadd.s32 1, %s853_s15  }
  0xe0   : > { %p12_p4 = scmp.ge.s32.totalorder %s15_s15, 4  }
  0xe2   :  { %14 = sbr.rel (!%p12_p4) target bundleno = 1 (0x1), region = 75 }

// kernel: _patchgan_forward.9
= control target key start
LH: loop header
LB: loop body
LE: loop exit
PB: predicated region body
PF: predicated region fallthrough
CT: control target
= control target key end

     0   :  { %s1103_s15 = smov 0   ;;  %s1253_s0 = inlined_call_operand.vmem [shape: bf16[2,40,256], index: 0, kind: input, shape index: {}]   ;;  %s1254_s1 = inlined_call_operand.vmem [shape: bf16[2,256,128], index: 1, kind: input, shape index: {}]   ;;  %s1255_s2 = inlined_call_operand.vmem [shape: f32[1,128], index: 2, kind: input, shape index: {}]   ;;  %s1256_s3 = inlined_call_operand.vmem [shape: bf16[2,32,128], index: 3, kind: output, shape index: {0}]   ;;  %s1257_s4 = inlined_call_operand.vmem [shape: f32[2,2,128], index: 4, kind: output, shape index: {1}]  }
   0x1 LB: > { %s805_s16 = sadd.s32 4294967295, %s1076_s15   ;;  %p809_p0 = scmp.ge.s32.totalorder %s1076_s15, 1  ;;  %s1076_s15 = sphi %s1103_s15, %s15_s15  }
   0x2   : > { %p165_p1 = scmp.lt.s32.totalorder %s1076_s15, 3 }
   0x4   : > { %p166_p2 = pnand %p809_p0, %p165_p1 }
   0x5   : > { %p195_p3 = scmp.lt.s32.totalorder (!%p166_p2), %s805_s16, 1 }
   0x6   : > { %169 = sbr.rel (%p166_p2) target bundleno = 226 (0xe2), region = 32 }
   0xb   : > { %v1020_v0 = vld [vmem:[%s1254_s1 + $0x38] sm:$0xff]  ;;  %v1019_v4 = vld [vmem:[%s1254_s1 + $0x30] sm:$0xff]  ;;  %v1018_v8 = vld [vmem:[%s1254_s1 + $0x28] sm:$0xff]  ;;  %s1259_s16 = smov (!%p195_p3, %s805_s16), 1 }
   0xc   : > { %v1028_v1 = vld [vmem:[%s1254_s1 + $0x78] sm:$0xff]  ;;  %361 = vmatpush.bf16.msra.mxu0 %v1020_v0  ;;  %v1027_v5 = vld [vmem:[%s1254_s1 + $0x70] sm:$0xff]  ;;  %v1026_v9 = vld [vmem:[%s1254_s1 + $0x68] sm:$0xff]  ;;  %s1060_s11 = smul.u32 40, %s1259_s16  ;;  %v626_v0 = vlaneseq  ;;  %s1008_s13 = sshll.u32 %s1259_s16, 4 }
   0xd   : > { %v1040_v2 = vld [vmem:[%s1254_s1 + $0xb8] sm:$0xff]  ;;  %380 = vmatpush.bf16.msra.mxu1 %v1028_v1  ;;  %v1039_v6 = vld [vmem:[%s1254_s1 + $0xb0] sm:$0xff]  ;;  %v1038_v10 = vld [vmem:[%s1254_s1 + $0xa8] sm:$0xff]  ;;  %s1242_s18 = scalar_lea.vmem %s1256_s3, %s1008_s13  ;;  %s813_s19 = sshll.u32 %s1259_s16, 1 }
   0xe   : > { %v1048_v3 = vld [vmem:[%s1254_s1 + $0xf8] sm:$0xff]  ;;  %560 = vmatpush.bf16.msra.mxu2 %v1040_v2  ;;  %v1047_v7 = vld [vmem:[%s1254_s1 + $0xf0] sm:$0xff]  ;;  %v1046_v11 = vld [vmem:[%s1254_s1 + $0xe8] sm:$0xff]  ;;  %s1199_s24 = scalar_lea.vmem %s1253_s0, %s1060_s11  ;;  %s208_s22 = scalar_lea.vmem %s1257_s4, %s813_s19 }
   0xf   : > { %579 = vmatpush.bf16.msra.mxu3 %v1048_v3  ;;  %v1017_v12 = vld [vmem:[%s1254_s1 + $0x20] sm:$0xff]  ;;  %v1016_v16 = vld [vmem:[%s1254_s1 + $0x18] sm:$0xff]  ;;  %v1015_v20 = vld [vmem:[%s1254_s1 + $0x10] sm:$0xff] }
  0x10   : > { %362 = vmatpush.bf16.msra.mxu0 %v1019_v4  ;;  %v1025_v13 = vld [vmem:[%s1254_s1 + $0x60] sm:$0xff]  ;;  %v1024_v17 = vld [vmem:[%s1254_s1 + $0x58] sm:$0xff]  ;;  %v1023_v21 = vld [vmem:[%s1254_s1 + $0x50] sm:$0xff] }
  0x11   : > { %381 = vmatpush.bf16.msra.mxu1 %v1027_v5  ;;  %v1037_v14 = vld [vmem:[%s1254_s1 + $0xa0] sm:$0xff]  ;;  %v1036_v18 = vld [vmem:[%s1254_s1 + $0x98] sm:$0xff]  ;;  %v1035_v22 = vld [vmem:[%s1254_s1 + $0x90] sm:$0xff] }
  0x12   : > { %561 = vmatpush.bf16.msra.mxu2 %v1039_v6  ;;  %v1045_v15 = vld [vmem:[%s1254_s1 + $0xe0] sm:$0xff]  ;;  %v1044_v19 = vld [vmem:[%s1254_s1 + $0xd8] sm:$0xff]  ;;  %v1043_v23 = vld [vmem:[%s1254_s1 + $0xd0] sm:$0xff] }
  0x13   : > { %580 = vmatpush.bf16.msra.mxu3 %v1047_v7  ;;  %v1014_v24 = vld [vmem:[%s1254_s1 + $0x8] sm:$0xff]  ;;  %v1013_v28 = vld [vmem:[%s1254_s1] sm:$0xff]  ;;  %v1030_v37 = vld [vmem:[%s1199_s24 + $0xc] sm:$0xf0]  ;;  %v627_v7 = vshrl.u32 %v626_v0, 7 }
  0x14   : > { %363 = vmatpush.bf16.msra.mxu0 %v1018_v8  ;;  %v1022_v25 = vld [vmem:[%s1254_s1 + $0x48] sm:$0xff]  ;;  %v1021_v29 = vld [vmem:[%s1254_s1 + $0x40] sm:$0xff]  ;;  %v930_v39 = vld [vmem:[%s1199_s24 + $0x10] sm:$0xf0] }
  0x15   : > { %382 = vmatpush.bf16.msra.mxu1 %v1026_v9  ;;  %v1034_v26 = vld [vmem:[%s1254_s1 + $0x88] sm:$0xff]  ;;  %v1033_v30 = vld [vmem:[%s1254_s1 + $0x80] sm:$0xff]  ;;  %v824_v44 = vld [vmem:[%s1199_s24 + $0x10] sm:$0xf]  ;;  %v628_v9 = vadd.s32 8, %v627_v7 }
  0x16   : > { %562 = vmatpush.bf16.msra.mxu2 %v1038_v10  ;;  %v1042_v27 = vld [vmem:[%s1254_s1 + $0xc8] sm:$0xff]  ;;  %v1041_v31 = vld [vmem:[%s1254_s1 + $0xc0] sm:$0xff]  ;;  %v1012_v45 = vld [vmem:[%s1199_s24 + $0x14] sm:$0xf0] }
  0x17   : > { %581 = vmatpush.bf16.msra.mxu3 %v1046_v11  ;;  %v816_v32 = vld [vmem:[%s1199_s24] sm:$0xf]  ;;  %v1010_v33 = vld [vmem:[%s1199_s24 + $0x4] sm:$0xf0]  ;;  %v1009_v34 = vld [vmem:[%s1199_s24 + $0x4] sm:$0xf]  ;;  %v825_v52 = vor.u32 %v1012_v45, %v824_v44 }
  0x18   : > { %364 = vmatpush.bf16.msra.mxu0 %v1017_v12  ;;  %v818_v35 = vld [vmem:[%s1199_s24 + $0x8] sm:$0xf0]  ;;  %v928_v36 = vld [vmem:[%s1199_s24 + $0x8] sm:$0xf]  ;;  %v817_v40 = vor.u32 %v1010_v33, %v816_v32  ;;  %v1011_v46 = vld [vmem:[%s1199_s24 + $0x14] sm:$0xf] }
  0x19   : > { %383 = vmatpush.bf16.msra.mxu1 %v1025_v13  ;;  %v1029_v38 = vld [vmem:[%s1199_s24 + $0xc] sm:$0xf]  ;;  %v821_v41 = vor.u32 %v1009_v34, %v818_v35  ;;  %v929_v42 = vor.u32 %v1030_v37, %v928_v36  ;;  %v826_v47 = vld [vmem:[%s1199_s24 + $0x18] sm:$0xf0]  ;;  %v936_v48 = vld [vmem:[%s1199_s24 + $0x18] sm:$0xf] }
  0x1a   : > { %563 = vmatpush.bf16.msra.mxu2 %v1037_v14  ;;  %v933_v43 = vor.u32 %v1029_v38, %v930_v39  ;;  %v1032_v49 = vld [vmem:[%s1199_s24 + $0x1c] sm:$0xf0]  ;;  %v1031_v50 = vld [vmem:[%s1199_s24 + $0x1c] sm:$0xf]  ;;  %v938_v51 = vld [vmem:[%s1199_s24 + $0x20] sm:$0xf0]  ;;  %v829_v53 = vor.u32 %v1011_v46, %v826_v47 }
  0x1b   : > { %582 = vmatpush.bf16.msra.mxu3 %v1045_v15  ;;  %v937_v54 = vor.u32 %v1032_v49, %v936_v48  ;;  %v941_v55 = vor.u32 %v1031_v50, %v938_v51  ;;  %v1069_v4 = vld [vmem:[%s1255_s2] ss:$0 sm:$0xff]  ;;  %v629_v14 = vadd.s32 16, %v627_v7 }
  0x1c   : > { %365 = vmatpush.bf16.msra.mxu0 %v1016_v16 }
  0x1d   : > { %384 = vmatpush.bf16.msra.mxu1 %v1024_v17  ;;  %v642_v17 = vand.u32 7, %v628_v9 }
  0x1e   : > { %564 = vmatpush.bf16.msra.mxu2 %v1036_v18 }
  0x1f   : > { %583 = vmatpush.bf16.msra.mxu3 %v1044_v19  ;;  %vm680_vm0 = vcmp.lt.s32.totalorder %v642_v17, 4 }
  0x20   : > { %366 = vmatpush.bf16.msra.mxu0 %v1015_v20 }
  0x21   : > { %385 = vmatpush.bf16.msra.mxu1 %v1023_v21  ;;  %v635_v21 = vand.u32 7, %v627_v7 }
  0x22   : > { %565 = vmatpush.bf16.msra.mxu2 %v1035_v22  ;;  %v649_v22 = vand.u32 7, %v629_v14 }
  0x23   : > { %584 = vmatpush.bf16.msra.mxu3 %v1043_v23  ;;  %vm679_vm1 = vcmp.lt.s32.totalorder %v635_v21, 4 }
  0x24   : > { %367 = vmatpush.bf16.msra.mxu0 %v1014_v24  ;;  %v630_v24 = vadd.s32 24, %v627_v7  ;;  %vm681_vm2 = vcmp.lt.s32.totalorder %v649_v22, 4 }
  0x25   : > { %386 = vmatpush.bf16.msra.mxu1 %v1022_v25 }
  0x26   : > { %566 = vmatpush.bf16.msra.mxu2 %v1034_v26 }
  0x27   : > { %585 = vmatpush.bf16.msra.mxu3 %v1042_v27 }
  0x28   : > { %368 = vmatpush.bf16.msra.mxu0 %v1013_v28 }
  0x29   : > { %387 = vmatpush.bf16.msra.mxu1 %v1021_v29 }
  0x2a   : > { %567 = vmatpush.bf16.msra.mxu2 %v1033_v30 }
  0x2b   : > { %586 = vmatpush.bf16.msra.mxu3 %v1041_v31  ;;  %369 = vmatmul.bf16.vlgmr.msra.gmra.mxu0 %v817_v40  ;;  %v656_v31 = vand.u32 7, %v630_v24 }
  0x2c   : > { %388 = vmatmul.bf16.vlgmr.msra.gmra.mxu1 %v821_v41 }
  0x2d   : > { %568 = vmatmul.bf16.vlgmr.msra.gmra.mxu2 %v929_v42  ;;  %vm682_vm3 = vcmp.lt.s32.totalorder %v656_v31, 4 }
  0x2e   : > { %587 = vmatmul.bf16.vlgmr.msra.gmra.mxu3 %v933_v43 }
  0x3b   : > { %374 = vmatmul.bf16.gmra.mxu0 %v825_v52 }
  0x3c   : > { %393 = vmatmul.bf16.gmra.mxu1 %v829_v53 }
  0x3d   : > { %573 = vmatmul.bf16.gmra.mxu2 %v937_v54 }
  0x3e   : > { %592 = vmatmul.bf16.gmra.mxu3 %v941_v55 }
  0xa8   : > { %v370_v56 = vpop.f32.mrf.mxu0 }
  0xa9   : > { %v389_v57 = vpop.f32.mrf.mxu1 }
  0xaa   : > { %v390_v62 = vadd.f32 %v389_v57, %v370_v56 }
  0xb0   : > { %v569_v58 = vpop.f32.mrf.mxu2  ;;  %v372_v60 = vpop.f32.mrf.mxu0 }
  0xb1   : > { %v588_v59 = vpop.f32.mrf.mxu3  ;;  %v391_v61 = vpop.f32.mrf.mxu1 }
  0xb2   : > { %v589_v63 = vadd.f32 %v588_v59, %v569_v58  ;;  %v392_v5 = vadd.f32 %v391_v61, %v372_v60 }
  0xb4   : > { %v598_v3 = vadd.f32 %v589_v63, %v390_v62 }
  0xb6   : > { %v614_v12 = vadd.f32 %v1069_v4, %v598_v3 }
  0xb8   : > { %v571_v1 = vpop.f32.mrf.mxu2  ;;  %v375_v10 = vpop.f32.mrf.mxu0  ;;  %v691_v32 = vsel %vm679_vm1, %v614_v12, 0.0 }
  0xb9   : > { %v590_v2 = vpop.f32.mrf.mxu3  ;;  %v394_v11 = vpop.f32.mrf.mxu1  ;;  %v705_v38 = vmul.f32 %v691_v32, %v691_v32 }
  0xba   : > { %v591_v6 = vadd.f32 %v590_v2, %v571_v1  ;;  %v395_v16 = vadd.f32 %v394_v11, %v375_v10 }
  0xbc   : > { %v599_v8 = vadd.f32 %v591_v6, %v392_v5 }
  0xbe   : > { %v615_v13 = vadd.f32 %v1069_v4, %v599_v8 }
  0xc0   : > { %v1052_v15 = vpack.c.bf16 %v615_v13, %v614_v12  ;;  %v574_v18 = vpop.f32.mrf.mxu2  ;;  %v377_v26 = vpop.f32.mrf.mxu0  ;;  %v692_v28 = vsel %vm680_vm0, %v615_v13, 0.0 }
  0xc1   : > { %v593_v19 = vpop.f32.mrf.mxu3  ;;  %v396_v27 = vpop.f32.mrf.mxu1  ;;  %v706_v36 = vmul.f32 %v692_v28, %v692_v28  ;;  %v695_v39 = vadd.f32 %v692_v28, %v691_v32 }
  0xc2   : > { %1053 = vst [vmem:[%s1242_s18] sm:$0xff] %v1052_v15   ;;  %v594_v20 = vadd.f32 %v593_v19, %v574_v18  ;;  %v397_v34 = vadd.f32 %v396_v27, %v377_v26 }
  0xc3   : > { %v709_v42 = vadd.f32 %v706_v36, %v705_v38 }
  0xc4   : > { %v600_v23 = vadd.f32 %v594_v20, %v395_v16 }
  0xc6   : > { %v616_v25 = vadd.f32 %v1069_v4, %v600_v23 }
  0xc8   : > { %v576_v29 = vpop.f32.mrf.mxu2  ;;  %v693_v33 = vsel %vm681_vm2, %v616_v25, 0.0 }
  0xc9   : > { %v595_v30 = vpop.f32.mrf.mxu3  ;;  %v707_v40 = vmul.f32 %v693_v33, %v693_v33  ;;  %v696_v43 = vadd.f32 %v695_v39, %v693_v33 }
  0xca   : > { %v596_v35 = vadd.f32 %v595_v30, %v576_v29 }
  0xcb   : > { %v710_v46 = vadd.f32 %v709_v42, %v707_v40 }
  0xcc   : > { %v601_v37 = vadd.f32 %v596_v35, %v397_v34 }
  0xce   : > { %v617_v41 = vadd.f32 %v1069_v4, %v601_v37 }
  0xd0   : > { %v1057_v44 = vpack.c.bf16 %v617_v41, %v616_v25  ;;  %v694_v45 = vsel %vm682_vm3, %v617_v41, 0.0 }
  0xd1   : > { %v697_v47 = vadd.f32 %v696_v43, %v694_v45  ;;  %v708_v48 = vmul.f32 %v694_v45, %v694_v45 }
  0xd2   : > { %1059 = vst [vmem:[%s1242_s18 + $0x8] sm:$0xff] %v1057_v44  }
  0xd3   : > { %v698_v49 = vrot.slane %v697_v47, 4  ;;  %v711_v50 = vadd.f32 %v710_v46, %v708_v48 }
  0xd5   : > { %v699_v51 = vadd.f32 %v698_v49, %v697_v47  ;;  %v712_v52 = vrot.slane %v711_v50, 4 }
  0xd7   : > { %v700_v53 = vrot.slane %v699_v51, 2  ;;  %v713_v54 = vadd.f32 %v712_v52, %v711_v50 }
  0xd9   : > { %v701_v55 = vadd.f32 %v700_v53, %v699_v51  ;;  %v714_v56 = vrot.slane %v713_v54, 2 }
  0xdb   : > { %v702_v57 = vrot.slane %v701_v55, 1  ;;  %v715_v58 = vadd.f32 %v714_v56, %v713_v54 }
  0xdd   : > { %v703_v59 = vadd.f32 %v702_v57, %v701_v55  ;;  %v716_v60 = vrot.slane %v715_v58, 1 }
  0xdf   : > { %704 = vst [vmem:[%s208_s22] sm:$0x1] %v703_v59  ;;  %v717_v61 = vadd.f32 %v716_v60, %v715_v58 }
  0xe1   : > { %718 = vst [vmem:[%s208_s22 + $0x1] sm:$0x1] %v717_v61 }
  0xe2 PF: > { %s15_s15 = sadd.s32 1, %s1076_s15  }
  0xe3   : > { %p12_p4 = scmp.ge.s32.totalorder %s15_s15, 4  }
  0xe5   :  { %14 = sbr.rel (!%p12_p4) target bundleno = 1 (0x1), region = 75 }

// kernel: _patchgan_forward.10
= control target key start
LH: loop header
LB: loop body
LE: loop exit
PB: predicated region body
PF: predicated region fallthrough
CT: control target
= control target key end

     0   :  { %s1668_s15 = smov 0   ;;  %s1914_s0 = inlined_call_operand.vmem [shape: bf16[2,48,256], index: 0, kind: input, shape index: {}]   ;;  %s1915_s1 = inlined_call_operand.vmem [shape: bf16[4,256,128], index: 1, kind: input, shape index: {}]   ;;  %s1916_s2 = inlined_call_operand.vmem [shape: f32[1,128], index: 2, kind: input, shape index: {}]   ;;  %s1917_s3 = inlined_call_operand.vmem [shape: bf16[2,24,128], index: 3, kind: output, shape index: {0}]   ;;  %s1918_s4 = inlined_call_operand.vmem [shape: f32[2,2,128], index: 4, kind: output, shape index: {1}]  }
   0x1 LB: > { %s1153_s16 = sadd.s32 4294967295, %s1641_s15   ;;  %p1157_p0 = scmp.ge.s32.totalorder %s1641_s15, 1  ;;  %s1641_s15 = sphi %s1668_s15, %s15_s15  }
   0x2   : > { %p165_p1 = scmp.lt.s32.totalorder %s1641_s15, 3 }
   0x4   : > { %p166_p2 = pnand %p1157_p0, %p165_p1 }
   0x5   : > { %p195_p3 = scmp.lt.s32.totalorder (!%p166_p2), %s1153_s16, 1 }
   0x6   : > { %169 = sbr.rel (%p166_p2) target bundleno = 250 (0xfa), region = 32 }
   0xb   : > { %v1556_v0 = vld [vmem:[%s1915_s1 + $0x38] sm:$0xff]  ;;  %v1555_v4 = vld [vmem:[%s1915_s1 + $0x30] sm:$0xff]  ;;  %v1554_v8 = vld [vmem:[%s1915_s1 + $0x28] sm:$0xff]  ;;  %s1920_s16 = smov (!%p195_p3, %s1153_s16), 1 }
   0xc   : > { %v1564_v1 = vld [vmem:[%s1915_s1 + $0x78] sm:$0xff]  ;;  %357 = vmatpush.bf16.msra.mxu0 %v1556_v0  ;;  %v1563_v5 = vld [vmem:[%s1915_s1 + $0x70] sm:$0xff]  ;;  %v1562_v9 = vld [vmem:[%s1915_s1 + $0x68] sm:$0xff]  ;;  %s1624_s11 = smul.u32 48, %s1920_s16 }
   0xd   : > { %v1574_v2 = vld [vmem:[%s1915_s1 + $0xb8] sm:$0xff]  ;;  %375 = vmatpush.bf16.msra.mxu1 %v1564_v1  ;;  %v1573_v6 = vld [vmem:[%s1915_s1 + $0xb0] sm:$0xff]  ;;  %v1572_v10 = vld [vmem:[%s1915_s1 + $0xa8] sm:$0xff]  ;;  %s1625_s7 = smul.u32 12, %s1920_s16 }
   0xe   : > { %v1582_v3 = vld [vmem:[%s1915_s1 + $0xf8] sm:$0xff]  ;;  %548 = vmatpush.bf16.msra.mxu2 %v1574_v2  ;;  %v1581_v7 = vld [vmem:[%s1915_s1 + $0xf0] sm:$0xff]  ;;  %v1580_v11 = vld [vmem:[%s1915_s1 + $0xe8] sm:$0xff]  ;;  %s1764_s24 = scalar_lea.vmem %s1914_s0, %s1624_s11  ;;  %s1160_s11 = sshll.u32 %s1920_s16, 1 }
   0xf   : > { %566 = vmatpush.bf16.msra.mxu3 %v1582_v3  ;;  %v1553_v12 = vld [vmem:[%s1915_s1 + $0x20] sm:$0xff]  ;;  %v1552_v16 = vld [vmem:[%s1915_s1 + $0x18] sm:$0xff]  ;;  %v1551_v20 = vld [vmem:[%s1915_s1 + $0x10] sm:$0xff]  ;;  %s204_s10 = scalar_lea.vmem %s1917_s3, %s1625_s7  ;;  %s208_s14 = scalar_lea.vmem %s1918_s4, %s1160_s11 }
  0x10   : > { %358 = vmatpush.bf16.msra.mxu0 %v1555_v4  ;;  %v1561_v13 = vld [vmem:[%s1915_s1 + $0x60] sm:$0xff]  ;;  %v1560_v17 = vld [vmem:[%s1915_s1 + $0x58] sm:$0xff]  ;;  %v1559_v21 = vld [vmem:[%s1915_s1 + $0x50] sm:$0xff] }
  0x11   : > { %376 = vmatpush.bf16.msra.mxu1 %v1563_v5  ;;  %v1571_v14 = vld [vmem:[%s1915_s1 + $0xa0] sm:$0xff]  ;;  %v1570_v18 = vld [vmem:[%s1915_s1 + $0x98] sm:$0xff]  ;;  %v1569_v22 = vld [vmem:[%s1915_s1 + $0x90] sm:$0xff] }
  0x12   : > { %549 = vmatpush.bf16.msra.mxu2 %v1573_v6  ;;  %v1579_v15 = vld [vmem:[%s1915_s1 + $0xe0] sm:$0xff]  ;;  %v1578_v19 = vld [vmem:[%s1915_s1 + $0xd8] sm:$0xff]  ;;  %v1577_v23 = vld [vmem:[%s1915_s1 + $0xd0] sm:$0xff] }
  0x13   : > { %567 = vmatpush.bf16.msra.mxu3 %v1581_v7  ;;  %v1550_v24 = vld [vmem:[%s1915_s1 + $0x8] sm:$0xff]  ;;  %v1549_v28 = vld [vmem:[%s1915_s1] sm:$0xff]  ;;  %v1566_v37 = vld [vmem:[%s1764_s24 + $0xc] sm:$0xf0] }
  0x14   : > { %359 = vmatpush.bf16.msra.mxu0 %v1554_v8  ;;  %v1558_v25 = vld [vmem:[%s1915_s1 + $0x48] sm:$0xff]  ;;  %v1557_v29 = vld [vmem:[%s1915_s1 + $0x40] sm:$0xff]  ;;  %v1269_v39 = vld [vmem:[%s1764_s24 + $0x10] sm:$0xf0] }
  0x15   : > { %377 = vmatpush.bf16.msra.mxu1 %v1562_v9  ;;  %v1568_v26 = vld [vmem:[%s1915_s1 + $0x88] sm:$0xff]  ;;  %v1567_v30 = vld [vmem:[%s1915_s1 + $0x80] sm:$0xff]  ;;  %v1610_v40 = vld [vmem:[%s1915_s1 + $0x1b8] sm:$0xff] }
  0x16   : > { %550 = vmatpush.bf16.msra.mxu2 %v1572_v10  ;;  %v1576_v27 = vld [vmem:[%s1915_s1 + $0xc8] sm:$0xff]  ;;  %v1575_v31 = vld [vmem:[%s1915_s1 + $0xc0] sm:$0xff]  ;;  %v1618_v41 = vld [vmem:[%s1915_s1 + $0x1f8] sm:$0xff] }
  0x17   : > { %568 = vmatpush.bf16.msra.mxu3 %v1580_v11  ;;  %v1163_v32 = vld [vmem:[%s1764_s24] sm:$0xf]  ;;  %v1548_v33 = vld [vmem:[%s1764_s24 + $0x4] sm:$0xf0]  ;;  %v1547_v34 = vld [vmem:[%s1764_s24 + $0x4] sm:$0xf] }
  0x18   : > { %360 = vmatpush.bf16.msra.mxu0 %v1553_v12  ;;  %v1165_v35 = vld [vmem:[%s1764_s24 + $0x8] sm:$0xf0]  ;;  %v1267_v36 = vld [vmem:[%s1764_s24 + $0x8] sm:$0xf]  ;;  %v1164_v42 = vor.u32 %v1548_v33, %v1163_v32  ;;  %v1592_v46 = vld [vmem:[%s1915_s1 + $0x138] sm:$0xff] }
  0x19   : > { %378 = vmatpush.bf16.msra.mxu1 %v1561_v13  ;;  %v1565_v38 = vld [vmem:[%s1764_s24 + $0xc] sm:$0xf]  ;;  %v1168_v43 = vor.u32 %v1547_v34, %v1165_v35  ;;  %v1268_v44 = vor.u32 %v1566_v37, %v1267_v36  ;;  %v1600_v47 = vld [vmem:[%s1915_s1 + $0x178] sm:$0xff]  ;;  %v1609_v48 = vld [vmem:[%s1915_s1 + $0x1b0] sm:$0xff] }
  0x1a   : > { %551 = vmatpush.bf16.msra.mxu2 %v1571_v14  ;;  %v1272_v45 = vor.u32 %v1565_v38, %v1269_v39  ;;  %v1617_v49 = vld [vmem:[%s1915_s1 + $0x1f0] sm:$0xff]  ;;  %v1608_v52 = vld [vmem:[%s1915_s1 + $0x1a8] sm:$0xff]  ;;  %v401_v57 = vld [vmem:[%s1764_s24 + $0x18] sm:$0xff] }
  0x1b   : > { %569 = vmatpush.bf16.msra.mxu3 %v1579_v15  ;;  %v1591_v50 = vld [vmem:[%s1915_s1 + $0x130] sm:$0xff]  ;;  %v1616_v53 = vld [vmem:[%s1915_s1 + $0x1e8] sm:$0xff]  ;;  %v1607_v58 = vld [vmem:[%s1915_s1 + $0x1a0] sm:$0xff]  ;;  %v442_v62 = vunpack.c.l.b16 %v401_v57  ;;  %v443_v63 = vunpack.c.h.b16 %v401_v57 }
  0x1c   : > { %361 = vmatpush.bf16.msra.mxu0 %v1552_v16  ;;  %v1599_v51 = vld [vmem:[%s1915_s1 + $0x170] sm:$0xff]  ;;  %v1590_v55 = vld [vmem:[%s1915_s1 + $0x128] sm:$0xff]  ;;  %v1615_v59 = vld [vmem:[%s1915_s1 + $0x1e0] sm:$0xff] }
  0x1d   : > { %379 = vmatpush.bf16.msra.mxu1 %v1560_v17  ;;  %v211_v54 = vld [vmem:[%s1764_s24 + $0x10] sm:$0xff]  ;;  %v1598_v56 = vld [vmem:[%s1915_s1 + $0x168] sm:$0xff]  ;;  %v1589_v0 = vld [vmem:[%s1915_s1 + $0x120] sm:$0xff]  ;;  %v446_v6 = vpack.c.b16 %v442_v62, %v442_v62  ;;  %v447_v7 = vpack.c.b16 %v443_v63, %v443_v63 }
  0x1e   : > { %552 = vmatpush.bf16.msra.mxu2 %v1570_v18  ;;  %v251_v60 = vunpack.c.l.b16 %v211_v54  ;;  %v252_v61 = vunpack.c.h.b16 %v211_v54  ;;  %v1597_v1 = vld [vmem:[%s1915_s1 + $0x160] sm:$0xff]  ;;  %v1606_v2 = vld [vmem:[%s1915_s1 + $0x198] sm:$0xff]  ;;  %v1605_v10 = vld [vmem:[%s1915_s1 + $0x190] sm:$0xff] }
  0x1f   : > { %570 = vmatpush.bf16.msra.mxu3 %v1578_v19  ;;  %v1614_v3 = vld [vmem:[%s1915_s1 + $0x1d8] sm:$0xff]  ;;  %v1613_v11 = vld [vmem:[%s1915_s1 + $0x1d0] sm:$0xff]  ;;  %v1604_v14 = vld [vmem:[%s1915_s1 + $0x188] sm:$0xff] }
  0x20   : > { %362 = vmatpush.bf16.msra.mxu0 %v1551_v20  ;;  %v255_v4 = vpack.c.b16 %v251_v60, %v251_v60  ;;  %v256_v5 = vpack.c.b16 %v252_v61, %v252_v61  ;;  %v1588_v8 = vld [vmem:[%s1915_s1 + $0x118] sm:$0xff]  ;;  %v1587_v12 = vld [vmem:[%s1915_s1 + $0x110] sm:$0xff]  ;;  %v1612_v15 = vld [vmem:[%s1915_s1 + $0x1c8] sm:$0xff] }
  0x21   : > { %380 = vmatpush.bf16.msra.mxu1 %v1559_v21  ;;  %v1596_v9 = vld [vmem:[%s1915_s1 + $0x158] sm:$0xff]  ;;  %v1595_v13 = vld [vmem:[%s1915_s1 + $0x150] sm:$0xff]  ;;  %v1586_v16 = vld [vmem:[%s1915_s1 + $0x108] sm:$0xff] }
  0x22   : > { %553 = vmatpush.bf16.msra.mxu2 %v1569_v22  ;;  %v1594_v17 = vld [vmem:[%s1915_s1 + $0x148] sm:$0xff]  ;;  %v1603_v18 = vld [vmem:[%s1915_s1 + $0x180] sm:$0xff]  ;;  %v1371_v22 = vld [vmem:[%s1764_s24 + $0x10] sm:$0xf] }
  0x23   : > { %571 = vmatpush.bf16.msra.mxu3 %v1577_v23  ;;  %v1611_v19 = vld [vmem:[%s1915_s1 + $0x1c0] sm:$0xff]  ;;  %v1584_v23 = vld [vmem:[%s1764_s24 + $0x14] sm:$0xf0]  ;;  %v789_v35 = vld [vmem:[%s1764_s24 + $0x28] sm:$0xff] }
  0x24   : > { %363 = vmatpush.bf16.msra.mxu0 %v1550_v24  ;;  %v1585_v20 = vld [vmem:[%s1915_s1 + $0x100] sm:$0xff]  ;;  %v1583_v24 = vld [vmem:[%s1764_s24 + $0x14] sm:$0xf]  ;;  %v830_v38 = vunpack.c.l.b16 %v789_v35  ;;  %v831_v39 = vunpack.c.h.b16 %v789_v35 }
  0x25   : > { %381 = vmatpush.bf16.msra.mxu1 %v1558_v25  ;;  %v1593_v21 = vld [vmem:[%s1915_s1 + $0x140] sm:$0xff]  ;;  %v1373_v25 = vld [vmem:[%s1764_s24 + $0x18] sm:$0xf0] }
  0x26   : > { %554 = vmatpush.bf16.msra.mxu2 %v1568_v26  ;;  %v1475_v26 = vld [vmem:[%s1764_s24 + $0x18] sm:$0xf]  ;;  %v595_v34 = vld [vmem:[%s1764_s24 + $0x20] sm:$0xff] }
  0x27   : > { %572 = vmatpush.bf16.msra.mxu3 %v1576_v27  ;;  %v1602_v27 = vld [vmem:[%s1764_s24 + $0x1c] sm:$0xf0]  ;;  %v636_v36 = vunpack.c.l.b16 %v595_v34  ;;  %v637_v37 = vunpack.c.h.b16 %v595_v34 }
  0x28   : > { %364 = vmatpush.bf16.msra.mxu0 %v1549_v28  ;;  %v1601_v28 = vld [vmem:[%s1764_s24 + $0x1c] sm:$0xf]  ;;  %v1476_v32 = vor.u32 %v1602_v27, %v1475_v26 }
  0x29   : > { %382 = vmatpush.bf16.msra.mxu1 %v1557_v29  ;;  %v1477_v29 = vld [vmem:[%s1764_s24 + $0x20] sm:$0xf0] }
  0x2a   : > { %555 = vmatpush.bf16.msra.mxu2 %v1567_v30  ;;  %v1372_v30 = vor.u32 %v1584_v23, %v1371_v22  ;;  %v1480_v33 = vor.u32 %v1601_v28, %v1477_v29 }
  0x2b   : > { %573 = vmatpush.bf16.msra.mxu3 %v1575_v31  ;;  %365 = vmatmul.bf16.vlgmr.msra.gmra.mxu0 %v1164_v42  ;;  %v1376_v31 = vor.u32 %v1583_v24, %v1373_v25  ;;  %v834_v42 = vpack.c.b16 %v830_v38, %v830_v38 }
  0x2c   : > { %383 = vmatmul.bf16.vlgmr.msra.gmra.mxu1 %v1168_v43  ;;  %742 = vmatpush.bf16.msrb.mxu0 %v1592_v46  ;;  %v835_v43 = vpack.c.b16 %v831_v39, %v831_v39 }
  0x2d   : > { %556 = vmatmul.bf16.vlgmr.msra.gmra.mxu2 %v1268_v44  ;;  %760 = vmatpush.bf16.msrb.mxu1 %v1600_v47 }
  0x2e   : > { %936 = vmatpush.bf16.msrb.mxu2 %v1610_v40  ;;  %574 = vmatmul.bf16.vlgmr.msra.gmra.mxu3 %v1272_v45  ;;  %v640_v40 = vpack.c.b16 %v636_v36, %v636_v36 }
  0x2f   : > { %954 = vmatpush.bf16.msrb.mxu3 %v1618_v41  ;;  %v641_v41 = vpack.c.b16 %v637_v37, %v637_v37 }
  0x30   : > { %743 = vmatpush.bf16.msrb.mxu0 %v1591_v50 }
  0x31   : > { %761 = vmatpush.bf16.msrb.mxu1 %v1599_v51 }
  0x32   : > { %937 = vmatpush.bf16.msrb.mxu2 %v1609_v48 }
  0x33   : > { %955 = vmatpush.bf16.msrb.mxu3 %v1617_v49 }
  0x34   : > { %744 = vmatpush.bf16.msrb.mxu0 %v1590_v55 }
  0x35   : > { %762 = vmatpush.bf16.msrb.mxu1 %v1598_v56 }
  0x36   : > { %938 = vmatpush.bf16.msrb.mxu2 %v1608_v52 }
  0x37   : > { %956 = vmatpush.bf16.msrb.mxu3 %v1616_v53 }
  0x38   : > { %745 = vmatpush.bf16.msrb.mxu0 %v1589_v0  ;;  %v994_v0 = vlaneseq }
  0x39   : > { %763 = vmatpush.bf16.msrb.mxu1 %v1597_v1 }
  0x3a   : > { %939 = vmatpush.bf16.msrb.mxu2 %v1607_v58 }
  0x3b   : > { %957 = vmatpush.bf16.msrb.mxu3 %v1615_v59  ;;  %370 = vmatmul.bf16.gmra.mxu0 %v255_v4 }
  0x3c   : > { %388 = vmatmul.bf16.gmra.mxu1 %v256_v5  ;;  %746 = vmatpush.bf16.msrb.mxu0 %v1588_v8 }
  0x3d   : > { %561 = vmatmul.bf16.gmra.mxu2 %v446_v6  ;;  %764 = vmatpush.bf16.msrb.mxu1 %v1596_v9 }
  0x3e   : > { %940 = vmatpush.bf16.msrb.mxu2 %v1606_v2  ;;  %579 = vmatmul.bf16.gmra.mxu3 %v447_v7  ;;  %v995_v7 = vshrl.u32 %v994_v0, 7 }
  0x3f   : > { %958 = vmatpush.bf16.msrb.mxu3 %v1614_v3 }
  0x40   : > { %747 = vmatpush.bf16.msrb.mxu0 %v1587_v12  ;;  %v996_v12 = vadd.s32 8, %v995_v7  ;;  %v1002_v26 = vand.u32 7, %v995_v7  ;;  %v997_v27 = vadd.s32 16, %v995_v7 }
  0x41   : > { %765 = vmatpush.bf16.msrb.mxu1 %v1595_v13 }
  0x42   : > { %941 = vmatpush.bf16.msrb.mxu2 %v1605_v10  ;;  %v1009_v23 = vand.u32 7, %v996_v12  ;;  %vm1034_vm1 = vcmp.lt.s32.totalorder %v1002_v26, 3  ;;  %v1016_v36 = vand.u32 7, %v997_v27 }
  0x43   : > { %959 = vmatpush.bf16.msrb.mxu3 %v1613_v11 }
  0x44   : > { %748 = vmatpush.bf16.msrb.mxu0 %v1586_v16  ;;  %vm1035_vm0 = vcmp.lt.s32.totalorder %v1009_v23, 3  ;;  %vm1036_vm2 = vcmp.lt.s32.totalorder %v1016_v36, 3 }
  0x45   : > { %766 = vmatpush.bf16.msrb.mxu1 %v1594_v17 }
  0x46   : > { %942 = vmatpush.bf16.msrb.mxu2 %v1604_v14 }
  0x47   : > { %960 = vmatpush.bf16.msrb.mxu3 %v1612_v15 }
  0x48   : > { %749 = vmatpush.bf16.msrb.mxu0 %v1585_v20 }
  0x49   : > { %767 = vmatpush.bf16.msrb.mxu1 %v1593_v21 }
  0x4a   : > { %943 = vmatpush.bf16.msrb.mxu2 %v1603_v18  ;;  %v1634_v18 = vld [vmem:[%s1916_s2] ss:$0 sm:$0xff] }
  0x4b   : > { %961 = vmatpush.bf16.msrb.mxu3 %v1611_v19  ;;  %750 = vmatmul.bf16.vlgmr.msrb.gmra.mxu0 %v1372_v30 }
  0x4c   : > { %768 = vmatmul.bf16.vlgmr.msrb.gmra.mxu1 %v1376_v31 }
  0x4d   : > { %944 = vmatmul.bf16.vlgmr.msrb.gmra.mxu2 %v1476_v32 }
  0x4e   : > { %962 = vmatmul.bf16.vlgmr.msrb.gmra.mxu3 %v1480_v33 }
  0x5b   : > { %755 = vmatmul.bf16.gmra.mxu0 %v640_v40 }
  0x5c   : > { %773 = vmatmul.bf16.gmra.mxu1 %v641_v41 }
  0x5d   : > { %949 = vmatmul.bf16.gmra.mxu2 %v834_v42 }
  0x5e   : > { %967 = vmatmul.bf16.gmra.mxu3 %v835_v43 }
  0xa8   : > { %v366_v44 = vpop.f32.mrf.mxu0 }
  0xa9   : > { %v384_v45 = vpop.f32.mrf.mxu1 }
  0xaa   : > { %v385_v4 = vadd.f32 %v384_v45, %v366_v44 }
  0xb0   : > { %v557_v46 = vpop.f32.mrf.mxu2  ;;  %v368_v48 = vpop.f32.mrf.mxu0 }
  0xb1   : > { %v575_v47 = vpop.f32.mrf.mxu3  ;;  %v386_v49 = vpop.f32.mrf.mxu1 }
  0xb2   : > { %v576_v1 = vadd.f32 %v575_v47, %v557_v46  ;;  %v387_v9 = vadd.f32 %v386_v49, %v368_v48 }
  0xb4   : > { %v584_v8 = vadd.f32 %v576_v1, %v385_v4 }
  0xb8   : > { %v559_v50 = vpop.f32.mrf.mxu2  ;;  %v371_v52 = vpop.f32.mrf.mxu0 }
  0xb9   : > { %v577_v51 = vpop.f32.mrf.mxu3  ;;  %v389_v53 = vpop.f32.mrf.mxu1 }
  0xba   : > { %v578_v5 = vadd.f32 %v577_v51, %v559_v50  ;;  %v390_v28 = vadd.f32 %v389_v53, %v371_v52 }
  0xbc   : > { %v585_v13 = vadd.f32 %v578_v5, %v387_v9 }
  0xc0   : > { %v562_v54 = vpop.f32.mrf.mxu2  ;;  %v373_v56 = vpop.f32.mrf.mxu0 }
  0xc1   : > { %v580_v55 = vpop.f32.mrf.mxu3  ;;  %v391_v57 = vpop.f32.mrf.mxu1 }
  0xc2   : > { %v581_v24 = vadd.f32 %v580_v55, %v562_v54 }
  0xc4   : > { %v586_v32 = vadd.f32 %v581_v24, %v390_v28 }
  0xc8   : > { %v564_v58 = vpop.f32.mrf.mxu2  ;;  %v751_v60 = vpop.f32.mrf.mxu0 }
  0xc9   : > { %v582_v59 = vpop.f32.mrf.mxu3  ;;  %v769_v61 = vpop.f32.mrf.mxu1 }
  0xca   : > { %v770_v6 = vadd.f32 %v769_v61, %v751_v60 }
  0xcc   : > { %v778_v14 = vadd.f32 %v770_v6, %v584_v8 }
  0xd0   : > { %v945_v62 = vpop.f32.mrf.mxu2  ;;  %v753_v2 = vpop.f32.mrf.mxu0 }
  0xd1   : > { %v963_v63 = vpop.f32.mrf.mxu3  ;;  %v771_v3 = vpop.f32.mrf.mxu1 }
  0xd2   : > { %v964_v10 = vadd.f32 %v963_v63, %v945_v62  ;;  %v772_v11 = vadd.f32 %v771_v3, %v753_v2 }
  0xd4   : > { %v972_v17 = vadd.f32 %v964_v10, %v778_v14  ;;  %v779_v19 = vadd.f32 %v772_v11, %v585_v13 }
  0xd6   : > { %v985_v29 = vadd.f32 %v1634_v18, %v972_v17 }
  0xd8   : > { %v947_v15 = vpop.f32.mrf.mxu2  ;;  %v756_v21 = vpop.f32.mrf.mxu0  ;;  %v1043_v42 = vsel %vm1034_vm1, %v985_v29, 0.0 }
  0xd9   : > { %v965_v16 = vpop.f32.mrf.mxu3  ;;  %v774_v22 = vpop.f32.mrf.mxu1  ;;  %v1055_v46 = vmul.f32 %v1043_v42, %v1043_v42 }
  0xda   : > { %v966_v20 = vadd.f32 %v965_v16, %v947_v15  ;;  %v775_v31 = vadd.f32 %v774_v22, %v756_v21 }
  0xdc   : > { %v973_v25 = vadd.f32 %v966_v20, %v779_v19  ;;  %v780_v38 = vadd.f32 %v775_v31, %v586_v32 }
  0xde   : > { %v986_v30 = vadd.f32 %v1634_v18, %v973_v25 }
  0xe0   : > { %v1622_v33 = vpack.c.bf16 %v986_v30, %v985_v29  ;;  %v950_v34 = vpop.f32.mrf.mxu2  ;;  %v1044_v37 = vsel %vm1035_vm0, %v986_v30, 0.0  ;;  %v758_v40 = vpop.f32.mrf.mxu0 }
  0xe1   : > { %v968_v35 = vpop.f32.mrf.mxu3  ;;  %v776_v41 = vpop.f32.mrf.mxu1  ;;  %v1056_v44 = vmul.f32 %v1044_v37, %v1044_v37  ;;  %v1046_v47 = vadd.f32 %v1044_v37, %v1043_v42 }
  0xe2   : > { %1623 = vst [vmem:[%s204_s10] sm:$0xff] %v1622_v33   ;;  %v969_v39 = vadd.f32 %v968_v35, %v950_v34 }
  0xe3   : > { %v1058_v50 = vadd.f32 %v1056_v44, %v1055_v46 }
  0xe4   : > { %v974_v43 = vadd.f32 %v969_v39, %v780_v38 }
  0xe6   : > { %v987_v45 = vadd.f32 %v1634_v18, %v974_v43 }
  0xe8   : > { %v990_v48 = vpack.c.bf16 %v987_v45, %v987_v45  ;;  %v1045_v49 = vsel %vm1036_vm2, %v987_v45, 0.0  ;;  %v952_v53 = vpop.f32.mrf.mxu2 }
  0xe9   : > { %v1047_v51 = vadd.f32 %v1046_v47, %v1045_v49  ;;  %v1057_v52 = vmul.f32 %v1045_v49, %v1045_v49  ;;  %v970_v54 = vpop.f32.mrf.mxu3 }
  0xea   : > { %993 = vst [vmem:[%s204_s10 + $0x8] sm:$0xf] %v990_v48 }
  0xeb   : > { %v1048_v55 = vrot.slane %v1047_v51, 4  ;;  %v1059_v56 = vadd.f32 %v1058_v50, %v1057_v52 }
  0xed   : > { %v1049_v57 = vadd.f32 %v1048_v55, %v1047_v51  ;;  %v1060_v58 = vrot.slane %v1059_v56, 4 }
  0xef   : > { %v1050_v59 = vrot.slane %v1049_v57, 2  ;;  %v1061_v60 = vadd.f32 %v1060_v58, %v1059_v56 }
  0xf1   : > { %v1051_v61 = vadd.f32 %v1050_v59, %v1049_v57  ;;  %v1062_v62 = vrot.slane %v1061_v60, 2 }
  0xf3   : > { %v1052_v63 = vrot.slane %v1051_v61, 1  ;;  %v1063_v0 = vadd.f32 %v1062_v62, %v1061_v60 }
  0xf5   : > { %v1053_v1 = vadd.f32 %v1052_v63, %v1051_v61  ;;  %v1064_v2 = vrot.slane %v1063_v0, 1 }
  0xf7   : > { %1054 = vst [vmem:[%s208_s14] sm:$0x1] %v1053_v1  ;;  %v1065_v3 = vadd.f32 %v1064_v2, %v1063_v0 }
  0xf9   : > { %1066 = vst [vmem:[%s208_s14 + $0x1] sm:$0x1] %v1065_v3 }
  0xfa PF: > { %s15_s15 = sadd.s32 1, %s1641_s15  }
  0xfb   : > { %p12_p4 = scmp.ge.s32.totalorder %s15_s15, 4  }
  0xfd   :  { %14 = sbr.rel (!%p12_p4) target bundleno = 1 (0x1), region = 77 }

// kernel: _patchgan_forward.11
= control target key start
LH: loop header
LB: loop body
LE: loop exit
PB: predicated region body
PF: predicated region fallthrough
CT: control target
= control target key end

     0   :  { %s1484_s12 = smov 0   ;;  %s1722_s0 = inlined_call_operand.vmem [shape: bf16[2,40,256], index: 0, kind: input, shape index: {}]   ;;  %s1723_s1 = inlined_call_operand.vmem [shape: bf16[4,256,128], index: 1, kind: input, shape index: {}]   ;;  %s1724_s2 = inlined_call_operand.vmem [shape: f32[1,128], index: 2, kind: input, shape index: {}]   ;;  %s1725_s3 = inlined_call_operand.vmem [shape: f32[2,16,128], index: 3, kind: output, shape index: {}]  }
   0x1 LB: > { %s969_s13 = sadd.s32 4294967295, %s1462_s12   ;;  %p973_p0 = scmp.ge.s32.totalorder %s1462_s12, 1  ;;  %s1462_s12 = sphi %s1484_s12, %s13_s12  }
   0x2   : > { %p137_p1 = scmp.lt.s32.totalorder %s1462_s12, 3 }
   0x4   : > { %p138_p2 = pnand %p973_p0, %p137_p1 }
   0x5   : > { %p161_p3 = scmp.lt.s32.totalorder (!%p138_p2), %s969_s13, 1 }
   0x6   : > { %141 = sbr.rel (%p138_p2) target bundleno = 253 (0xfd), region = 32 }
   0xb   : > { %v1375_v0 = vld [vmem:[%s1723_s1 + $0x38] sm:$0xff]  ;;  %v1374_v4 = vld [vmem:[%s1723_s1 + $0x30] sm:$0xff]  ;;  %v1373_v8 = vld [vmem:[%s1723_s1 + $0x28] sm:$0xff]  ;;  %s1727_s13 = smov (!%p161_p3, %s969_s13), 1 }
   0xc   : > { %v1383_v1 = vld [vmem:[%s1723_s1 + $0x78] sm:$0xff]  ;;  %311 = vmatpush.bf16.msra.mxu0 %v1375_v0  ;;  %v1382_v5 = vld [vmem:[%s1723_s1 + $0x70] sm:$0xff]  ;;  %v1381_v9 = vld [vmem:[%s1723_s1 + $0x68] sm:$0xff]  ;;  %s1438_s10 = smul.u32 40, %s1727_s13  ;;  %s1365_s25 = sshll.u32 %s1727_s13, 4 }
   0xd   : > { %v1393_v2 = vld [vmem:[%s1723_s1 + $0xb8] sm:$0xff]  ;;  %325 = vmatpush.bf16.msra.mxu1 %v1383_v1  ;;  %v1392_v6 = vld [vmem:[%s1723_s1 + $0xb0] sm:$0xff]  ;;  %v1391_v10 = vld [vmem:[%s1723_s1 + $0xa8] sm:$0xff]  ;;  %s170_s28 = scalar_lea.vmem %s1725_s3, %s1365_s25 }
   0xe   : > { %v1401_v3 = vld [vmem:[%s1723_s1 + $0xf8] sm:$0xff]  ;;  %484 = vmatpush.bf16.msra.mxu2 %v1393_v2  ;;  %v1400_v7 = vld [vmem:[%s1723_s1 + $0xf0] sm:$0xff]  ;;  %v1399_v11 = vld [vmem:[%s1723_s1 + $0xe8] sm:$0xff]  ;;  %s1586_s23 = scalar_lea.vmem %s1722_s0, %s1438_s10 }
   0xf   : > { %498 = vmatpush.bf16.msra.mxu3 %v1401_v3  ;;  %v1372_v12 = vld [vmem:[%s1723_s1 + $0x20] sm:$0xff]  ;;  %v1371_v16 = vld [vmem:[%s1723_s1 + $0x18] sm:$0xff]  ;;  %v1370_v20 = vld [vmem:[%s1723_s1 + $0x10] sm:$0xff] }
  0x10   : > { %312 = vmatpush.bf16.msra.mxu0 %v1374_v4  ;;  %v1380_v13 = vld [vmem:[%s1723_s1 + $0x60] sm:$0xff]  ;;  %v1379_v17 = vld [vmem:[%s1723_s1 + $0x58] sm:$0xff]  ;;  %v1378_v21 = vld [vmem:[%s1723_s1 + $0x50] sm:$0xff] }
  0x11   : > { %326 = vmatpush.bf16.msra.mxu1 %v1382_v5  ;;  %v1390_v14 = vld [vmem:[%s1723_s1 + $0xa0] sm:$0xff]  ;;  %v1389_v18 = vld [vmem:[%s1723_s1 + $0x98] sm:$0xff]  ;;  %v1388_v22 = vld [vmem:[%s1723_s1 + $0x90] sm:$0xff] }
  0x12   : > { %485 = vmatpush.bf16.msra.mxu2 %v1392_v6  ;;  %v1398_v15 = vld [vmem:[%s1723_s1 + $0xe0] sm:$0xff]  ;;  %v1397_v19 = vld [vmem:[%s1723_s1 + $0xd8] sm:$0xff]  ;;  %v1396_v23 = vld [vmem:[%s1723_s1 + $0xd0] sm:$0xff] }
  0x13   : > { %499 = vmatpush.bf16.msra.mxu3 %v1400_v7  ;;  %v1369_v24 = vld [vmem:[%s1723_s1 + $0x8] sm:$0xff]  ;;  %v1368_v28 = vld [vmem:[%s1723_s1] sm:$0xff]  ;;  %v1411_v32 = vld [vmem:[%s1723_s1 + $0x138] sm:$0xff] }
  0x14   : > { %313 = vmatpush.bf16.msra.mxu0 %v1373_v8  ;;  %v1377_v25 = vld [vmem:[%s1723_s1 + $0x48] sm:$0xff]  ;;  %v1376_v29 = vld [vmem:[%s1723_s1 + $0x40] sm:$0xff]  ;;  %v1419_v33 = vld [vmem:[%s1723_s1 + $0x178] sm:$0xff] }
  0x15   : > { %327 = vmatpush.bf16.msra.mxu1 %v1381_v9  ;;  %v1387_v26 = vld [vmem:[%s1723_s1 + $0x88] sm:$0xff]  ;;  %v1386_v30 = vld [vmem:[%s1723_s1 + $0x80] sm:$0xff]  ;;  %v1385_v35 = vld [vmem:[%s1586_s23 + $0xc] sm:$0xf0] }
  0x16   : > { %486 = vmatpush.bf16.msra.mxu2 %v1391_v10  ;;  %v1395_v27 = vld [vmem:[%s1723_s1 + $0xc8] sm:$0xff]  ;;  %v1394_v31 = vld [vmem:[%s1723_s1 + $0xc0] sm:$0xff]  ;;  %v1085_v37 = vld [vmem:[%s1586_s23 + $0x10] sm:$0xf0] }
  0x17   : > { %500 = vmatpush.bf16.msra.mxu3 %v1399_v11  ;;  %v1083_v34 = vld [vmem:[%s1586_s23 + $0x8] sm:$0xf]  ;;  %v1384_v36 = vld [vmem:[%s1586_s23 + $0xc] sm:$0xf]  ;;  %v979_v38 = vld [vmem:[%s1586_s23] sm:$0xf] }
  0x18   : > { %314 = vmatpush.bf16.msra.mxu0 %v1372_v12  ;;  %v1367_v39 = vld [vmem:[%s1586_s23 + $0x4] sm:$0xf0]  ;;  %v1366_v40 = vld [vmem:[%s1586_s23 + $0x4] sm:$0xf]  ;;  %v981_v41 = vld [vmem:[%s1586_s23 + $0x8] sm:$0xf0]  ;;  %v1084_v44 = vor.u32 %v1385_v35, %v1083_v34  ;;  %v1088_v45 = vor.u32 %v1384_v36, %v1085_v37 }
  0x19   : > { %328 = vmatpush.bf16.msra.mxu1 %v1380_v13  ;;  %v1429_v42 = vld [vmem:[%s1723_s1 + $0x1b8] sm:$0xff]  ;;  %v980_v46 = vor.u32 %v1367_v39, %v979_v38  ;;  %v984_v47 = vor.u32 %v1366_v40, %v981_v41  ;;  %v1410_v48 = vld [vmem:[%s1723_s1 + $0x130] sm:$0xff]  ;;  %v1409_v52 = vld [vmem:[%s1723_s1 + $0x128] sm:$0xff] }
  0x1a   : > { %487 = vmatpush.bf16.msra.mxu2 %v1390_v14  ;;  %v1437_v43 = vld [vmem:[%s1723_s1 + $0x1f8] sm:$0xff]  ;;  %v1418_v49 = vld [vmem:[%s1723_s1 + $0x170] sm:$0xff]  ;;  %v1417_v53 = vld [vmem:[%s1723_s1 + $0x168] sm:$0xff] }
  0x1b   : > { %501 = vmatpush.bf16.msra.mxu3 %v1398_v15  ;;  %v1428_v50 = vld [vmem:[%s1723_s1 + $0x1b0] sm:$0xff]  ;;  %v1427_v54 = vld [vmem:[%s1723_s1 + $0x1a8] sm:$0xff]  ;;  %v1408_v56 = vld [vmem:[%s1723_s1 + $0x120] sm:$0xff] }
  0x1c   : > { %315 = vmatpush.bf16.msra.mxu0 %v1371_v16  ;;  %v1436_v51 = vld [vmem:[%s1723_s1 + $0x1f0] sm:$0xff]  ;;  %v1435_v55 = vld [vmem:[%s1723_s1 + $0x1e8] sm:$0xff]  ;;  %v1416_v57 = vld [vmem:[%s1723_s1 + $0x160] sm:$0xff] }
  0x1d   : > { %329 = vmatpush.bf16.msra.mxu1 %v1379_v17  ;;  %v1426_v58 = vld [vmem:[%s1723_s1 + $0x1a0] sm:$0xff]  ;;  %v1407_v60 = vld [vmem:[%s1723_s1 + $0x118] sm:$0xff]  ;;  %v1406_v0 = vld [vmem:[%s1723_s1 + $0x110] sm:$0xff] }
  0x1e   : > { %488 = vmatpush.bf16.msra.mxu2 %v1389_v18  ;;  %v1434_v59 = vld [vmem:[%s1723_s1 + $0x1e0] sm:$0xff]  ;;  %v1415_v61 = vld [vmem:[%s1723_s1 + $0x158] sm:$0xff]  ;;  %v1414_v1 = vld [vmem:[%s1723_s1 + $0x150] sm:$0xff] }
  0x1f   : > { %502 = vmatpush.bf16.msra.mxu3 %v1397_v19  ;;  %v1425_v62 = vld [vmem:[%s1723_s1 + $0x198] sm:$0xff]  ;;  %v1424_v2 = vld [vmem:[%s1723_s1 + $0x190] sm:$0xff]  ;;  %v1405_v4 = vld [vmem:[%s1723_s1 + $0x108] sm:$0xff] }
  0x20   : > { %316 = vmatpush.bf16.msra.mxu0 %v1370_v20  ;;  %v1433_v63 = vld [vmem:[%s1723_s1 + $0x1d8] sm:$0xff]  ;;  %v1432_v3 = vld [vmem:[%s1723_s1 + $0x1d0] sm:$0xff]  ;;  %v1413_v5 = vld [vmem:[%s1723_s1 + $0x148] sm:$0xff] }
  0x21   : > { %330 = vmatpush.bf16.msra.mxu1 %v1378_v21  ;;  %v1423_v6 = vld [vmem:[%s1723_s1 + $0x188] sm:$0xff]  ;;  %v1404_v8 = vld [vmem:[%s1723_s1 + $0x100] sm:$0xff]  ;;  %v1187_v12 = vld [vmem:[%s1586_s23 + $0x10] sm:$0xf] }
  0x22   : > { %489 = vmatpush.bf16.msra.mxu2 %v1388_v22  ;;  %v1431_v7 = vld [vmem:[%s1723_s1 + $0x1c8] sm:$0xff]  ;;  %v1412_v9 = vld [vmem:[%s1723_s1 + $0x140] sm:$0xff]  ;;  %v1403_v13 = vld [vmem:[%s1586_s23 + $0x14] sm:$0xf0] }
  0x23   : > { %503 = vmatpush.bf16.msra.mxu3 %v1396_v23  ;;  %v1422_v10 = vld [vmem:[%s1723_s1 + $0x180] sm:$0xff]  ;;  %v1402_v14 = vld [vmem:[%s1586_s23 + $0x14] sm:$0xf]  ;;  %v1189_v15 = vld [vmem:[%s1586_s23 + $0x18] sm:$0xf0]  ;;  %v1188_v20 = vor.u32 %v1403_v13, %v1187_v12 }
  0x24   : > { %317 = vmatpush.bf16.msra.mxu0 %v1369_v24  ;;  %v1430_v11 = vld [vmem:[%s1723_s1 + $0x1c0] sm:$0xff]  ;;  %v1291_v16 = vld [vmem:[%s1586_s23 + $0x18] sm:$0xf]  ;;  %v1420_v18 = vld [vmem:[%s1586_s23 + $0x1c] sm:$0xf]  ;;  %v1192_v21 = vor.u32 %v1402_v14, %v1189_v15 }
  0x25   : > { %331 = vmatpush.bf16.msra.mxu1 %v1377_v25  ;;  %v1421_v17 = vld [vmem:[%s1586_s23 + $0x1c] sm:$0xf0]  ;;  %v1293_v19 = vld [vmem:[%s1586_s23 + $0x20] sm:$0xf0] }
  0x26   : > { %490 = vmatpush.bf16.msra.mxu2 %v1387_v26  ;;  %v1292_v22 = vor.u32 %v1421_v17, %v1291_v16  ;;  %v1296_v23 = vor.u32 %v1420_v18, %v1293_v19 }
  0x27   : > { %504 = vmatpush.bf16.msra.mxu3 %v1395_v27 }
  0x28   : > { %318 = vmatpush.bf16.msra.mxu0 %v1368_v28 }
  0x29   : > { %332 = vmatpush.bf16.msra.mxu1 %v1376_v29 }
  0x2a   : > { %491 = vmatpush.bf16.msra.mxu2 %v1386_v30 }
  0x2b   : > { %505 = vmatpush.bf16.msra.mxu3 %v1394_v31  ;;  %319 = vmatmul.bf16.vlgmr.msra.gmra.mxu0 %v980_v46 }
  0x2c   : > { %659 = vmatpush.bf16.msrb.mxu0 %v1411_v32  ;;  %333 = vmatmul.bf16.vlgmr.msra.gmra.mxu1 %v984_v47 }
  0x2d   : > { %673 = vmatpush.bf16.msrb.mxu1 %v1419_v33  ;;  %492 = vmatmul.bf16.vlgmr.msra.gmra.mxu2 %v1084_v44 }
  0x2e   : > { %834 = vmatpush.bf16.msrb.mxu2 %v1429_v42  ;;  %506 = vmatmul.bf16.vlgmr.msra.gmra.mxu3 %v1088_v45  ;;  %v1447_v42 = vld [vmem:[%s1724_s2] ss:$0 sm:$0xff] }
  0x2f   : > { %848 = vmatpush.bf16.msrb.mxu3 %v1437_v43 }
  0x30   : > { %660 = vmatpush.bf16.msrb.mxu0 %v1410_v48 }
  0x31   : > { %674 = vmatpush.bf16.msrb.mxu1 %v1418_v49 }
  0x32   : > { %835 = vmatpush.bf16.msrb.mxu2 %v1428_v50 }
  0x33   : > { %849 = vmatpush.bf16.msrb.mxu3 %v1436_v51 }
  0x34   : > { %661 = vmatpush.bf16.msrb.mxu0 %v1409_v52 }
  0x35   : > { %675 = vmatpush.bf16.msrb.mxu1 %v1417_v53 }
  0x36   : > { %836 = vmatpush.bf16.msrb.mxu2 %v1427_v54 }
  0x37   : > { %850 = vmatpush.bf16.msrb.mxu3 %v1435_v55 }
  0x38   : > { %662 = vmatpush.bf16.msrb.mxu0 %v1408_v56 }
  0x39   : > { %676 = vmatpush.bf16.msrb.mxu1 %v1416_v57 }
  0x3a   : > { %837 = vmatpush.bf16.msrb.mxu2 %v1426_v58 }
  0x3b   : > { %851 = vmatpush.bf16.msrb.mxu3 %v1434_v59 }
  0x3c   : > { %663 = vmatpush.bf16.msrb.mxu0 %v1407_v60 }
  0x3d   : > { %677 = vmatpush.bf16.msrb.mxu1 %v1415_v61 }
  0x3e   : > { %838 = vmatpush.bf16.msrb.mxu2 %v1425_v62 }
  0x3f   : > { %852 = vmatpush.bf16.msrb.mxu3 %v1433_v63 }
  0x40   : > { %664 = vmatpush.bf16.msrb.mxu0 %v1406_v0 }
  0x41   : > { %678 = vmatpush.bf16.msrb.mxu1 %v1414_v1 }
  0x42   : > { %839 = vmatpush.bf16.msrb.mxu2 %v1424_v2 }
  0x43   : > { %853 = vmatpush.bf16.msrb.mxu3 %v1432_v3 }
  0x44   : > { %665 = vmatpush.bf16.msrb.mxu0 %v1405_v4 }
  0x45   : > { %679 = vmatpush.bf16.msrb.mxu1 %v1413_v5 }
  0x46   : > { %840 = vmatpush.bf16.msrb.mxu2 %v1423_v6 }
  0x47   : > { %854 = vmatpush.bf16.msrb.mxu3 %v1431_v7 }
  0x48   : > { %666 = vmatpush.bf16.msrb.mxu0 %v1404_v8 }
  0x49   : > { %680 = vmatpush.bf16.msrb.mxu1 %v1412_v9 }
  0x4a   : > { %841 = vmatpush.bf16.msrb.mxu2 %v1422_v10 }
  0x4b   : > { %855 = vmatpush.bf16.msrb.mxu3 %v1430_v11  ;;  %667 = vmatmul.bf16.vlgmr.msrb.gmra.mxu0 %v1188_v20 }
  0x4c   : > { %681 = vmatmul.bf16.vlgmr.msrb.gmra.mxu1 %v1192_v21 }
  0x4d   : > { %842 = vmatmul.bf16.vlgmr.msrb.gmra.mxu2 %v1292_v22 }
  0x4e   : > { %856 = vmatmul.bf16.vlgmr.msrb.gmra.mxu3 %v1296_v23 }
  0xa8   : > { %v320_v24 = vpop.f32.mrf.mxu0 }
  0xa9   : > { %v334_v25 = vpop.f32.mrf.mxu1 }
  0xaa   : > { %v335_v34 = vadd.f32 %v334_v25, %v320_v24 }
  0xb0   : > { %v493_v26 = vpop.f32.mrf.mxu2  ;;  %v322_v28 = vpop.f32.mrf.mxu0 }
  0xb1   : > { %v507_v27 = vpop.f32.mrf.mxu3  ;;  %v336_v29 = vpop.f32.mrf.mxu1 }
  0xb2   : > { %v508_v35 = vadd.f32 %v507_v27, %v493_v26  ;;  %v337_v45 = vadd.f32 %v336_v29, %v322_v28 }
  0xb4   : > { %v512_v37 = vadd.f32 %v508_v35, %v335_v34 }
  0xb8   : > { %v495_v30 = vpop.f32.mrf.mxu2 }
  0xb9   : > { %v509_v31 = vpop.f32.mrf.mxu3 }
  0xba   : > { %v510_v46 = vadd.f32 %v509_v31, %v495_v30 }
  0xbc   : > { %v513_v50 = vadd.f32 %v510_v46, %v337_v45 }
  0xc8   : > { %v668_v32 = vpop.f32.mrf.mxu0 }
  0xc9   : > { %v682_v33 = vpop.f32.mrf.mxu1 }
  0xca   : > { %v683_v36 = vadd.f32 %v682_v33, %v668_v32 }
  0xcc   : > { %v687_v40 = vadd.f32 %v683_v36, %v512_v37 }
  0xd0   : > { %v843_v38 = vpop.f32.mrf.mxu2  ;;  %v670_v43 = vpop.f32.mrf.mxu0 }
  0xd1   : > { %v857_v39 = vpop.f32.mrf.mxu3  ;;  %v684_v44 = vpop.f32.mrf.mxu1 }
  0xd2   : > { %v858_v41 = vadd.f32 %v857_v39, %v843_v38  ;;  %v685_v49 = vadd.f32 %v684_v44, %v670_v43 }
  0xd4   : > { %v862_v47 = vadd.f32 %v858_v41, %v687_v40  ;;  %v688_v54 = vadd.f32 %v685_v49, %v513_v50 }
  0xd6   : > { %v872_v48 = vadd.f32 %v1447_v42, %v862_v47 }
  0xd8   : > { %v1361_v51 = vmul.f32 -1.442695, %v872_v48  ;;  %v845_v52 = vpop.f32.mrf.mxu2 }
  0xd9   : > { %v859_v53 = vpop.f32.mrf.mxu3 }
  0xda   : > { %1448 = vpow2.f32 %v1361_v51  ;;  %v860_v55 = vadd.f32 %v859_v53, %v845_v52 }
  0xdc   : > { %v863_v56 = vadd.f32 %v860_v55, %v688_v54 }
  0xde   : > { %v873_v57 = vadd.f32 %v1447_v42, %v863_v56 }
  0xe0   : > { %v1449_v58 = vpop.eup %1448  ;;  %v1362_v59 = vmul.f32 -1.442695, %v873_v57 }
  0xe1   : > { %v880_v60 = vadd.f32 1.0, %v1449_v58 }
  0xe2   : > { %1450 = vpow2.f32 %v1362_v59 }
  0xe3   : > { %1452 = vrcp.f32 %v880_v60  ;;  %v893_v2 = vand.u32 2147483648, %v880_v60  ;;  %v891_v4 = vand.u32 2147483647, %v880_v60  ;;  %vm887_vm1 = vweird.f32 %v880_v60 }
  0xe5   : > { %v894_v7 = vor.u32 1.1754944e-38, %v893_v2  ;;  %vm892_vm3 = vcmp.eq.f32.partialorder %v891_v4, 8.507059e+37 }
  0xe8   : > { %v1451_v61 = vpop.eup %1450 }
  0xe9   : > { %v1453_v62 = vpop.eup %1452  ;;  %v881_v63 = vadd.f32 1.0, %v1451_v61 }
  0xea   : > { %v883_v0 = vmul.f32 %v1453_v62, %v880_v60  ;;  %vm888_vm0 = vweird.f32 %v1453_v62 }
  0xeb   : > { %1454 = vrcp.f32 %v881_v63  ;;  %vm889_vm2 = vmor %vm887_vm1, %vm888_vm0  ;;  %v908_v12 = vand.u32 2147483648, %v881_v63  ;;  %v906_v14 = vand.u32 2147483647, %v881_v63  ;;  %vm902_vm5 = vweird.f32 %v881_v63 }
  0xec   : > { %v884_v1 = vsub.f32 1.0, %v883_v0 }
  0xed   : > { %v909_v16 = vor.u32 1.1754944e-38, %v908_v12  ;;  %vm907_vm7 = vcmp.eq.f32.partialorder %v906_v14, 8.507059e+37 }
  0xee   : > { %v885_v3 = vmul.f32 %v1453_v62, %v884_v1 }
  0xf0   : > { %v886_v5 = vadd.f32 %v1453_v62, %v885_v3 }
  0xf1   : > { %v1455_v6 = vpop.eup %1454 }
  0xf2   : > { %v890_v8 = vsel %vm889_vm2, %v1453_v62, %v886_v5  ;;  %v898_v9 = vmul.f32 %v1455_v6, %v881_v63  ;;  %vm903_vm4 = vweird.f32 %v1455_v6 }
  0xf3   : > { %v895_v10 = vsel %vm892_vm3, %v894_v7, %v890_v8  ;;  %vm904_vm6 = vmor %vm902_vm5, %vm903_vm4 }
  0xf4   : > { %912 = vst [vmem:[%s170_s28] sm:$0xff] %v895_v10  ;;  %v899_v11 = vsub.f32 1.0, %v898_v9 }
  0xf6   : > { %v900_v13 = vmul.f32 %v1455_v6, %v899_v11 }
  0xf8   : > { %v901_v15 = vadd.f32 %v1455_v6, %v900_v13 }
  0xfa   : > { %v905_v17 = vsel %vm904_vm6, %v1455_v6, %v901_v15 }
  0xfb   : > { %v910_v18 = vsel %vm907_vm7, %v909_v16, %v905_v17 }
  0xfc   : > { %913 = vst [vmem:[%s170_s28 + $0x8] sm:$0xff] %v910_v18 }
  0xfd PF: > { %s13_s12 = sadd.s32 1, %s1462_s12  }
  0xfe   : > { %p10_p4 = scmp.ge.s32.totalorder %s13_s12, 4  }
 0x100   :  { %12 = sbr.rel (!%p10_p4) target bundleno = 1 (0x1), region = 65 }

</bundles_post_ra>
